<compile_context>
chip_gen: v7x
topology: tpu7x:2x2x1
jax: 0.10.0
libtpu: 0.0.40
codegen_flags: <defaults>
</compile_context>

<pallas_src>
import numpy as np
import jax
import jax.numpy as jnp
from jax.experimental import pallas as pl
from jax.experimental.pallas import tpu as pltpu

_BN_EPS = 1e-5
_VMEM_LIMIT_BYTES = 32 * 1024 * 1024   # actual per-step usage is ~2 MiB; safe on v5e/v6e/v7x


# ---------------------------------------------------------------------------
# Constant pool-selection matrices (fixed 28x28 geometry of this network)
#   pooled[:, p_out] = max_map[:, p_in]  with  p_in = (2*ho)*Ws_in + 2*wo
# They simultaneously: stride-2 downsample, compact the storage grid, and (for pool1)
# place the result inside a 15x15 grid with a zero ring = padding halo of convBlock2.
# ---------------------------------------------------------------------------
def _pool_select(w_in, n_out, w_out, row_off, col_off, l_in, l_out):
    s = np.zeros((l_in, l_out), np.float32)
    for ho in range(n_out):
        for wo in range(n_out):
            s[(2 * ho) * w_in + 2 * wo, (ho + row_off) * w_out + (wo + col_off)] = 1.0
    return s


_S1 = _pool_select(30, 13, 15, 1, 1, 745, 225)   # 26x26 (Ws=30) -> 13x13 in 15x15 + zero ring
_S2 = _pool_select(15, 5, 5, 0, 0, 129, 25)      # 11x11 (Ws=15) -> 5x5  in 5x5


# ---------------------------------------------------------------------------
# The fused kernel: one grid step == one sample, all activations stay on-chip.
#
# Flat-layout schedule (storage width Ws, produced flat length L, valid region):
#   input (pad=1 ring baked in)     Ws=30  L=900   30x30
#   conv1a 3x3 +BN+ReLU             Ws=30  L=838   28x28 valid   taps end 62+838=900 ok
#   conv1b 3x3 +BN+ReLU             Ws=30  L=776   26x26 valid   taps end 62+776=838 ok
#   maxpool1 (shifts 0,1,30,31)            Lm=745               slices end 31+745=776 ok
#   @S1 -> 13x13 + zero ring        Ws=15  L=225
#   t1 1x1 +ReLU                    Ws=15  L=225
#   conv2a 3x3(pad via ring)+BN+ReLU Ws=15 L=193   13x13 valid   taps end 32+193=225 ok
#   conv2b 3x3 +BN+ReLU             Ws=15  L=161   11x11 valid   taps end 32+161=193 ok
#   maxpool2 (shifts 0,1,15,16)            Lm=129               slices end 16+129=145<=161 ok
#   @S2 -> 5x5                      Ws=5   L=25
#   t2 1x1 +ReLU                    Ws=5   L=25
#   conv3a 3x3 +BN+ReLU             Ws=5   L=13    3x3 valid     taps end 12+13=25 ok
#   c3b 1x1 +ReLU                   Ws=5   L=13
#   c4  3x3 (no BN/ReLU)            Ws=5   L=1     1x1           taps end 12+1=13 ok
#   log_softmax over the 10 channels
# ---------------------------------------------------------------------------
def _network_kernel(x_ref, w1_ref, w2_ref, s1_ref, wt1_ref, w3_ref, w4_ref,
                    s2_ref, wt2_ref, w5_ref, w6_ref, w7_ref, out_ref):

    def conv3x3(x, w, ws, l_out, with_bias, relu):
        # patch rows ordered (i,j)-major, channel-minor -> weight columns match
        taps = [x[:, i * ws + j: i * ws + j + l_out]
                for i in range(3) for j in range(3)]
        if with_bias:                                   # folded BN bias column
            taps.append(jnp.ones((1, l_out), jnp.float32))
        p = jnp.concatenate(taps, axis=0)
        y = jnp.dot(w, p, preferred_element_type=jnp.float32)
        return jnp.maximum(y, 0.0) if relu else y

    def conv1x1(x, w):                                  # always followed by ReLU here
        return jnp.maximum(jnp.dot(w, x, preferred_element_type=jnp.float32), 0.0)

    def maxpool(x, ws, lm, sel):
        m = jnp.maximum(jnp.maximum(x[:, 0:lm], x[:, 1:lm + 1]),
                        jnp.maximum(x[:, ws:ws + lm], x[:, ws + 1:ws + 1 + lm]))
        return jnp.dot(m, sel, preferred_element_type=jnp.float32)

    x = x_ref[0]                                         # (1, 900): zero-padded 30x30 input

    # convBlock1 (Dropout = identity in eval)
    x = conv3x3(x, w1_ref[...], 30, 838, True, True)     # (8, 838)
    x = conv3x3(x, w2_ref[...], 30, 776, True, True)     # (16, 776)
    # transBlock1
    x = maxpool(x, 30, 745, s1_ref[...])                 # (16, 225)  zero ring included
    x = conv1x1(x, wt1_ref[...])                         # (8, 225)
    # convBlock2
    x = conv3x3(x, w3_ref[...], 15, 193, True, True)     # (16, 193)
    x = conv3x3(x, w4_ref[...], 15, 161, True, True)     # (8, 161)
    # transBlock2
    x = maxpool(x, 15, 129, s2_ref[...])                 # (8, 25)
    x = conv1x1(x, wt2_ref[...])                         # (16, 25)
    # convBlock3
    x = conv3x3(x, w5_ref[...], 5, 13, True, True)       # (16, 13)
    x = conv1x1(x, w6_ref[...])                          # (10, 13)
    # convBlock4
    logits = conv3x3(x, w7_ref[...], 5, 1, False, False)  # (10, 1)

    # log_softmax over the channel axis (== x.view(-1, 10) last axis, spatial is 1x1)
    m = jnp.max(logits, axis=0, keepdims=True)
    z = logits - m
    lse = jnp.log(jnp.sum(jnp.exp(z), axis=0, keepdims=True))
    out_ref[0] = z - lse


# ---------------------------------------------------------------------------
# Trace-time weight preparation (tiny; fused by XLA under jit)
# ---------------------------------------------------------------------------
def _fold_bn(gamma, beta, mean, var):
    scale = gamma / jnp.sqrt(var + _BN_EPS)
    return scale, beta - mean * scale


def _w3x3(w, bn=None):
    """(Cout,Cin,3,3) -> (Cout, 9*Cin [+1]) with (i,j)-major / cin-minor columns."""
    cout = w.shape[0]
    wm = jnp.transpose(w, (0, 2, 3, 1)).reshape(cout, -1)
    if bn is not None:
        scale, bias = bn
        wm = wm * scale[:, None]
        wm = jnp.concatenate([wm, bias[:, None]], axis=1)   # bias column (ones-row trick)
    return wm.astype(jnp.float32)


def _w1x1(w):
    return w.reshape(w.shape[0], w.shape[1]).astype(jnp.float32)


# ---------------------------------------------------------------------------
# Forward pass (mirrors Network.forward; `gap` is defined but unused in forward)
# ---------------------------------------------------------------------------
def network_forward(params, x_nchw):
    b = x_nchw.shape[0]
    assert x_nchw.shape[1:] == (1, 28, 28), "module arithmetic requires 1x28x28 input"

    # pad=1 ring of conv1a baked into the flattened input (the only XLA pre-processing)
    xf = jnp.pad(x_nchw.astype(jnp.float32), ((0, 0), (0, 0), (1, 1), (1, 1)))
    xf = xf.reshape(b, 1, 900)

    w1 = _w3x3(params["c1a_w"], params["c1a_bn"])    # (8, 10)
    w2 = _w3x3(params["c1b_w"], params["c1b_bn"])    # (16, 73)
    wt1 = _w1x1(params["t1_w"])                      # (8, 16)
    w3 = _w3x3(params["c2a_w"], params["c2a_bn"])    # (16, 73)
    w4 = _w3x3(params["c2b_w"], params["c2b_bn"])    # (8, 145)
    wt2 = _w1x1(params["t2_w"])                      # (16, 8)
    w5 = _w3x3(params["c3a_w"], params["c3a_bn"])    # (16, 145)
    w6 = _w1x1(params["c3b_w"])                      # (10, 16)
    w7 = _w3x3(params["c4_w"])                       # (10, 90)
    s1 = jnp.asarray(_S1)                            # (745, 225)
    s2 = jnp.asarray(_S2)                            # (129, 25)

    def full(shape):                                 # weights: resident across the grid
        return pl.BlockSpec(shape, lambda i: (0, 0))

    out = pl.pallas_call(
        _network_kernel,
        out_shape=jax.ShapeDtypeStruct((b, 10, 1), jnp.float32),
        grid=(b,),
        in_specs=[
            pl.BlockSpec((1, 1, 900), lambda i: (i, 0, 0)),   # one sample per grid step
            full(w1.shape), full(w2.shape), full(s1.shape), full(wt1.shape),
            full(w3.shape), full(w4.shape), full(s2.shape), full(wt2.shape),
            full(w5.shape), full(w6.shape), full(w7.shape),
        ],
        out_specs=pl.BlockSpec((1, 10, 1), lambda i: (i, 0, 0)),
        compiler_params=pltpu.CompilerParams(
            dimension_semantics=("parallel",),
            vmem_limit_bytes=_VMEM_LIMIT_BYTES),
    )(xf, w1, w2, s1, wt1, w3, w4, s2, wt2, w5, w6, w7)

    return out[:, :, 0]                              # (B, 10) log-probs


# ---------------------------------------------------------------------------
# Pure-JAX reference (for runtime verification only)
# ---------------------------------------------------------------------------
def _reference_forward(params, x):
    def conv(x, w, pad):
        return jax.lax.conv_general_dilated(
            x, w, window_strides=(1, 1), padding=[(pad, pad), (pad, pad)],
            dimension_numbers=("NCHW", "OIHW", "NCHW"))

    def bn(x, sb):
        s, b = sb
        return x * s[None, :, None, None] + b[None, :, None, None]

    def relu(x):
        return jnp.maximum(x, 0.0)

    def pool(x):
        return jax.lax.reduce_window(x, -jnp.inf, jax.lax.max,
                                     (1, 1, 2, 2), (1, 1, 2, 2), "VALID")

    y = relu(bn(conv(x, params["c1a_w"], 1), params["c1a_bn"]))
    y = relu(bn(conv(y, params["c1b_w"], 0), params["c1b_bn"]))
    y = pool(y)
    y = relu(conv(y, params["t1_w"], 0))
    y = relu(bn(conv(y, params["c2a_w"], 1), params["c2a_bn"]))
    y = relu(bn(conv(y, params["c2b_w"], 0), params["c2b_bn"]))
    y = pool(y)
    y = relu(conv(y, params["t2_w"], 0))
    y = relu(bn(conv(y, params["c3a_w"], 0), params["c3a_bn"]))
    y = relu(conv(y, params["c3b_w"], 0))
    y = conv(y, params["c4_w"], 0)
    return jax.nn.log_softmax(y.reshape(-1, 10), axis=-1)


# ---------------------------------------------------------------------------
# Parameters (deterministic init, same shapes as the PyTorch module)
# ---------------------------------------------------------------------------
def init_params(key):
    ks = iter(jax.random.split(key, 32))

    def conv_w(cout, cin, kh, kw):
        return 0.1 * jax.random.normal(next(ks), (cout, cin, kh, kw), jnp.float32)

    def bn(c):
        gamma = 1.0 + 0.05 * jax.random.normal(next(ks), (c,), jnp.float32)
        beta = 0.05 * jax.random.normal(next(ks), (c,), jnp.float32)
        mean = 0.05 * jax.random.normal(next(ks), (c,), jnp.float32)
        var = 1.0 + 0.05 * jnp.abs(jax.random.normal(next(ks), (c,), jnp.float32))
        return _fold_bn(gamma, beta, mean, var)

    p = {}
    p["c1a_w"] = conv_w(8, 1, 3, 3);   p["c1a_bn"] = bn(8)
    p["c1b_w"] = conv_w(16, 8, 3, 3);  p["c1b_bn"] = bn(16)
    p["t1_w"] = conv_w(8, 16, 1, 1)
    p["c2a_w"] = conv_w(16, 8, 3, 3);  p["c2a_bn"] = bn(16)
    p["c2b_w"] = conv_w(8, 16, 3, 3);  p["c2b_bn"] = bn(8)
    p["t2_w"] = conv_w(16, 8, 1, 1)
    p["c3a_w"] = conv_w(16, 16, 3, 3); p["c3a_bn"] = bn(16)
    p["c3b_w"] = conv_w(10, 16, 1, 1)
    p["c4_w"] = conv_w(10, 10, 3, 3)
    return p


# ---------------------------------------------------------------------------
# Main
# ---------------------------------------------------------------------------
if __name__ == "__main__":
    key = jax.random.PRNGKey(0)
    k_param, k_x = jax.random.split(key)

    params = init_params(k_param)
    # 28x28 spatial size is required by the module's arithmetic (ends at 1x1).
    x = jax.random.normal(k_x, (2, 1, 28, 28), jnp.float32)

    fwd = jax.jit(network_forward)
    out = jax.block_until_ready(fwd(params, x))

    assert out.shape == (2, 10), out.shape
    assert bool(jnp.allclose(jnp.sum(jnp.exp(out), axis=-1), 1.0, atol=1e-4))

    # verify against a pure-JAX reference (loose tolerance: default TPU matmul/conv
    # precision may differ slightly between XLA and the in-kernel MXU path)
    ref = jax.block_until_ready(jax.jit(_reference_forward)(params, x))
    err = float(jnp.max(jnp.abs(out - ref)))
    assert err < 5e-2, f"mismatch vs pure-JAX reference: max abs err = {err}"

    print("KERNEL_OK")
</pallas_src>

<mosaic_0001>
module attributes {stable_mosaic.version = 11 : i64} {
  func.func @_network_kernel(%arg0: i32, %arg1: memref<1x1x900xf32, #tpu.memory_space<vmem>>, %arg2: memref<8x10xf32, #tpu.memory_space<vmem>>, %arg3: memref<16x73xf32, #tpu.memory_space<vmem>>, %arg4: memref<745x225xf32, #tpu.memory_space<vmem>>, %arg5: memref<8x16xf32, #tpu.memory_space<vmem>>, %arg6: memref<16x73xf32, #tpu.memory_space<vmem>>, %arg7: memref<8x145xf32, #tpu.memory_space<vmem>>, %arg8: memref<129x25xf32, #tpu.memory_space<vmem>>, %arg9: memref<16x8xf32, #tpu.memory_space<vmem>>, %arg10: memref<16x145xf32, #tpu.memory_space<vmem>>, %arg11: memref<10x16xf32, #tpu.memory_space<vmem>>, %arg12: memref<10x90xf32, #tpu.memory_space<vmem>>, %arg13: memref<1x10x1xf32, #tpu.memory_space<vmem>>) attributes {dimension_semantics = [#tpu.dimension_semantics<parallel>], iteration_bounds = array<i64: 2>, scalar_prefetch = 0 : i64, scratch_operands = 0 : i64, tpu.core_type = #tpu.core_type<tc>, window_params = [{transform_indices = @transform_0, window_bounds = array<i64: 1, 1, 900>}, {pipeline_mode = #tpu.pipeline_mode<synchronous>, transform_indices = @transform_1, window_bounds = array<i64: 8, 10>}, {pipeline_mode = #tpu.pipeline_mode<synchronous>, transform_indices = @transform_2, window_bounds = array<i64: 16, 73>}, {pipeline_mode = #tpu.pipeline_mode<synchronous>, transform_indices = @transform_3, window_bounds = array<i64: 745, 225>}, {pipeline_mode = #tpu.pipeline_mode<synchronous>, transform_indices = @transform_4, window_bounds = array<i64: 8, 16>}, {pipeline_mode = #tpu.pipeline_mode<synchronous>, transform_indices = @transform_5, window_bounds = array<i64: 16, 73>}, {pipeline_mode = #tpu.pipeline_mode<synchronous>, transform_indices = @transform_6, window_bounds = array<i64: 8, 145>}, {pipeline_mode = #tpu.pipeline_mode<synchronous>, transform_indices = @transform_7, window_bounds = array<i64: 129, 25>}, {pipeline_mode = #tpu.pipeline_mode<synchronous>, transform_indices = @transform_8, window_bounds = array<i64: 16, 8>}, {pipeline_mode = #tpu.pipeline_mode<synchronous>, transform_indices = @transform_9, window_bounds = array<i64: 16, 145>}, {pipeline_mode = #tpu.pipeline_mode<synchronous>, transform_indices = @transform_10, window_bounds = array<i64: 10, 16>}, {pipeline_mode = #tpu.pipeline_mode<synchronous>, transform_indices = @transform_11, window_bounds = array<i64: 10, 90>}, {transform_indices = @transform_12, window_bounds = array<i64: 1, 10, 1>}]} {
    %c0 = arith.constant 0 : index
    %c0_0 = arith.constant 0 : index
    %c0_1 = arith.constant 0 : index
    %0 = vector.load %arg1[%c0, %c0_0, %c0_1] : memref<1x1x900xf32, #tpu.memory_space<vmem>>, vector<1x1x900xf32>
    %1 = vector.shape_cast %0 : vector<1x1x900xf32> to vector<1x900xf32>
    %c0_2 = arith.constant 0 : index
    %c0_3 = arith.constant 0 : index
    %2 = vector.load %arg2[%c0_2, %c0_3] : memref<8x10xf32, #tpu.memory_space<vmem>>, vector<8x10xf32>
    %3 = vector.extract_strided_slice %1 {offsets = [0, 0], sizes = [1, 838], strides = [1, 1]} : vector<1x900xf32> to vector<1x838xf32>
    %4 = vector.extract_strided_slice %1 {offsets = [0, 1], sizes = [1, 838], strides = [1, 1]} : vector<1x900xf32> to vector<1x838xf32>
    %5 = vector.extract_strided_slice %1 {offsets = [0, 2], sizes = [1, 838], strides = [1, 1]} : vector<1x900xf32> to vector<1x838xf32>
    %6 = vector.extract_strided_slice %1 {offsets = [0, 30], sizes = [1, 838], strides = [1, 1]} : vector<1x900xf32> to vector<1x838xf32>
    %7 = vector.extract_strided_slice %1 {offsets = [0, 31], sizes = [1, 838], strides = [1, 1]} : vector<1x900xf32> to vector<1x838xf32>
    %8 = vector.extract_strided_slice %1 {offsets = [0, 32], sizes = [1, 838], strides = [1, 1]} : vector<1x900xf32> to vector<1x838xf32>
    %9 = vector.extract_strided_slice %1 {offsets = [0, 60], sizes = [1, 838], strides = [1, 1]} : vector<1x900xf32> to vector<1x838xf32>
    %10 = vector.extract_strided_slice %1 {offsets = [0, 61], sizes = [1, 838], strides = [1, 1]} : vector<1x900xf32> to vector<1x838xf32>
    %11 = vector.extract_strided_slice %1 {offsets = [0, 62], sizes = [1, 838], strides = [1, 1]} : vector<1x900xf32> to vector<1x838xf32>
    %cst = arith.constant 1.000000e+00 : f32
    %12 = vector.broadcast %cst : f32 to vector<1x838xf32>
    %13 = tpu.concatenate %3, %4, %5, %6, %7, %8, %9, %10, %11, %12 in 0 : vector<1x838xf32>, vector<1x838xf32>, vector<1x838xf32>, vector<1x838xf32>, vector<1x838xf32>, vector<1x838xf32>, vector<1x838xf32>, vector<1x838xf32>, vector<1x838xf32>, vector<1x838xf32> -> vector<10x838xf32>
    %cst_4 = arith.constant dense<0.000000e+00> : vector<8x838xf32>
    %14 = tpu.matmul %2, %13, %cst_4 {dimension_numbers = #tpu.dot_dimension_numbers<[1], [0], [0], [1], [0, 0, 1, 1], [], []>} : vector<8x10xf32>, vector<10x838xf32>, vector<8x838xf32> -> vector<8x838xf32>
    %cst_5 = arith.constant 0.000000e+00 : f32
    %15 = vector.broadcast %cst_5 : f32 to vector<8x838xf32>
    %16 = arith.maximumf %14, %15 : vector<8x838xf32>
    %c0_6 = arith.constant 0 : index
    %c0_7 = arith.constant 0 : index
    %17 = vector.load %arg3[%c0_6, %c0_7] : memref<16x73xf32, #tpu.memory_space<vmem>>, vector<16x73xf32>
    %18 = vector.extract_strided_slice %16 {offsets = [0, 0], sizes = [8, 776], strides = [1, 1]} : vector<8x838xf32> to vector<8x776xf32>
    %19 = vector.extract_strided_slice %16 {offsets = [0, 1], sizes = [8, 776], strides = [1, 1]} : vector<8x838xf32> to vector<8x776xf32>
    %20 = vector.extract_strided_slice %16 {offsets = [0, 2], sizes = [8, 776], strides = [1, 1]} : vector<8x838xf32> to vector<8x776xf32>
    %21 = vector.extract_strided_slice %16 {offsets = [0, 30], sizes = [8, 776], strides = [1, 1]} : vector<8x838xf32> to vector<8x776xf32>
    %22 = vector.extract_strided_slice %16 {offsets = [0, 31], sizes = [8, 776], strides = [1, 1]} : vector<8x838xf32> to vector<8x776xf32>
    %23 = vector.extract_strided_slice %16 {offsets = [0, 32], sizes = [8, 776], strides = [1, 1]} : vector<8x838xf32> to vector<8x776xf32>
    %24 = vector.extract_strided_slice %16 {offsets = [0, 60], sizes = [8, 776], strides = [1, 1]} : vector<8x838xf32> to vector<8x776xf32>
    %25 = vector.extract_strided_slice %16 {offsets = [0, 61], sizes = [8, 776], strides = [1, 1]} : vector<8x838xf32> to vector<8x776xf32>
    %26 = vector.extract_strided_slice %16 {offsets = [0, 62], sizes = [8, 776], strides = [1, 1]} : vector<8x838xf32> to vector<8x776xf32>
    %cst_8 = arith.constant 1.000000e+00 : f32
    %27 = vector.broadcast %cst_8 : f32 to vector<1x776xf32>
    %28 = tpu.concatenate %18, %19, %20, %21, %22, %23, %24, %25, %26, %27 in 0 : vector<8x776xf32>, vector<8x776xf32>, vector<8x776xf32>, vector<8x776xf32>, vector<8x776xf32>, vector<8x776xf32>, vector<8x776xf32>, vector<8x776xf32>, vector<8x776xf32>, vector<1x776xf32> -> vector<73x776xf32>
    %cst_9 = arith.constant dense<0.000000e+00> : vector<16x776xf32>
    %29 = tpu.matmul %17, %28, %cst_9 {dimension_numbers = #tpu.dot_dimension_numbers<[1], [0], [0], [1], [0, 0, 1, 1], [], []>} : vector<16x73xf32>, vector<73x776xf32>, vector<16x776xf32> -> vector<16x776xf32>
    %cst_10 = arith.constant 0.000000e+00 : f32
    %30 = vector.broadcast %cst_10 : f32 to vector<16x776xf32>
    %31 = arith.maximumf %29, %30 : vector<16x776xf32>
    %c0_11 = arith.constant 0 : index
    %c0_12 = arith.constant 0 : index
    %32 = vector.load %arg4[%c0_11, %c0_12] : memref<745x225xf32, #tpu.memory_space<vmem>>, vector<745x225xf32>
    %33 = vector.extract_strided_slice %31 {offsets = [0, 0], sizes = [16, 745], strides = [1, 1]} : vector<16x776xf32> to vector<16x745xf32>
    %34 = vector.extract_strided_slice %31 {offsets = [0, 1], sizes = [16, 745], strides = [1, 1]} : vector<16x776xf32> to vector<16x745xf32>
    %35 = arith.maximumf %33, %34 : vector<16x745xf32>
    %36 = vector.extract_strided_slice %31 {offsets = [0, 30], sizes = [16, 745], strides = [1, 1]} : vector<16x776xf32> to vector<16x745xf32>
    %37 = vector.extract_strided_slice %31 {offsets = [0, 31], sizes = [16, 745], strides = [1, 1]} : vector<16x776xf32> to vector<16x745xf32>
    %38 = arith.maximumf %36, %37 : vector<16x745xf32>
    %39 = arith.maximumf %35, %38 : vector<16x745xf32>
    %cst_13 = arith.constant dense<0.000000e+00> : vector<16x225xf32>
    %40 = tpu.matmul %39, %32, %cst_13 {dimension_numbers = #tpu.dot_dimension_numbers<[1], [0], [0], [1], [0, 0, 1, 1], [], []>} : vector<16x745xf32>, vector<745x225xf32>, vector<16x225xf32> -> vector<16x225xf32>
    %c0_14 = arith.constant 0 : index
    %c0_15 = arith.constant 0 : index
    %41 = vector.load %arg5[%c0_14, %c0_15] : memref<8x16xf32, #tpu.memory_space<vmem>>, vector<8x16xf32>
    %cst_16 = arith.constant dense<0.000000e+00> : vector<8x225xf32>
    %42 = tpu.matmul %41, %40, %cst_16 {dimension_numbers = #tpu.dot_dimension_numbers<[1], [0], [0], [1], [0, 0, 1, 1], [], []>} : vector<8x16xf32>, vector<16x225xf32>, vector<8x225xf32> -> vector<8x225xf32>
    %cst_17 = arith.constant 0.000000e+00 : f32
    %43 = vector.broadcast %cst_17 : f32 to vector<8x225xf32>
    %44 = arith.maximumf %42, %43 : vector<8x225xf32>
    %c0_18 = arith.constant 0 : index
    %c0_19 = arith.constant 0 : index
    %45 = vector.load %arg6[%c0_18, %c0_19] : memref<16x73xf32, #tpu.memory_space<vmem>>, vector<16x73xf32>
    %46 = vector.extract_strided_slice %44 {offsets = [0, 0], sizes = [8, 193], strides = [1, 1]} : vector<8x225xf32> to vector<8x193xf32>
    %47 = vector.extract_strided_slice %44 {offsets = [0, 1], sizes = [8, 193], strides = [1, 1]} : vector<8x225xf32> to vector<8x193xf32>
    %48 = vector.extract_strided_slice %44 {offsets = [0, 2], sizes = [8, 193], strides = [1, 1]} : vector<8x225xf32> to vector<8x193xf32>
    %49 = vector.extract_strided_slice %44 {offsets = [0, 15], sizes = [8, 193], strides = [1, 1]} : vector<8x225xf32> to vector<8x193xf32>
    %50 = vector.extract_strided_slice %44 {offsets = [0, 16], sizes = [8, 193], strides = [1, 1]} : vector<8x225xf32> to vector<8x193xf32>
    %51 = vector.extract_strided_slice %44 {offsets = [0, 17], sizes = [8, 193], strides = [1, 1]} : vector<8x225xf32> to vector<8x193xf32>
    %52 = vector.extract_strided_slice %44 {offsets = [0, 30], sizes = [8, 193], strides = [1, 1]} : vector<8x225xf32> to vector<8x193xf32>
    %53 = vector.extract_strided_slice %44 {offsets = [0, 31], sizes = [8, 193], strides = [1, 1]} : vector<8x225xf32> to vector<8x193xf32>
    %54 = vector.extract_strided_slice %44 {offsets = [0, 32], sizes = [8, 193], strides = [1, 1]} : vector<8x225xf32> to vector<8x193xf32>
    %cst_20 = arith.constant 1.000000e+00 : f32
    %55 = vector.broadcast %cst_20 : f32 to vector<1x193xf32>
    %56 = tpu.concatenate %46, %47, %48, %49, %50, %51, %52, %53, %54, %55 in 0 : vector<8x193xf32>, vector<8x193xf32>, vector<8x193xf32>, vector<8x193xf32>, vector<8x193xf32>, vector<8x193xf32>, vector<8x193xf32>, vector<8x193xf32>, vector<8x193xf32>, vector<1x193xf32> -> vector<73x193xf32>
    %cst_21 = arith.constant dense<0.000000e+00> : vector<16x193xf32>
    %57 = tpu.matmul %45, %56, %cst_21 {dimension_numbers = #tpu.dot_dimension_numbers<[1], [0], [0], [1], [0, 0, 1, 1], [], []>} : vector<16x73xf32>, vector<73x193xf32>, vector<16x193xf32> -> vector<16x193xf32>
    %cst_22 = arith.constant 0.000000e+00 : f32
    %58 = vector.broadcast %cst_22 : f32 to vector<16x193xf32>
    %59 = arith.maximumf %57, %58 : vector<16x193xf32>
    %c0_23 = arith.constant 0 : index
    %c0_24 = arith.constant 0 : index
    %60 = vector.load %arg7[%c0_23, %c0_24] : memref<8x145xf32, #tpu.memory_space<vmem>>, vector<8x145xf32>
    %61 = vector.extract_strided_slice %59 {offsets = [0, 0], sizes = [16, 161], strides = [1, 1]} : vector<16x193xf32> to vector<16x161xf32>
    %62 = vector.extract_strided_slice %59 {offsets = [0, 1], sizes = [16, 161], strides = [1, 1]} : vector<16x193xf32> to vector<16x161xf32>
    %63 = vector.extract_strided_slice %59 {offsets = [0, 2], sizes = [16, 161], strides = [1, 1]} : vector<16x193xf32> to vector<16x161xf32>
    %64 = vector.extract_strided_slice %59 {offsets = [0, 15], sizes = [16, 161], strides = [1, 1]} : vector<16x193xf32> to vector<16x161xf32>
    %65 = vector.extract_strided_slice %59 {offsets = [0, 16], sizes = [16, 161], strides = [1, 1]} : vector<16x193xf32> to vector<16x161xf32>
    %66 = vector.extract_strided_slice %59 {offsets = [0, 17], sizes = [16, 161], strides = [1, 1]} : vector<16x193xf32> to vector<16x161xf32>
    %67 = vector.extract_strided_slice %59 {offsets = [0, 30], sizes = [16, 161], strides = [1, 1]} : vector<16x193xf32> to vector<16x161xf32>
    %68 = vector.extract_strided_slice %59 {offsets = [0, 31], sizes = [16, 161], strides = [1, 1]} : vector<16x193xf32> to vector<16x161xf32>
    %69 = vector.extract_strided_slice %59 {offsets = [0, 32], sizes = [16, 161], strides = [1, 1]} : vector<16x193xf32> to vector<16x161xf32>
    %cst_25 = arith.constant 1.000000e+00 : f32
    %70 = vector.broadcast %cst_25 : f32 to vector<1x161xf32>
    %71 = tpu.concatenate %61, %62, %63, %64, %65, %66, %67, %68, %69, %70 in 0 : vector<16x161xf32>, vector<16x161xf32>, vector<16x161xf32>, vector<16x161xf32>, vector<16x161xf32>, vector<16x161xf32>, vector<16x161xf32>, vector<16x161xf32>, vector<16x161xf32>, vector<1x161xf32> -> vector<145x161xf32>
    %cst_26 = arith.constant dense<0.000000e+00> : vector<8x161xf32>
    %72 = tpu.matmul %60, %71, %cst_26 {dimension_numbers = #tpu.dot_dimension_numbers<[1], [0], [0], [1], [0, 0, 1, 1], [], []>} : vector<8x145xf32>, vector<145x161xf32>, vector<8x161xf32> -> vector<8x161xf32>
    %cst_27 = arith.constant 0.000000e+00 : f32
    %73 = vector.broadcast %cst_27 : f32 to vector<8x161xf32>
    %74 = arith.maximumf %72, %73 : vector<8x161xf32>
    %c0_28 = arith.constant 0 : index
    %c0_29 = arith.constant 0 : index
    %75 = vector.load %arg8[%c0_28, %c0_29] : memref<129x25xf32, #tpu.memory_space<vmem>>, vector<129x25xf32>
    %76 = vector.extract_strided_slice %74 {offsets = [0, 0], sizes = [8, 129], strides = [1, 1]} : vector<8x161xf32> to vector<8x129xf32>
    %77 = vector.extract_strided_slice %74 {offsets = [0, 1], sizes = [8, 129], strides = [1, 1]} : vector<8x161xf32> to vector<8x129xf32>
    %78 = arith.maximumf %76, %77 : vector<8x129xf32>
    %79 = vector.extract_strided_slice %74 {offsets = [0, 15], sizes = [8, 129], strides = [1, 1]} : vector<8x161xf32> to vector<8x129xf32>
    %80 = vector.extract_strided_slice %74 {offsets = [0, 16], sizes = [8, 129], strides = [1, 1]} : vector<8x161xf32> to vector<8x129xf32>
    %81 = arith.maximumf %79, %80 : vector<8x129xf32>
    %82 = arith.maximumf %78, %81 : vector<8x129xf32>
    %cst_30 = arith.constant dense<0.000000e+00> : vector<8x25xf32>
    %83 = tpu.matmul %82, %75, %cst_30 {dimension_numbers = #tpu.dot_dimension_numbers<[1], [0], [0], [1], [0, 0, 1, 1], [], []>} : vector<8x129xf32>, vector<129x25xf32>, vector<8x25xf32> -> vector<8x25xf32>
    %c0_31 = arith.constant 0 : index
    %c0_32 = arith.constant 0 : index
    %84 = vector.load %arg9[%c0_31, %c0_32] : memref<16x8xf32, #tpu.memory_space<vmem>>, vector<16x8xf32>
    %cst_33 = arith.constant dense<0.000000e+00> : vector<16x25xf32>
    %85 = tpu.matmul %84, %83, %cst_33 {dimension_numbers = #tpu.dot_dimension_numbers<[1], [0], [0], [1], [0, 0, 1, 1], [], []>} : vector<16x8xf32>, vector<8x25xf32>, vector<16x25xf32> -> vector<16x25xf32>
    %cst_34 = arith.constant 0.000000e+00 : f32
    %86 = vector.broadcast %cst_34 : f32 to vector<16x25xf32>
    %87 = arith.maximumf %85, %86 : vector<16x25xf32>
    %c0_35 = arith.constant 0 : index
    %c0_36 = arith.constant 0 : index
    %88 = vector.load %arg10[%c0_35, %c0_36] : memref<16x145xf32, #tpu.memory_space<vmem>>, vector<16x145xf32>
    %89 = vector.extract_strided_slice %87 {offsets = [0, 0], sizes = [16, 13], strides = [1, 1]} : vector<16x25xf32> to vector<16x13xf32>
    %90 = vector.extract_strided_slice %87 {offsets = [0, 1], sizes = [16, 13], strides = [1, 1]} : vector<16x25xf32> to vector<16x13xf32>
    %91 = vector.extract_strided_slice %87 {offsets = [0, 2], sizes = [16, 13], strides = [1, 1]} : vector<16x25xf32> to vector<16x13xf32>
    %92 = vector.extract_strided_slice %87 {offsets = [0, 5], sizes = [16, 13], strides = [1, 1]} : vector<16x25xf32> to vector<16x13xf32>
    %93 = vector.extract_strided_slice %87 {offsets = [0, 6], sizes = [16, 13], strides = [1, 1]} : vector<16x25xf32> to vector<16x13xf32>
    %94 = vector.extract_strided_slice %87 {offsets = [0, 7], sizes = [16, 13], strides = [1, 1]} : vector<16x25xf32> to vector<16x13xf32>
    %95 = vector.extract_strided_slice %87 {offsets = [0, 10], sizes = [16, 13], strides = [1, 1]} : vector<16x25xf32> to vector<16x13xf32>
    %96 = vector.extract_strided_slice %87 {offsets = [0, 11], sizes = [16, 13], strides = [1, 1]} : vector<16x25xf32> to vector<16x13xf32>
    %97 = vector.extract_strided_slice %87 {offsets = [0, 12], sizes = [16, 13], strides = [1, 1]} : vector<16x25xf32> to vector<16x13xf32>
    %cst_37 = arith.constant 1.000000e+00 : f32
    %98 = vector.broadcast %cst_37 : f32 to vector<1x13xf32>
    %99 = tpu.concatenate %89, %90, %91, %92, %93, %94, %95, %96, %97, %98 in 0 : vector<16x13xf32>, vector<16x13xf32>, vector<16x13xf32>, vector<16x13xf32>, vector<16x13xf32>, vector<16x13xf32>, vector<16x13xf32>, vector<16x13xf32>, vector<16x13xf32>, vector<1x13xf32> -> vector<145x13xf32>
    %cst_38 = arith.constant dense<0.000000e+00> : vector<16x13xf32>
    %100 = tpu.matmul %88, %99, %cst_38 {dimension_numbers = #tpu.dot_dimension_numbers<[1], [0], [0], [1], [0, 0, 1, 1], [], []>} : vector<16x145xf32>, vector<145x13xf32>, vector<16x13xf32> -> vector<16x13xf32>
    %cst_39 = arith.constant 0.000000e+00 : f32
    %101 = vector.broadcast %cst_39 : f32 to vector<16x13xf32>
    %102 = arith.maximumf %100, %101 : vector<16x13xf32>
    %c0_40 = arith.constant 0 : index
    %c0_41 = arith.constant 0 : index
    %103 = vector.load %arg11[%c0_40, %c0_41] : memref<10x16xf32, #tpu.memory_space<vmem>>, vector<10x16xf32>
    %cst_42 = arith.constant dense<0.000000e+00> : vector<10x13xf32>
    %104 = tpu.matmul %103, %102, %cst_42 {dimension_numbers = #tpu.dot_dimension_numbers<[1], [0], [0], [1], [0, 0, 1, 1], [], []>} : vector<10x16xf32>, vector<16x13xf32>, vector<10x13xf32> -> vector<10x13xf32>
    %cst_43 = arith.constant 0.000000e+00 : f32
    %105 = vector.broadcast %cst_43 : f32 to vector<10x13xf32>
    %106 = arith.maximumf %104, %105 : vector<10x13xf32>
    %c0_44 = arith.constant 0 : index
    %c0_45 = arith.constant 0 : index
    %107 = vector.load %arg12[%c0_44, %c0_45] : memref<10x90xf32, #tpu.memory_space<vmem>>, vector<10x90xf32>
    %108 = vector.extract_strided_slice %106 {offsets = [0, 0], sizes = [10, 1], strides = [1, 1]} : vector<10x13xf32> to vector<10x1xf32>
    %109 = vector.extract_strided_slice %106 {offsets = [0, 1], sizes = [10, 1], strides = [1, 1]} : vector<10x13xf32> to vector<10x1xf32>
    %110 = vector.extract_strided_slice %106 {offsets = [0, 2], sizes = [10, 1], strides = [1, 1]} : vector<10x13xf32> to vector<10x1xf32>
    %111 = vector.extract_strided_slice %106 {offsets = [0, 5], sizes = [10, 1], strides = [1, 1]} : vector<10x13xf32> to vector<10x1xf32>
    %112 = vector.extract_strided_slice %106 {offsets = [0, 6], sizes = [10, 1], strides = [1, 1]} : vector<10x13xf32> to vector<10x1xf32>
    %113 = vector.extract_strided_slice %106 {offsets = [0, 7], sizes = [10, 1], strides = [1, 1]} : vector<10x13xf32> to vector<10x1xf32>
    %114 = vector.extract_strided_slice %106 {offsets = [0, 10], sizes = [10, 1], strides = [1, 1]} : vector<10x13xf32> to vector<10x1xf32>
    %115 = vector.extract_strided_slice %106 {offsets = [0, 11], sizes = [10, 1], strides = [1, 1]} : vector<10x13xf32> to vector<10x1xf32>
    %116 = vector.extract_strided_slice %106 {offsets = [0, 12], sizes = [10, 1], strides = [1, 1]} : vector<10x13xf32> to vector<10x1xf32>
    %117 = tpu.concatenate %108, %109, %110, %111, %112, %113, %114, %115, %116 in 0 : vector<10x1xf32>, vector<10x1xf32>, vector<10x1xf32>, vector<10x1xf32>, vector<10x1xf32>, vector<10x1xf32>, vector<10x1xf32>, vector<10x1xf32>, vector<10x1xf32> -> vector<90x1xf32>
    %cst_46 = arith.constant dense<0.000000e+00> : vector<10x1xf32>
    %118 = tpu.matmul %107, %117, %cst_46 {dimension_numbers = #tpu.dot_dimension_numbers<[1], [0], [0], [1], [0, 0, 1, 1], [], []>} : vector<10x90xf32>, vector<90x1xf32>, vector<10x1xf32> -> vector<10x1xf32>
    %cst_47 = arith.constant dense<0xFF800000> : vector<1xf32>
    %119 = vector.multi_reduction <maximumf>, %118, %cst_47 [0] : vector<10x1xf32> to vector<1xf32>
    %120 = vector.shape_cast %119 : vector<1xf32> to vector<1x1xf32>
    %121 = vector.broadcast %120 : vector<1x1xf32> to vector<10x1xf32>
    %122 = arith.subf %118, %121 : vector<10x1xf32>
    %123 = math.exp %122 : vector<10x1xf32>
    %cst_48 = arith.constant dense<0.000000e+00> : vector<1xf32>
    %124 = vector.multi_reduction <add>, %123, %cst_48 [0] : vector<10x1xf32> to vector<1xf32>
    %125 = vector.shape_cast %124 : vector<1xf32> to vector<1x1xf32>
    %126 = math.log %125 : vector<1x1xf32>
    %127 = vector.broadcast %126 : vector<1x1xf32> to vector<10x1xf32>
    %128 = arith.subf %122, %127 : vector<10x1xf32>
    %c0_49 = arith.constant 0 : index
    %c0_50 = arith.constant 0 : index
    %c0_51 = arith.constant 0 : index
    %129 = vector.load %arg13[%c0_49, %c0_50, %c0_51] : memref<1x10x1xf32, #tpu.memory_space<vmem>>, vector<1x10x1xf32>
    %130 = vector.shape_cast %129 : vector<1x10x1xf32> to vector<10x1xf32>
    %131 = vector.shape_cast %128 : vector<10x1xf32> to vector<1x10x1xf32>
    tpu.vector_store %arg13[%c0_49, %c0_50, %c0_51], %131 {strides = array<i32>} : memref<1x10x1xf32, #tpu.memory_space<vmem>>, vector<1x10x1xf32>,
    return
  }
  func.func @transform_0(%arg0: i32) -> (i32, i32, i32) {
    %c0_i32 = arith.constant 0 : i32
    %c0_i32_0 = arith.constant 0 : i32
    %c0_i32_1 = arith.constant 0 : i32
    return %arg0, %c0_i32, %c0_i32_0 : i32, i32, i32
  }
  func.func @transform_1(%arg0: i32) -> (i32, i32) {
    %c0_i32 = arith.constant 0 : i32
    %c0_i32_0 = arith.constant 0 : i32
    %c0_i32_1 = arith.constant 0 : i32
    return %c0_i32, %c0_i32_0 : i32, i32
  }
  func.func @transform_2(%arg0: i32) -> (i32, i32) {
    %c0_i32 = arith.constant 0 : i32
    %c0_i32_0 = arith.constant 0 : i32
    %c0_i32_1 = arith.constant 0 : i32
    return %c0_i32, %c0_i32_0 : i32, i32
  }
  func.func @transform_3(%arg0: i32) -> (i32, i32) {
    %c0_i32 = arith.constant 0 : i32
    %c0_i32_0 = arith.constant 0 : i32
    %c0_i32_1 = arith.constant 0 : i32
    return %c0_i32, %c0_i32_0 : i32, i32
  }
  func.func @transform_4(%arg0: i32) -> (i32, i32) {
    %c0_i32 = arith.constant 0 : i32
    %c0_i32_0 = arith.constant 0 : i32
    %c0_i32_1 = arith.constant 0 : i32
    return %c0_i32, %c0_i32_0 : i32, i32
  }
  func.func @transform_5(%arg0: i32) -> (i32, i32) {
    %c0_i32 = arith.constant 0 : i32
    %c0_i32_0 = arith.constant 0 : i32
    %c0_i32_1 = arith.constant 0 : i32
    return %c0_i32, %c0_i32_0 : i32, i32
  }
  func.func @transform_6(%arg0: i32) -> (i32, i32) {
    %c0_i32 = arith.constant 0 : i32
    %c0_i32_0 = arith.constant 0 : i32
    %c0_i32_1 = arith.constant 0 : i32
    return %c0_i32, %c0_i32_0 : i32, i32
  }
  func.func @transform_7(%arg0: i32) -> (i32, i32) {
    %c0_i32 = arith.constant 0 : i32
    %c0_i32_0 = arith.constant 0 : i32
    %c0_i32_1 = arith.constant 0 : i32
    return %c0_i32, %c0_i32_0 : i32, i32
  }
  func.func @transform_8(%arg0: i32) -> (i32, i32) {
    %c0_i32 = arith.constant 0 : i32
    %c0_i32_0 = arith.constant 0 : i32
    %c0_i32_1 = arith.constant 0 : i32
    return %c0_i32, %c0_i32_0 : i32, i32
  }
  func.func @transform_9(%arg0: i32) -> (i32, i32) {
    %c0_i32 = arith.constant 0 : i32
    %c0_i32_0 = arith.constant 0 : i32
    %c0_i32_1 = arith.constant 0 : i32
    return %c0_i32, %c0_i32_0 : i32, i32
  }
  func.func @transform_10(%arg0: i32) -> (i32, i32) {
    %c0_i32 = arith.constant 0 : i32
    %c0_i32_0 = arith.constant 0 : i32
    %c0_i32_1 = arith.constant 0 : i32
    return %c0_i32, %c0_i32_0 : i32, i32
  }
  func.func @transform_11(%arg0: i32) -> (i32, i32) {
    %c0_i32 = arith.constant 0 : i32
    %c0_i32_0 = arith.constant 0 : i32
    %c0_i32_1 = arith.constant 0 : i32
    return %c0_i32, %c0_i32_0 : i32, i32
  }
  func.func @transform_12(%arg0: i32) -> (i32, i32, i32) {
    %c0_i32 = arith.constant 0 : i32
    %c0_i32_0 = arith.constant 0 : i32
    %c0_i32_1 = arith.constant 0 : i32
    return %arg0, %c0_i32, %c0_i32_0 : i32, i32, i32
  }
}

</mosaic_0001>

<bundles_post_ra>
// kernel: network_forward.1
= control target key start
LH: loop header
LB: loop body
LE: loop exit
PB: predicated region body
PF: predicated region fallthrough
CT: control target
= control target key end

     0   :  { %s4526_s21 = smov 0   ;;  %s6172_s0 = inlined_call_operand.vmem [shape: f32[2,1,900], index: 0, kind: input, shape index: {}]   ;;  %s6173_s1 = inlined_call_operand.vmem [shape: f32[8,10], index: 1, kind: input, shape index: {}]   ;;  %s6174_s2 = inlined_call_operand.vmem [shape: f32[16,73], index: 2, kind: input, shape index: {}]   ;;  %s6175_s3 = inlined_call_operand.vmem [shape: f32[745,225], index: 3, kind: input, shape index: {}]   ;;  %s6176_s4 = inlined_call_operand.vmem [shape: f32[8,16], index: 4, kind: input, shape index: {}]   ;;  %s6177_s5 = inlined_call_operand.vmem [shape: f32[16,73], index: 5, kind: input, shape index: {}]   ;;  %s6178_s6 = inlined_call_operand.vmem [shape: f32[8,145], index: 6, kind: input, shape index: {}]   ;;  %s6179_s7 = inlined_call_operand.vmem [shape: f32[129,25], index: 7, kind: input, shape index: {}]   ;;  %s6180_s8 = inlined_call_operand.vmem [shape: f32[16,8], index: 8, kind: input, shape index: {}]   ;;  %s6181_s9 = inlined_call_operand.vmem [shape: f32[16,145], index: 9, kind: input, shape index: {}]   ;;  %s6182_s10 = inlined_call_operand.vmem [shape: f32[10,16], index: 10, kind: input, shape index: {}]   ;;  %s6183_s11 = inlined_call_operand.vmem [shape: f32[10,90], index: 11, kind: input, shape index: {}]   ;;  %s6184_s12 = inlined_call_operand.vmem [shape: f32[2,10,1], index: 12, kind: output, shape index: {}]  }
   0x1 LB: > { %s3298_s22 = sadd.s32 4294967295, %s4437_s21   ;;  %p3302_p0 = scmp.ge.s32.totalorder %s4437_s21, 1  ;;  %s4437_s21 = sphi %s4526_s21, %s22_s21  }
   0x2   : > { %p361_p1 = scmp.lt.s32.totalorder %s4437_s21, 3 }
   0x4   : > { %p362_p2 = pnand %p3302_p0, %p361_p1 }
   0x5   : > { %p402_p3 = scmp.lt.s32.totalorder (!%p362_p2), %s3298_s22, 1  ;;  %v414_v0 = vlaneseq (!%p362_p2)  ;;  %s4439_s27 = smov (!%p362_p2), 126   ;;  %v4447_v21 = vmov (!%p362_p2), 0.0   ;;  %vm6187_vm0 = vcmask (!%p362_p2), 1039360   ;;  %vm491_vm1 = vcmask (!%p362_p2), 1031168  }
   0x6   : > { %365 = sbr.rel (%p362_p2) target bundleno = 4068 (0xfe4), region = 68  ;;  %s4440_s28 = smov (!%p362_p2), 127   ;;  %838 = vmatprep.mubr.f32.mxu1 (!%p362_p2), %v4447_v21  ;;  %1363 = vmatprep.mubr.f32.mxu0 (!%p362_p2), %v4447_v21  ;;  %vm686_vm2 = vcmask (!%p362_p2), 1040384   ;;  %vm694_vm3 = vcmask (!%p362_p2), 1041408   ;;  %vm519_vm4 = vcmask (!%p362_p2), 801792   ;;  %vm702_vm5 = vcmask (!%p362_p2), 1042432  }
   0x7   : > { %v415_v1 = vshrl.u32 (!%p362_p2), %v414_v0, 7  ;;  %s4441_s29 = smov (!%p362_p2), 98   ;;  %s4442_s30 = smov (!%p362_p2), 97   ;;  %vm547_vm6 = vcmask (!%p362_p2), 793600   ;;  %vm6188_vm7 = vcmask (!%p362_p2), 785408   ;;  %vm710_vm8 = vcmask (!%p362_p2), 1043456  }
   0x8   : > { %s4443_s13 = smov (!%p362_p2), 96   ;;  %s4444_s14 = smov (!%p362_p2), 68   ;;  %vm718_vm9 = vcmask (!%p362_p2), 1044480   ;;  %vm6185_vm10 = vcmask (!%p362_p2), 556032   ;;  %vm726_vm11 = vcmask (!%p362_p2), 1045504   ;;  %vm671_vm12 = vcmask (!%p362_p2), 539648  }
   0x9   : > { %v420_v2 = vsub.s32 (!%p362_p2), 1, %v415_v1  ;;  %v424_v3 = vsub.s32 (!%p362_p2), 2, %v415_v1  ;;  %v416_v4 = vsub.s32 (!%p362_p2), 0, %v415_v1  ;;  %v428_v5 = vsub.s32 (!%p362_p2), 3, %v415_v1  ;;  %s4445_s15 = smov (!%p362_p2), 67   ;;  %s4446_s16 = smov (!%p362_p2), 66  }
   0xa   : > { %v591_v6 = vsub.s32 (!%p362_p2), 7, %v415_v1  ;;  %v432_v14 = vsub.s32 (!%p362_p2), 4, %v415_v1  ;;  %v436_v16 = vsub.s32 (!%p362_p2), 5, %v415_v1  ;;  %v440_v20 = vsub.s32 (!%p362_p2), 6, %v415_v1  ;;  %s4453_s17 = smov (!%p362_p2), 113   ;;  %s4454_s18 = smov (!%p362_p2), 111  }
   0xb   : > { %vm640_vm13 = vcmask (!%p362_p2), 547840   ;;  %vm734_vm14 = vcmask (!%p362_p2), 1046528   ;;  %vm6186_vm15 = vmmov (!%p362_p2), 1  }
   0xd   : > { %s6235_s22 = smov (!%p402_p3, %s3298_s22), 1 }
   0xe   : > { %s3303_s23 = sshll.u32 %s6235_s22, 3 }
   0xf   : > { %s405_s26 = scalar_lea.vmem %s6172_s0, %s3303_s23 }
  0x10   : > { %v411_v7 = vld [vmem:[%s405_s26] sm:$0xff] }
  0x11   : > { %v4540_v8 = vrot.slane %v411_v7, %v420_v2  ;;  %v4542_v9 = vrot.slane %v411_v7, %v424_v3  ;;  %v4544_v10 = vrot.slane %v411_v7, %v416_v4  ;;  %v4546_v11 = vrot.slane %v411_v7, %v428_v5 }
  0x12   : > { %v592_v12 = vrot.slane %v411_v7, %v591_v6  ;;  %v4554_v17 = vrot.slane %v411_v7, %v432_v14  ;;  %v4558_v18 = vrot.slane %v411_v7, %v436_v16  ;;  %v4580_v22 = vrot.slane %v411_v7, %v440_v20 }
  0x13   : > { %v3955_v13 = vpack.i.bf16 %v4542_v9, %v4540_v8  ;;  %v3960_v15 = vpack.i.bf16 %v4546_v11, %v4544_v10 }
  0x14   : > { %v3980_v19 = vpack.i.bf16 %v4558_v18, %v4554_v17  ;;  %v4060_v23 = vpack.i.bf16 %v4580_v22, %v4558_v18 }
  0x15   : > { %3956 = vrot.lane.b32.xlu1 %v3955_v13, %s4439_s27  ;;  %3946 = vrot.lane.b32.xlu0 %v3955_v13, %s4440_s28 }
  0x19   : > { %3961 = vrot.lane.b32.xlu1 %v3960_v15, %s4439_s27  ;;  %3951 = vrot.lane.b32.xlu0 %v3960_v15, %s4440_s28 }
  0x1d   : > { %3971 = vrot.lane.b32.xlu1 %v3960_v15, %s4441_s29  ;;  %3966 = vrot.lane.b32.xlu0 %v3955_v13, %s4441_s29 }
  0x21   : > { %3981 = vrot.lane.b32.xlu1 %v3980_v19, %s4440_s28  ;;  %3976 = vrot.lane.b32.xlu0 %v3955_v13, %s4442_s30 }
  0x25   : > { %3991 = vrot.lane.b32.xlu1 %v3955_v13, %s4443_s13  ;;  %3986 = vrot.lane.b32.xlu0 %v3960_v15, %s4442_s30 }
  0x29   : > { %4001 = vrot.lane.b32.xlu1 %v3960_v15, %s4443_s13  ;;  %3996 = vrot.lane.b32.xlu0 %v3980_v19, %s4439_s27 }
  0x2d   : > { %4011 = vrot.lane.b32.xlu1 %v3980_v19, %s4441_s29  ;;  %4006 = vrot.lane.b32.xlu0 %v3955_v13, %s4444_s14 }
  0x31   : > { %4021 = vrot.lane.b32.xlu1 %v3955_v13, %s4445_s15  ;;  %4016 = vrot.lane.b32.xlu0 %v3960_v15, %s4444_s14 }
  0x35   : > { %4031 = vrot.lane.b32.xlu1 %v3980_v19, %s4442_s30  ;;  %4026 = vrot.lane.b32.xlu0 %v3955_v13, %s4446_s16 }
  0x39   : > { %4041 = vrot.lane.b32.xlu1 %v3960_v15, %s4446_s16  ;;  %4036 = vrot.lane.b32.xlu0 %v3960_v15, %s4445_s15 }
  0x3d   : > { %4046 = vrot.lane.b32.xlu1 %v3980_v19, %s4443_s13  ;;  %461 = vrot.lane.b32.xlu0 %v4580_v22, %s4440_s28 }
  0x41   : > { %4051 = vrot.lane.b32.xlu1 %v3980_v19, %s4444_s14  ;;  %489 = vrot.lane.b32.xlu0 %v4580_v22, %s4439_s27 }
  0x45   : > { %4056 = vrot.lane.b32.xlu1 %v3980_v19, %s4445_s15  ;;  %517 = vrot.lane.b32.xlu0 %v4580_v22, %s4441_s29 }
  0x49   : > { %545 = vrot.lane.b32.xlu1 %v4580_v22, %s4442_s30  ;;  %663 = vrot.lane.b32.xlu0 %v4554_v17, %s4446_s16 }
  0x4d   : > { %605 = vrot.lane.b32.xlu1 %v4580_v22, %s4444_s14  ;;  %573 = vrot.lane.b32.xlu0 %v4580_v22, %s4443_s13 }
  0x51   : > { %4061 = vrot.lane.b32.xlu1 %v4060_v23, %s4446_s16  ;;  %636 = vrot.lane.b32.xlu0 %v4580_v22, %s4445_s15 }
  0x55   : > { %638 = vrot.lane.b32.xlu1 %v592_v12, %s4445_s15  ;;  %607 = vrot.lane.b32.xlu0 %v592_v12, %s4444_s14 }
  0x59   : > { %669 = vrot.lane.b32.xlu0 %v592_v12, %s4446_s16 }
  0x87   : > { %v3957_v24 = vpop.permute.xlu1 %3956  ;;  %v4607_v25 = vpop.permute.xlu0 %3946 }
  0x88   : > { %v3949_v34 = vunpack.i.h.bf16 %v4607_v25  ;;  %v3948_v35 = vunpack.i.l.bf16 %v4607_v25  ;;  %v3959_v38 = vunpack.i.h.bf16 %v3957_v24  ;;  %v3958_v39 = vunpack.i.l.bf16 %v3957_v24 }
  0x8a   : > { %v465_v40 = vsel %vm6187_vm0, %v3948_v35, %v3949_v34  ;;  %v493_v44 = vsel %vm491_vm1, %v3958_v39, %v3959_v38 }
  0x8b   : > { %v4609_v26 = vpop.permute.xlu1 %3961  ;;  %v4611_v27 = vpop.permute.xlu0 %3951  ;;  %v688_v45 = vsel %vm686_vm2, %v4540_v8, %v465_v40 }
  0x8c   : > { %v3953_v43 = vunpack.i.l.bf16 %v4611_v27  ;;  %v3964_v48 = vunpack.i.h.bf16 %v4609_v26  ;;  %v3963_v49 = vunpack.i.l.bf16 %v4609_v26  ;;  %v3954_v52 = vunpack.i.h.bf16 %v4611_v27 }
  0x8d   : > { %v696_v59 = vsel %vm694_vm3, %v688_v45, %v493_v44 }
  0x8e   : > { %v464_v58 = vsel %vm6187_vm0, %v3953_v43, %v3948_v35  ;;  %v494_v2 = vsel %vm491_vm1, %v3959_v38, %v3964_v48  ;;  %v492_v3 = vsel %vm491_vm1, %v3963_v49, %v3958_v39  ;;  %v466_v20 = vsel %vm6187_vm0, %v3949_v34, %v3954_v52 }
  0x8f   : > { %v4613_v28 = vpop.permute.xlu1 %3971  ;;  %v4615_v29 = vpop.permute.xlu0 %3966  ;;  %v687_v6 = vsel %vm686_vm2, %v4544_v10, %v464_v58 }
  0x90   : > { %v3969_v46 = vunpack.i.h.bf16 %v4615_v29  ;;  %v3968_v47 = vunpack.i.l.bf16 %v4615_v29  ;;  %v3973_v53 = vunpack.i.l.bf16 %v4613_v28  ;;  %v695_v35 = vsel %vm694_vm3, %v687_v6, %v492_v3 }
  0x92   : > { %v521_v62 = vsel %vm519_vm4, %v3968_v47, %v3969_v46  ;;  %v520_v7 = vsel %vm519_vm4, %v3973_v53, %v3968_v47 }
  0x93   : > { %v4617_v30 = vpop.permute.xlu1 %3981  ;;  %v4619_v31 = vpop.permute.xlu0 %3976  ;;  %v704_v15 = vsel %vm702_vm5, %v696_v59, %v521_v62  ;;  %v703_v34 = vsel %vm702_vm5, %v695_v35, %v520_v7  ;;  %v3974_v62 = vunpack.i.h.bf16 %v4613_v28 }
  0x94   : > { %v3979_v50 = vunpack.i.h.bf16 %v4619_v31  ;;  %v3978_v51 = vunpack.i.l.bf16 %v4619_v31 }
  0x96   : > { %v549_v4 = vsel %vm547_vm6, %v3978_v51, %v3979_v50 }
  0x97   : > { %v4621_v32 = vpop.permute.xlu1 %3991  ;;  %v4623_v33 = vpop.permute.xlu0 %3986  ;;  %v712_v25 = vsel %vm710_vm8, %v704_v15, %v549_v4  ;;  %v3983_v4 = vunpack.i.l.bf16 %v4617_v30 }
  0x98   : > { %v3994_v54 = vunpack.i.h.bf16 %v4621_v32  ;;  %v3993_v55 = vunpack.i.l.bf16 %v4621_v32  ;;  %v3988_v63 = vunpack.i.l.bf16 %v4623_v33 }
  0x9a   : > { %v577_v8 = vsel %vm6188_vm7, %v3993_v55, %v3994_v54  ;;  %v548_v23 = vsel %vm547_vm6, %v3988_v63, %v3978_v51 }
  0x9b   : > { %v4627_v36 = vpop.permute.xlu1 %4001  ;;  %v4629_v37 = vpop.permute.xlu0 %3996  ;;  %v720_v40 = vsel %vm718_vm9, %v712_v25, %v577_v8  ;;  %v711_v51 = vsel %vm710_vm8, %v703_v34, %v548_v23  ;;  %v3984_v8 = vunpack.i.h.bf16 %v4617_v30  ;;  %v522_v30 = vsel %vm519_vm4, %v3969_v46, %v3974_v62 }
  0x9c   : > { %v4003_v5 = vunpack.i.l.bf16 %v4627_v36  ;;  %v4004_v23 = vunpack.i.h.bf16 %v4627_v36  ;;  %v4764_v36 = vld [vmem:[%s6173_s1] sm:$0xff] }
  0x9d   : > { %v468_v25 = vsel %vm6187_vm0, %v3983_v4, %v3984_v8 }
  0x9e   : > { %v576_v38 = vsel %vm6188_vm7, %v4003_v5, %v3993_v55  ;;  %v691_v26 = vsel %vm686_vm2, %v4554_v17, %v468_v25 }
  0x9f   : > { %v4632_v41 = vpop.permute.xlu1 %4011  ;;  %v4634_v42 = vpop.permute.xlu0 %4006  ;;  %v719_v3 = vsel %vm718_vm9, %v711_v51, %v576_v38 }
  0xa0   : > { %v4009_v60 = vunpack.i.h.bf16 %v4634_v42  ;;  %v4008_v61 = vunpack.i.l.bf16 %v4634_v42 }
  0xa2   : > { %v611_v10 = vsel %vm6185_vm10, %v4008_v61, %v4009_v60 }
  0xa3   : > { %v4650_v56 = vpop.permute.xlu1 %4021  ;;  %v4652_v57 = vpop.permute.xlu0 %4016  ;;  %v728_v47 = vsel %vm726_vm11, %v720_v40, %v611_v10 }
  0xa4   : > { %v4024_v0 = vunpack.i.h.bf16 %v4650_v56  ;;  %v4023_v1 = vunpack.i.l.bf16 %v4650_v56  ;;  %v4018_v12 = vunpack.i.l.bf16 %v4652_v57  ;;  %v4019_v35 = vunpack.i.h.bf16 %v4652_v57 }
  0xa6   : > { %v642_v24 = vsel %vm640_vm13, %v4023_v1, %v4024_v0  ;;  %v610_v43 = vsel %vm6185_vm10, %v4018_v12, %v4008_v61  ;;  %vm4717_vm10 = vmpackc.low %vm694_vm3, %vm6186_vm15  ;;  %v689_v61 = vsel %vm686_vm2, %v4542_v9, %v466_v20  ;;  %v3989_v12 = vunpack.i.h.bf16 %v4623_v33 }
  0xa7   : > { %v4679_v13 = vpop.permute.xlu1 %4031  ;;  %v4681_v14 = vpop.permute.xlu0 %4026  ;;  %v736_v58 = vsel %vm734_vm14, %v728_v47, %v642_v24  ;;  %v727_v7 = vsel %vm726_vm11, %v719_v3, %v610_v43  ;;  %vm749_vm15 = vcmask 80896   ;;  %v467_v33 = vsel %vm6187_vm0, %v3954_v52, %v3983_v4 }
  0xa8   : > { %v4029_v16 = vunpack.i.h.bf16 %v4681_v14  ;;  %v4028_v19 = vunpack.i.l.bf16 %v4681_v14  ;;  %v4013_v24 = vunpack.i.l.bf16 %v4632_v41  ;;  %v4033_v29 = vunpack.i.l.bf16 %v4679_v13 }
  0xa9   : > { %v690_v34 = vsel %vm686_vm2, %v4546_v11, %v467_v33  ;;  %vm6191_vm0 = vcmask 556032  }
  0xaa   : > { %v673_v39 = vsel %vm671_vm12, %v4028_v19, %v4029_v16  ;;  %v523_v43 = vsel %vm519_vm4, %v3974_v62, %v4013_v24  ;;  %v612_v11 = vsel %vm6191_vm0, %v4009_v60, %v4019_v35 }
  0xab   : > { %v4705_v44 = vpop.permute.xlu1 %4041  ;;  %v4707_v45 = vpop.permute.xlu0 %4036  ;;  %v743_v49 = vsel %vm686_vm2, %v673_v39, 1.0  ;;  %v3999_v39 = vunpack.i.h.bf16 %v4629_v37 }
  0xac   : > { %v4043_v53 = vunpack.i.l.bf16 %v4705_v44  ;;  %v4038_v55 = vunpack.i.l.bf16 %v4707_v45  ;;  %v3464_v63 = vpack.c.bf16 %v743_v49, %v736_v58  ;;  %v4039_v52 = vunpack.i.h.bf16 %v4707_v45 }
  0xad   : > { %v551_v45 = vsel %vm547_vm6, %v3989_v12, %v4033_v29  ;;  %v4014_v58 = vunpack.i.h.bf16 %v4632_v41 }
  0xae   : > { %v641_v5 = vsel %vm640_vm13, %v4038_v55, %v4023_v1  ;;  %v672_v6 = vsel %vm671_vm12, %v4043_v53, %v4028_v19  ;;  %3466 = vmatprep.subr.msk.bf16.mxu1 %vm4717_vm10, %v3464_v63  ;;  %v3998_v1 = vunpack.i.l.bf16 %v4629_v37  ;;  %v697_v19 = vsel %vm694_vm3, %v689_v61, %v494_v2 }
  0xaf   : > { %v4733_v9 = vpop.permute.xlu1 %4046  ;;  %v4735_v28 = vpop.permute.xlu0 %461  ;;  %v735_v15 = vsel %vm734_vm14, %v727_v7, %v641_v5  ;;  %v742_v10 = vsel %vm686_vm2, %v672_v6, 1.0  ;;  %v550_v2 = vsel %vm547_vm6, %v3979_v50, %v3989_v12  ;;  %v4044_v50 = vunpack.i.h.bf16 %v4705_v44 }
  0xb0   : > { %v3467_v20 = vpack.c.bf16 %v742_v10, %v735_v15  ;;  %v495_v31 = vsel %vm491_vm1, %v3964_v48, %v3998_v1  ;;  %v4048_v57 = vunpack.i.l.bf16 %v4733_v9  ;;  %v705_v38 = vsel %vm702_vm5, %v697_v19, %v522_v30 }
  0xb1   : > { %v578_v48 = vsel %vm6188_vm7, %v3994_v54, %v4004_v23  ;;  %v713_v44 = vsel %vm710_vm8, %v705_v38, %v550_v2  ;;  %v698_v37 = vsel %vm694_vm3, %v690_v34, %v495_v31  ;;  %v674_v32 = vsel %vm671_vm12, %v4029_v16, %v4044_v50 }
  0xb2   : > { %3469 = vmatpush1.bf16.msk.msra.mxu1 %vm4717_vm10, %v3467_v20  ;;  %v643_v54 = vsel %vm640_vm13, %v4024_v0, %v4039_v52  ;;  %v579_v49 = vsel %vm6188_vm7, %v4004_v23, %v4048_v57  ;;  %v721_v60 = vsel %vm718_vm9, %v713_v44, %v578_v48  ;;  %v496_v51 = vsel %vm491_vm1, %v3998_v1, %v3999_v39 }
  0xb3   : > { %v4757_v27 = vpop.permute.xlu1 %4051  ;;  %v4759_v46 = vpop.permute.xlu0 %489  ;;  %v706_v53 = vsel %vm702_vm5, %v698_v37, %v523_v43  ;;  %v729_v14 = vsel %vm726_vm11, %v721_v60, %v612_v11  ;;  %v4034_v0 = vunpack.i.h.bf16 %v4679_v13  ;;  %v744_v61 = vsel %vm686_vm2, %v674_v32, 1.0 }
  0xb4   : > { %v4053_v40 = vunpack.i.l.bf16 %v4757_v27  ;;  %v714_v16 = vsel %vm710_vm8, %v706_v53, %v551_v45  ;;  %v737_v62 = vsel %vm734_vm14, %v729_v14, %v643_v54  ;;  %v4049_v5 = vunpack.i.h.bf16 %v4733_v9 }
  0xb5   : > { %3308 = vmatmul.mubr.msk.f32.vlgmr.msra.gmra.mrb[0].mxu1 %vm749_vm15, %v4764_v36  ;;  %v722_v63 = vsel %vm718_vm9, %v714_v16, %v579_v49  ;;  %v699_v12 = vsel %vm694_vm3, %v691_v26, %v496_v51  ;;  %v497_v13 = vsel %vm491_vm1, %v3999_v39, %v4759_v46  ;;  %v524_v1 = vsel %vm519_vm4, %v4013_v24, %v4014_v58 }
  0xb6   : > { %909 = vmatprep.mubr.f32.mxu1 %v4447_v21  ;;  %v613_v55 = vsel %vm6191_vm0, %v4019_v35, %v4053_v40  ;;  %vm6192_vm0 = vcmask 1039360   ;;  %v4054_v9 = vunpack.i.h.bf16 %v4757_v27  ;;  %v552_v20 = vsel %vm547_vm6, %v4033_v29, %v4034_v0 }
  0xb7   : > { %v4057_v17 = vpop.permute.xlu1 %4056  ;;  %v4791_v47 = vpop.permute.xlu0 %517  ;;  %v469_v41 = vsel %vm6192_vm0, %v3984_v8, %v4735_v28  ;;  %v730_v7 = vsel %vm726_vm11, %v722_v63, %v613_v55  ;;  %v3473_v30 = vpack.c.bf16 %v744_v61, %v737_v62  ;;  %v580_v35 = vsel %vm6188_vm7, %v4048_v57, %v4049_v5 }
  0xb8   : > { %v4058_v42 = vunpack.i.l.bf16 %v4057_v17  ;;  %v525_v8 = vsel %vm519_vm4, %v4014_v58, %v4791_v47  ;;  %v692_v33 = vsel %vm686_vm2, %v4558_v18, %v469_v41  ;;  %v4059_v31 = vunpack.i.h.bf16 %v4057_v17 }
  0xb9   : > { %v700_v24 = vsel %vm694_vm3, %v692_v33, %v497_v13  ;;  %v707_v29 = vsel %vm702_vm5, %v699_v12, %v524_v1  ;;  %vm6193_vm0 = vcmask 556032   ;;  %v693_v39 = vsel %vm686_vm2, %v4580_v22, %v4735_v28 }
  0xba   : > { %v644_v56 = vsel %vm640_vm13, %v4039_v52, %v4058_v42  ;;  %v715_v18 = vsel %vm710_vm8, %v707_v29, %v552_v20  ;;  %v614_v52 = vsel %vm6193_vm0, %v4053_v40, %v4054_v9  ;;  %v645_v44 = vsel %vm640_vm13, %v4058_v42, %v4059_v31 }
  0xbb   : > { %v546_v3 = vpop.permute.xlu1 %545  ;;  %v664_v4 = vpop.permute.xlu0 %663  ;;  %v738_v15 = vsel %vm734_vm14, %v730_v7, %v644_v56  ;;  %v723_v38 = vsel %vm718_vm9, %v715_v18, %v580_v35  ;;  %v701_v22 = vsel %vm694_vm3, %v693_v39, %v4759_v46  ;;  %v4449_v63 = vmov 0.0|0.0  }
  0xbc   : > { %v675_v6 = vsel %vm671_vm12, %v4044_v50, %v664_v4  ;;  %v553_v23 = vsel %vm547_vm6, %v4034_v0, %v546_v3  ;;  %v708_v50 = vsel %vm702_vm5, %v700_v24, %v525_v8  ;;  %v731_v45 = vsel %vm726_vm11, %v723_v38, %v614_v52 }
  0xbd   : > { %v745_v10 = vsel %vm686_vm2, %v675_v6, 1.0  ;;  %v716_v57 = vsel %vm710_vm8, %v708_v50, %v553_v23  ;;  %v709_v28 = vsel %vm702_vm5, %v701_v22, %v4791_v47  ;;  %v739_v49 = vsel %vm734_vm14, %v731_v45, %v645_v44  ;;  %vm6195_vm5 = vmmov %vm6193_vm0 }
  0xbe   : > { %v3470_v19 = vpack.c.bf16 %v745_v10, %v738_v15  ;;  %v717_v55 = vsel %vm710_vm8, %v709_v28, %v546_v3 }
  0xbf   : > { %v606_v25 = vpop.permute.xlu1 %605  ;;  %v574_v2 = vpop.permute.xlu0 %573 }
  0xc0   : > { %v581_v27 = vsel %vm6188_vm7, %v4049_v5, %v574_v2  ;;  %3472 = vmatprep.subr.msk.bf16.mxu1 %vm4717_vm10, %v3470_v19  ;;  %vm6194_vm7 = vmmov %vm6193_vm0  ;;  %v725_v16 = vsel %vm718_vm9, %v717_v55, %v574_v2 }
  0xc1   : > { %3475 = vmatpush1.bf16.msk.msra.mxu1 %vm4717_vm10, %v3473_v30  ;;  %v615_v34 = vsel %vm6194_vm7, %v4054_v9, %v606_v25  ;;  %v724_v26 = vsel %vm718_vm9, %v716_v57, %v581_v27  ;;  %vm4450_vm7 = vmmov 0   ;;  %vm6196_vm9 = vcmask 1039360  }
  0xc2   : > { %v732_v54 = vsel %vm726_vm11, %v724_v26, %v615_v34 }
  0xc3   : > { %v4062_v48 = vpop.permute.xlu1 %4061  ;;  %v637_v43 = vpop.permute.xlu0 %636 }
  0xc4   : > { %v4064_v37 = vunpack.i.h.bf16 %v4062_v48  ;;  %v4063_v11 = vunpack.i.l.bf16 %v4062_v48  ;;  %v646_v40 = vsel %vm640_vm13, %v4059_v31, %v637_v43  ;;  %3311 = vmatmul.mubr.msk.f32.vlgmr.msra.gmra.mrb[2].mxu1 %vm749_vm15, %v4764_v36 }
  0xc5   : > { %980 = vmatprep.mubr.f32.mxu1 %v4447_v21  ;;  %v740_v51 = vsel %vm734_vm14, %v732_v54, %v646_v40 }
  0xc6   : > { %v676_v17 = vsel %vm671_vm12, %v664_v4, %v4063_v11  ;;  %v677_v32 = vsel %vm671_vm12, %v4063_v11, %v4064_v37 }
  0xc7   : > { %v746_v42 = vsel %vm686_vm2, %v676_v17, 1.0  ;;  %v747_v60 = vsel %vm686_vm2, %v677_v32, 1.0  ;;  %v639_v46 = vpop.permute.xlu1 %638  ;;  %v608_v53 = vpop.permute.xlu0 %607 }
  0xc8   : > { %v3479_v58 = vpack.c.bf16 %v746_v42, %v739_v49  ;;  %v3476_v47 = vpack.c.bf16 %v747_v60, %v740_v51  ;;  %v616_v14 = vsel %vm6195_vm5, %v606_v25, %v608_v53  ;;  %v647_v56 = vsel %vm640_vm13, %v637_v43, %v639_v46  ;;  %vm6200_vm5 = vmmov %vm6196_vm9 }
  0xc9   : > { %v733_v0 = vsel %vm726_vm11, %v725_v16, %v616_v14 }
  0xca   : > { %3478 = vmatprep.subr.msk.bf16.mxu1 %vm4717_vm10, %v3476_v47  ;;  %v741_v3 = vsel %vm734_vm14, %v733_v0, %v647_v56  ;;  %vm6197_vm14 = vmmov %vm6196_vm9 }
  0xcb   : > { %v670_v61 = vpop.permute.xlu0 %669  ;;  %3481 = vmatpush1.bf16.msk.msra.mxu1 %vm4717_vm10, %v3479_v58 }
  0xcc   : > { %v678_v62 = vsel %vm671_vm12, %v4064_v37, %v670_v61  ;;  %3482 = vmatprep.subr.bf16.mxu1 %v4449_v63 }
  0xcd   : > { %v748_v4 = vsel %vm686_vm2, %v678_v62, 1.0 }
  0xce   : > { %v3483_v5 = vpack.c.bf16 %v748_v4, %v741_v3  ;;  %3314 = vmatmul.mubr.msk.f32.vlgmr.msra.gmra.mrb[4].mxu1 %vm749_vm15, %v4764_v36 }
  0xcf   : > { %3399 = vmatprep.mubr.msk.f32.mxu1 %vm4450_vm7, %v4447_v21  ;;  %vm6201_vm7 = vmmov %vm6200_vm5 }
  0xd0   : > { %3485 = vmatpush3.bf16.msk.msra.mxu1 %vm4717_vm10, %v3483_v5 }
  0xd3   : > { %3400 = vmatmul.mubr.msk.f32.vlgmr.msra.gmra.mrb[6].mxu1 %vm749_vm15, %v4764_v36  ;;  %vm6198_vm15 = vcmask 785408  }
  0xd4   : > { %1440 = vmatprep.mubr.f32.mxu1 %v4447_v21  ;;  %vm6199_vm0 = vmmov %vm6198_vm15 }
 0x188   : > { %v840_v41 = vpop.f32.mrb[0].mxu1 }
 0x189   : > { %v4887_v6 = vmax.f32 %v840_v41, 0.0  ;;  %v4889_v7 = vpop.f32.mrb[1].mxu1 }
 0x18a   : > { %v1058_v12 = vmax.f32 %v4889_v7, 0.0 }
 0x18b   : > { %1073 = vrot.lane.b32.xlu1 %v4887_v6, %s4440_s28  ;;  %1100 = vrot.lane.b32.xlu0 %v4887_v6, %s4439_s27 }
 0x18f   : > { %1127 = vrot.lane.b32.xlu1 %v4887_v6, %s4441_s29  ;;  %1154 = vrot.lane.b32.xlu0 %v4887_v6, %s4442_s30 }
 0x193   : > { %1181 = vrot.lane.b32.xlu1 %v4887_v6, %s4443_s13 }
 0x197   : > { %v4901_v36 = vpop.f32.mrb[2].mxu1 }
 0x198   : > { %v1059_v13 = vmax.f32 %v4901_v36, 0.0  ;;  %v4905_v15 = vpop.f32.mrb[3].mxu1 }
 0x199   : > { %v1060_v9 = vmax.f32 %v4905_v15, 0.0 }
 0x19a   : > { %v4070_v10 = vpack.i.bf16 %v1059_v13, %v1058_v12 }
 0x19c   : > { %4071 = vrot.lane.b32.xlu0 %v4070_v10, %s4439_s27  ;;  %4066 = vrot.lane.b32.xlu1 %v4070_v10, %s4440_s28 }
 0x1a0   : > { %4076 = vrot.lane.b32.xlu0 %v4070_v10, %s4441_s29  ;;  %1235 = vrot.lane.b32.xlu1 %v4887_v6, %s4445_s15 }
 0x1a1   : > { %v4914_v1 = vpop.f32.mrb[4].mxu1 }
 0x1a2   : > { %v1061_v8 = vmax.f32 %v4914_v1, 0.0  ;;  %v4918_v19 = vpop.f32.mrb[5].mxu1  ;;  %v5086_v1 = vld [vmem:[%s6174_s2 + $0x8] sm:$0xff] }
 0x1a3   : > { %v1062_v25 = vmax.f32 %v4918_v19, 0.0 }
 0x1a4   : > { %4081 = vrot.lane.b32.xlu0 %v4070_v10, %s4442_s30  ;;  %v4110_v20 = vpack.i.bf16 %v1061_v8, %v1060_v9 }
 0x1a6   : > { %4111 = vrot.lane.b32.xlu1 %v4110_v20, %s4439_s27  ;;  %v4926_v30 = vpop.f32.mrb[6].mxu1 }
 0x1a7   : > { %v3401_v33 = vpop.f32.mrb[7].mxu1  ;;  %v1063_v23 = vmax.f32 %v4926_v30, 0.0 }
 0x1a8   : > { %4086 = vrot.lane.b32.xlu0 %v4070_v10, %s4443_s13 }
 0x1a9   : > { %v4145_v2 = vpack.i.bf16 %v1063_v23, %v1062_v25 }
 0x1aa   : > { %4116 = vrot.lane.b32.xlu1 %v4110_v20, %s4441_s29 }
 0x1ac   : > { %4091 = vrot.lane.b32.xlu0 %v4110_v20, %s4440_s28 }
 0x1ae   : > { %4121 = vrot.lane.b32.xlu1 %v4110_v20, %s4442_s30 }
 0x1b0   : > { %4096 = vrot.lane.b32.xlu0 %v4070_v10, %s4444_s14 }
 0x1b2   : > { %4126 = vrot.lane.b32.xlu1 %v4110_v20, %s4443_s13 }
 0x1b4   : > { %4101 = vrot.lane.b32.xlu0 %v4070_v10, %s4445_s15 }
 0x1b6   : > { %4131 = vrot.lane.b32.xlu1 %v4110_v20, %s4444_s14 }
 0x1b8   : > { %1208 = vrot.lane.b32.xlu0 %v4887_v6, %s4444_s14 }
 0x1ba   : > { %4136 = vrot.lane.b32.xlu1 %v4110_v20, %s4445_s15 }
 0x1bc   : > { %4106 = vrot.lane.b32.xlu0 %v4070_v10, %s4446_s16 }
 0x1be   : > { %4141 = vrot.lane.b32.xlu1 %v4110_v20, %s4446_s16 }
 0x1c0   : > { %1262 = vrot.lane.b32.xlu0 %v4887_v6, %s4446_s16 }
 0x1c2   : > { %4146 = vrot.lane.b32.xlu1 %v4145_v2, %s4440_s28 }
 0x1c4   : > { %4151 = vrot.lane.b32.xlu0 %v4145_v2, %s4439_s27 }
 0x1c6   : > { %4156 = vrot.lane.b32.xlu1 %v4145_v2, %s4441_s29 }
 0x1c8   : > { %4161 = vrot.lane.b32.xlu0 %v4145_v2, %s4442_s30 }
 0x1ca   : > { %4166 = vrot.lane.b32.xlu1 %v4145_v2, %s4443_s13 }
 0x1cc   : > { %4171 = vrot.lane.b32.xlu0 %v4145_v2, %s4444_s14  ;;  %s4458_s14 = smov 121  }
 0x1ce   : > { %4176 = vrot.lane.b32.xlu1 %v4145_v2, %s4445_s15  ;;  %s4459_s15 = smov 116  }
 0x1d0   : > { %4181 = vrot.lane.b32.xlu0 %v4145_v2, %s4446_s16  ;;  %s4452_s16 = smov 112  }
 0x1fd   : > { %v1074_v35 = vpop.permute.xlu1 %1073  ;;  %v1101_v24 = vpop.permute.xlu0 %1100 }
 0x201   : > { %v1128_v31 = vpop.permute.xlu1 %1127  ;;  %v1155_v27 = vpop.permute.xlu0 %1154 }
 0x205   : > { %v1182_v29 = vpop.permute.xlu1 %1181 }
 0x20e   : > { %v4072_v50 = vpop.permute.xlu0 %4071  ;;  %v4067_v18 = vpop.permute.xlu1 %4066 }
 0x20f   : > { %v4069_v52 = vunpack.i.h.bf16 %v4067_v18  ;;  %v4068_v57 = vunpack.i.l.bf16 %v4067_v18  ;;  %v4074_v38 = vunpack.i.h.bf16 %v4072_v50  ;;  %v4073_v39 = vunpack.i.l.bf16 %v4072_v50 }
 0x211   : > { %v1088_v34 = vsel %vm6196_vm9, %v4068_v57, %v4069_v52  ;;  %v1087_v26 = vsel %vm6197_vm14, %v1074_v35, %v4068_v57  ;;  %v1115_v45 = vsel %vm491_vm1, %v4073_v39, %v4074_v38  ;;  %v1114_v28 = vsel %vm491_vm1, %v1101_v24, %v4073_v39  ;;  %vm6202_vm9 = vmmov %vm6199_vm0 }
 0x212   : > { %v4077_v48 = vpop.permute.xlu0 %4076  ;;  %v3486_v43 = vpack.c.bf16 %v1088_v34, %v1058_v12  ;;  %v3488_v44 = vpack.c.bf16 %v1087_v26, %v4887_v6  ;;  %v4960_v40 = vpop.permute.xlu1 %1235  ;;  %vm6203_vm14 = vmmov %vm6199_vm0 }
 0x213   : > { %v4079_v37 = vunpack.i.h.bf16 %v4077_v48  ;;  %v4078_v11 = vunpack.i.l.bf16 %v4077_v48 }
 0x214   : > { %3487 = vmatprep.subr.bf16.mxu0 %v3486_v43 }
 0x215   : > { %3489 = vmatpush1.bf16.msra.mxu0 %v3488_v44  ;;  %v1142_v22 = vsel %vm519_vm4, %v4078_v11, %v4079_v37  ;;  %v1141_v17 = vsel %vm519_vm4, %v1128_v31, %v4078_v11 }
 0x216   : > { %v4082_v32 = vpop.permute.xlu0 %4081  ;;  %v3490_v54 = vpack.c.bf16 %v1142_v22, %v1115_v45  ;;  %v3492_v49 = vpack.c.bf16 %v1141_v17, %v1114_v28 }
 0x217   : > { %v4084_v42 = vunpack.i.h.bf16 %v4082_v32  ;;  %v4083_v60 = vunpack.i.l.bf16 %v4082_v32 }
 0x218   : > { %3491 = vmatprep.subr.bf16.mxu0 %v3490_v54  ;;  %v4966_v51 = vpop.permute.xlu1 %4111 }
 0x219   : > { %3493 = vmatpush1.bf16.msra.mxu0 %v3492_v49  ;;  %v1169_v47 = vsel %vm547_vm6, %v4083_v60, %v4084_v42  ;;  %v1168_v14 = vsel %vm547_vm6, %v1155_v27, %v4083_v60  ;;  %v4114_v5 = vunpack.i.h.bf16 %v4966_v51  ;;  %v4113_v41 = vunpack.i.l.bf16 %v4966_v51 }
 0x21a   : > { %v4087_v46 = vpop.permute.xlu0 %4086 }
 0x21b   : > { %v4089_v53 = vunpack.i.h.bf16 %v4087_v46  ;;  %v4088_v55 = vunpack.i.l.bf16 %v4087_v46  ;;  %v1117_v50 = vsel %vm491_vm1, %v4113_v41, %v4114_v5  ;;  %v1116_v18 = vsel %vm491_vm1, %v4074_v38, %v4113_v41 }
 0x21c   : > { %v4968_v58 = vpop.permute.xlu1 %4116 }
 0x21d   : > { %v4119_v16 = vunpack.i.h.bf16 %v4968_v58  ;;  %v4118_v56 = vunpack.i.l.bf16 %v4968_v58  ;;  %v1196_v0 = vsel %vm6198_vm15, %v4088_v55, %v4089_v53  ;;  %v1195_v61 = vsel %vm6199_vm0, %v1182_v29, %v4088_v55 }
 0x21e   : > { %v4976_v62 = vpop.permute.xlu0 %4091  ;;  %v3494_v3 = vpack.c.bf16 %v1196_v0, %v1169_v47  ;;  %v3496_v4 = vpack.c.bf16 %v1195_v61, %v1168_v14  ;;  %vm6204_vm15 = vcmask 556032  }
 0x21f   : > { %v4094_v6 = vunpack.i.h.bf16 %v4976_v62  ;;  %v4093_v7 = vunpack.i.l.bf16 %v4976_v62  ;;  %v1144_v33 = vsel %vm519_vm4, %v4118_v56, %v4119_v16  ;;  %v1143_v31 = vsel %vm519_vm4, %v4079_v37, %v4118_v56  ;;  %vm6205_vm0 = vmmov %vm6204_vm15 }
 0x220   : > { %3495 = vmatprep.subr.bf16.mxu0 %v3494_v3  ;;  %v4982_v12 = vpop.permute.xlu1 %4121  ;;  %v3512_v36 = vpack.c.bf16 %v1144_v33, %v1117_v50  ;;  %v3514_v39 = vpack.c.bf16 %v1143_v31, %v1116_v18  ;;  %v4451_v31 = vmov 1.0  }
 0x221   : > { %v1089_v10 = vsel %vm6200_vm5, %v4069_v52, %v4093_v7  ;;  %3497 = vmatpush1.bf16.msra.mxu0 %v3496_v4  ;;  %v1090_v20 = vsel %vm6201_vm7, %v4093_v7, %v4094_v6  ;;  %v4124_v27 = vunpack.i.h.bf16 %v4982_v12  ;;  %v4123_v29 = vunpack.i.l.bf16 %v4982_v12  ;;  %vm6206_vm5 = vmmov %vm6205_vm0 }
 0x222   : > { %v3510_v2 = vpack.c.bf16 %v1089_v10, %v1059_v13  ;;  %v4097_v35 = vpop.permute.xlu0 %4096  ;;  %v3508_v24 = vpack.c.bf16 %v1090_v20, %v1060_v9  ;;  %vm6207_vm7 = vmmov %vm6205_vm0 }
 0x223   : > { %v4099_v13 = vunpack.i.h.bf16 %v4097_v35  ;;  %v4098_v57 = vunpack.i.l.bf16 %v4097_v35  ;;  %v1171_v38 = vsel %vm547_vm6, %v4123_v29, %v4124_v27  ;;  %v1170_v28 = vsel %vm547_vm6, %v4084_v42, %v4123_v29 }
 0x224   : > { %v5002_v52 = vpop.permute.xlu1 %4126  ;;  %3509 = vmatprep.subr.bf16.mxu1 %v3508_v24 }
 0x225   : > { %v4129_v15 = vunpack.i.h.bf16 %v5002_v52  ;;  %v4128_v9 = vunpack.i.l.bf16 %v5002_v52  ;;  %3511 = vmatpush1.bf16.msra.mxu1 %v3510_v2  ;;  %v1223_v45 = vsel %vm6204_vm15, %v4098_v57, %v4099_v13  ;;  %vm1289_vm15 = vcmask 596992  }
 0x226   : > { %v4102_v34 = vpop.permute.xlu0 %4101  ;;  %3513 = vmatprep.subr.bf16.mxu1 %v3512_v36 }
 0x227   : > { %v4104_v26 = vunpack.i.h.bf16 %v4102_v34  ;;  %v4103_v48 = vunpack.i.l.bf16 %v4102_v34  ;;  %v1198_v43 = vsel %vm6202_vm9, %v4128_v9, %v4129_v15  ;;  %v1197_v44 = vsel %vm6203_vm14, %v4089_v53, %v4128_v9 }
 0x228   : > { %v5013_v37 = vpop.permute.xlu1 %4131  ;;  %v3516_v11 = vpack.c.bf16 %v1198_v43, %v1171_v38  ;;  %v3518_v60 = vpack.c.bf16 %v1197_v44, %v1170_v28  ;;  %vm6208_vm9 = vmmov 1   ;;  %v5064_v43 = vld [vmem:[%s6174_s2] sm:$0xff] }
 0x229   : > { %3515 = vmatpush1.bf16.msra.mxu1 %v3514_v39  ;;  %v1250_v22 = vsel %vm640_vm13, %v4103_v48, %v4104_v26  ;;  %v4134_v17 = vunpack.i.h.bf16 %v5013_v37  ;;  %v4133_v32 = vunpack.i.l.bf16 %v5013_v37  ;;  %v1249_v53 = vsel %vm640_vm13, %v4960_v40, %v4103_v48  ;;  %vm5039_vm14 = vmpackc.low %vm686_vm2, %vm6208_vm9 }
 0x22a   : > { %v1209_v54 = vpop.permute.xlu0 %1208  ;;  %3517 = vmatprep.subr.bf16.mxu1 %v3516_v11  ;;  %v3498_v49 = vpack.c.bf16 %v1250_v22, %v1223_v45 }
 0x22b   : > { %v1222_v46 = vsel %vm6205_vm0, %v1209_v54, %v4098_v57  ;;  %v1224_v56 = vsel %vm6206_vm5, %v4099_v13, %v4133_v32  ;;  %v1225_v61 = vsel %vm6207_vm7, %v4133_v32, %v4134_v17  ;;  %vm6211_vm0 = vcmask 1039360  }
 0x22c   : > { %v3500_v55 = vpack.c.bf16 %v1249_v53, %v1222_v46  ;;  %v5023_v47 = vpop.permute.xlu1 %4136  ;;  %3499 = vmatprep.subr.bf16.mxu0 %v3498_v49  ;;  %vm6212_vm5 = vmmov %vm6211_vm0  ;;  %vm6213_vm7 = vcmask 785408  }
 0x22d   : > { %v4139_v14 = vunpack.i.h.bf16 %v5023_v47  ;;  %v4138_v42 = vunpack.i.l.bf16 %v5023_v47  ;;  %3519 = vmatpush1.bf16.msra.mxu1 %v3518_v60  ;;  %vm6214_vm9 = vmmov %vm6213_vm7 }
 0x22e   : > { %v4107_v0 = vpop.permute.xlu0 %4106  ;;  %3501 = vmatpush1.bf16.msra.mxu0 %v3500_v55 }
 0x22f   : > { %v1251_v3 = vsel %vm640_vm13, %v4104_v26, %v4138_v42  ;;  %v4109_v40 = vunpack.i.h.bf16 %v4107_v0  ;;  %v4108_v4 = vunpack.i.l.bf16 %v4107_v0  ;;  %v1252_v41 = vsel %vm640_vm13, %v4138_v42, %v4139_v14 }
 0x230   : > { %v3522_v7 = vpack.c.bf16 %v1251_v3, %v1224_v56  ;;  %v5035_v10 = vpop.permute.xlu1 %4141  ;;  %v3520_v20 = vpack.c.bf16 %v1252_v41, %v1225_v61 }
 0x231   : > { %v1277_v2 = vsel %vm671_vm12, %v4108_v4, %v4109_v40  ;;  %v4144_v35 = vunpack.i.h.bf16 %v5035_v10  ;;  %v4143_v24 = vunpack.i.l.bf16 %v5035_v10 }
 0x232   : > { %v3502_v29 = vpack.c.bf16 %v4451_v31, %v1277_v2  ;;  %v1263_v50 = vpop.permute.xlu0 %1262  ;;  %3521 = vmatprep.subr.bf16.mxu1 %v3520_v20 }
 0x233   : > { %v1278_v18 = vsel %vm671_vm12, %v4109_v40, %v4143_v24  ;;  %v1279_v36 = vsel %vm671_vm12, %v4143_v24, %v4144_v35  ;;  %v1276_v13 = vsel %vm671_vm12, %v1263_v50, %v4108_v4  ;;  %3523 = vmatpush1.bf16.msra.mxu1 %v3522_v7 }
 0x234   : > { %v3524_v57 = vpack.c.bf16 %v4451_v31, %v1279_v36  ;;  %v3527_v9 = vpack.c.bf16 %v4451_v31, %v1278_v18  ;;  %v3505_v39 = vpack.c.bf16 %v4451_v31, %v1276_v13  ;;  %3504 = vmatprep.subr.msk.bf16.mxu0 %vm5039_vm14, %v3502_v29  ;;  %v4147_v34 = vpop.permute.xlu1 %4146 }
 0x235   : > { %v4149_v26 = vunpack.i.h.bf16 %v4147_v34  ;;  %v4148_v48 = vunpack.i.l.bf16 %v4147_v34 }
 0x236   : > { %3507 = vmatpush1.bf16.msk.msra.mxu0 %vm5039_vm14, %v3505_v39  ;;  %3526 = vmatprep.subr.msk.bf16.mxu1 %vm5039_vm14, %v3524_v57  ;;  %v4152_v38 = vpop.permute.xlu0 %4151 }
 0x237   : > { %v3552_v44 = vpack.c.bf16 %v4149_v26, %v1063_v23  ;;  %v1091_v11 = vsel %vm6211_vm0, %v4094_v6, %v4148_v48  ;;  %v4153_v45 = vunpack.i.l.bf16 %v4152_v38  ;;  %3529 = vmatpush1.bf16.msk.msra.mxu1 %vm5039_vm14, %v3527_v9  ;;  %v4154_v28 = vunpack.i.h.bf16 %v4152_v38 }
 0x238   : > { %v3532_v22 = vpack.c.bf16 %v1091_v11, %v1061_v8  ;;  %v4157_v32 = vpop.permute.xlu1 %4156  ;;  %v1092_v54 = vsel %vm6212_vm5, %v4148_v48, %v4149_v26  ;;  %vm6215_vm0 = vcmask 556032  }
 0x239   : > { %v4159_v49 = vunpack.i.h.bf16 %v4157_v32  ;;  %v4158_v60 = vunpack.i.l.bf16 %v4157_v32  ;;  %3319 = vmatmul.mubr.msk.f32.vlgmr.msra.gmra.mrb[0].mxu0 %vm1289_vm15, %v5064_v43  ;;  %3553 = vmatprep.subr.bf16.mxu1 %v3552_v44  ;;  %v3530_v30 = vpack.c.bf16 %v1092_v54, %v1062_v25  ;;  %v1118_v8 = vsel %vm491_vm1, %v4114_v5, %v4153_v45  ;;  %vm6216_vm5 = vmmov %vm6215_vm0 }
 0x23a   : > { %3323 = vmatmul.mubr.msk.f32.vlgmr.msra.gmra.mrb[8].mxu1 %vm1289_vm15, %v5064_v43  ;;  %v4162_v23 = vpop.permute.xlu0 %4161  ;;  %1369 = vmatprep.mubr.f32.mxu0 %v4447_v21  ;;  %v1119_v55 = vsel %vm491_vm1, %v4153_v45, %v4154_v28 }
 0x23b   : > { %v3556_v62 = vpack.c.bf16 %v4159_v49, %v4154_v28  ;;  %v1145_v19 = vsel %vm519_vm4, %v4119_v16, %v4158_v60  ;;  %v4163_v25 = vunpack.i.l.bf16 %v4162_v23  ;;  %3531 = vmatprep.subr.bf16.mxu0 %v3530_v30  ;;  %3555 = vmatpush3.bf16.msra.mxu1 %v3552_v44  ;;  %v4164_v46 = vunpack.i.h.bf16 %v4162_v23 }
 0x23c   : > { %v3536_v6 = vpack.c.bf16 %v1145_v19, %v1118_v8  ;;  %3533 = vmatpush1.bf16.msra.mxu0 %v3532_v22  ;;  %v4167_v53 = vpop.permute.xlu1 %4166  ;;  %1446 = vmatprep.mubr.f32.mxu1 %v4447_v21  ;;  %v1146_v51 = vsel %vm519_vm4, %v4158_v60, %v4159_v49  ;;  %v1620_v19 = vld [vmem:[%s6175_s3 + $0x8] sm:$0xff] }
 0x23d   : > { %v4169_v42 = vunpack.i.h.bf16 %v4167_v53  ;;  %v4168_v5 = vunpack.i.l.bf16 %v4167_v53  ;;  %3320 = vmatmul.mubr.msk.f32.gmra.mrb[2].mxu0 %vm1289_vm15, %v5086_v1  ;;  %3557 = vmatprep.subr.bf16.mxu1 %v3556_v62  ;;  %v3534_v58 = vpack.c.bf16 %v1146_v51, %v1119_v55  ;;  %v1172_v56 = vsel %vm547_vm6, %v4124_v27, %v4163_v25  ;;  %v1621_v51 = vld [vmem:[%s6175_s3 + $0x10] sm:$0xff] }
 0x23e   : > { %3324 = vmatmul.mubr.msk.f32.gmra.mrb[10].mxu1 %vm1289_vm15, %v5086_v1  ;;  %v4172_v16 = vpop.permute.xlu0 %4171  ;;  %1517 = vmatprep.mubr.f32.mxu0 %v4447_v21  ;;  %v1173_v7 = vsel %vm547_vm6, %v4163_v25, %v4164_v46  ;;  %v1622_v25 = vld [vmem:[%s6175_s3 + $0x18] sm:$0xff] }
 0x23f   : > { %v3560_v0 = vpack.c.bf16 %v4169_v42, %v4164_v46  ;;  %v1199_v61 = vsel %vm6213_vm7, %v4129_v15, %v4168_v5  ;;  %v4173_v3 = vunpack.i.l.bf16 %v4172_v16  ;;  %3535 = vmatprep.subr.bf16.mxu0 %v3534_v58  ;;  %3559 = vmatpush3.bf16.msra.mxu1 %v3556_v62  ;;  %v4174_v4 = vunpack.i.h.bf16 %v4172_v16 }
 0x240   : > { %v3540_v40 = vpack.c.bf16 %v1199_v61, %v1172_v56  ;;  %3537 = vmatpush1.bf16.msra.mxu0 %v3536_v6  ;;  %v4177_v41 = vpop.permute.xlu1 %4176  ;;  %v1200_v20 = vsel %vm6214_vm9, %v4168_v5, %v4169_v42  ;;  %3422 = vmatprep.mubr.msk.f32.mxu1 %vm1289_vm15, %v5064_v43  ;;  %v1619_v6 = vld [vmem:[%s6175_s3] sm:$0xff]  ;;  %v3574_v55 = vpack.c.bf16 %v1622_v25, %v1620_v19  ;;  %v1624_v42 = vld [vmem:[%s6175_s3 + $0x28] sm:$0xff]  ;;  %v1626_v5 = vld [vmem:[%s6175_s3 + $0x38] sm:$0xff] }
 0x241   : > { %v4179_v12 = vunpack.i.h.bf16 %v4177_v41  ;;  %v4178_v27 = vunpack.i.l.bf16 %v4177_v41  ;;  %3561 = vmatprep.subr.bf16.mxu1 %v3560_v0  ;;  %v3538_v52 = vpack.c.bf16 %v1200_v20, %v1173_v7  ;;  %v1226_v15 = vsel %vm6215_vm0, %v4134_v17, %v4173_v3  ;;  %v1625_v61 = vld [vmem:[%s6175_s3 + $0x30] sm:$0xff]  ;;  %v1627_v20 = vld [vmem:[%s6175_s3 + $0x40] sm:$0xff] }
 0x242   : > { %v4182_v2 = vpop.permute.xlu0 %4181  ;;  %v1227_v13 = vsel %vm6216_vm5, %v4173_v3, %v4174_v4  ;;  %v3576_v16 = vpack.c.bf16 %v1621_v51, %v1619_v6  ;;  %v3578_v56 = vpack.c.bf16 %v1626_v5, %v1624_v42  ;;  %v1628_v3 = vld [vmem:[%s6175_s3 + $0x48] sm:$0xff]  ;;  %v1643_v6 = vld [vmem:[%s6175_s3 + $0xc0] sm:$0xff]  ;;  %v1650_v42 = vld [vmem:[%s6175_s3 + $0xf8] sm:$0xff] }
 0x243   : > { %v3564_v24 = vpack.c.bf16 %v4179_v12, %v4174_v4  ;;  %v1253_v29 = vsel %vm640_vm13, %v4139_v14, %v4178_v27  ;;  %v4184_v50 = vunpack.i.h.bf16 %v4182_v2  ;;  %v4183_v18 = vunpack.i.l.bf16 %v4182_v2  ;;  %3539 = vmatprep.subr.bf16.mxu0 %v3538_v52  ;;  %3563 = vmatpush3.bf16.msra.mxu1 %v3560_v0  ;;  %v1623_v0 = vld [vmem:[%s6175_s3 + $0x20] sm:$0xff]  ;;  %v1632_v52 = vld [vmem:[%s6175_s3 + $0x68] sm:$0xff] }
 0x244   : > { %v3544_v36 = vpack.c.bf16 %v1253_v29, %v1226_v15  ;;  %3541 = vmatpush1.bf16.msra.mxu0 %v3540_v40  ;;  %v1254_v57 = vsel %vm640_vm13, %v4178_v27, %v4179_v12  ;;  %v1630_v40 = vld [vmem:[%s6175_s3 + $0x58] sm:$0xff]  ;;  %v3580_v4 = vpack.c.bf16 %v1625_v61, %v1623_v0  ;;  %v1629_v12 = vld [vmem:[%s6175_s3 + $0x50] sm:$0xff]  ;;  %v1631_v29 = vld [vmem:[%s6175_s3 + $0x60] sm:$0xff] }
 0x245   : > { %v3568_v37 = vpack.c.bf16 %v4451_v31, %v4184_v50  ;;  %v1281_v17 = vsel %vm671_vm12, %v4183_v18, %v4184_v50  ;;  %3565 = vmatprep.subr.bf16.mxu1 %v3564_v24  ;;  %v3542_v9 = vpack.c.bf16 %v1254_v57, %v1227_v13  ;;  %v1280_v14 = vsel %vm671_vm12, %v4144_v35, %v4183_v18  ;;  %v1634_v15 = vld [vmem:[%s6175_s3 + $0x78] sm:$0xff]  ;;  %v1633_v50 = vld [vmem:[%s6175_s3 + $0x70] sm:$0xff]  ;;  %v1636_v18 = vld [vmem:[%s6175_s3 + $0x88] sm:$0xff] }
 0x246   : > { %v3546_v47 = vpack.c.bf16 %v4451_v31, %v1281_v17  ;;  %v3549_v39 = vpack.c.bf16 %v4451_v31, %v1280_v14  ;;  %v3582_v7 = vpack.c.bf16 %v1630_v40, %v1628_v3  ;;  %v3584_v2 = vpack.c.bf16 %v1629_v12, %v1627_v20  ;;  %v1637_v17 = vld [vmem:[%s6175_s3 + $0x90] sm:$0xff]  ;;  %v1648_v51 = vld [vmem:[%s6175_s3 + $0xe8] sm:$0xff]  ;;  %v1654_v3 = vld [vmem:[%s6175_s3 + $0x118] sm:$0xff] }
 0x247   : > { %3543 = vmatprep.subr.bf16.mxu0 %v3542_v9  ;;  %3567 = vmatpush3.bf16.msra.mxu1 %v3564_v24  ;;  %v3586_v24 = vpack.c.bf16 %v1634_v15, %v1632_v52  ;;  %v3588_v13 = vpack.c.bf16 %v1633_v50, %v1631_v29  ;;  %v1640_v9 = vld [vmem:[%s6175_s3 + $0xa8] sm:$0xff]  ;;  %v1649_v0 = vld [vmem:[%s6175_s3 + $0xf0] sm:$0xff]  ;;  %v1658_v52 = vld [vmem:[%s6175_s3 + $0x138] sm:$0xff]  ;;  %vm6217_vm12 = vcmask 1039360  }
 0x248   : > { %3545 = vmatpush1.bf16.msra.mxu0 %v3544_v36  ;;  %3570 = vmatprep.subr.msk.bf16.mxu1 %vm5039_vm14, %v3568_v37  ;;  %v1638_v36 = vld [vmem:[%s6175_s3 + $0x98] sm:$0xff]  ;;  %v1652_v61 = vld [vmem:[%s6175_s3 + $0x108] sm:$0xff]  ;;  %v1653_v20 = vld [vmem:[%s6175_s3 + $0x110] sm:$0xff] }
 0x249   : > { %3548 = vmatprep.subr.msk.bf16.mxu0 %vm5039_vm14, %v3546_v47  ;;  %v3590_v57 = vpack.c.bf16 %v1638_v36, %v1636_v18  ;;  %v1642_v47 = vld [vmem:[%s6175_s3 + $0xb8] sm:$0xff]  ;;  %v1656_v12 = vld [vmem:[%s6175_s3 + $0x128] sm:$0xff]  ;;  %v1657_v29 = vld [vmem:[%s6175_s3 + $0x130] sm:$0xff] }
 0x24a   : > { %v1660_v50 = vld [vmem:[%s6175_s3 + $0x148] sm:$0xff]  ;;  %v1662_v18 = vld [vmem:[%s6175_s3 + $0x158] sm:$0xff]  ;;  %vm6218_vm13 = vmmov %vm6217_vm12 }
 0x24b   : > { %3573 = vmatpush3.bf16.msk.msra.mxu1 %vm5039_vm14, %v3568_v37  ;;  %v1635_v37 = vld [vmem:[%s6175_s3 + $0x80] sm:$0xff]  ;;  %vm6219_vm7 = vmmov %vm6217_vm12 }
 0x24c   : > { %3551 = vmatpush1.bf16.msk.msra.mxu0 %vm5039_vm14, %v3549_v39  ;;  %v3592_v14 = vpack.c.bf16 %v1637_v17, %v1635_v37  ;;  %v3594_v39 = vpack.c.bf16 %v1642_v47, %v1640_v9  ;;  %v1661_v37 = vld [vmem:[%s6175_s3 + $0x150] sm:$0xff]  ;;  %v1664_v17 = vld [vmem:[%s6175_s3 + $0x168] sm:$0xff]  ;;  %v1666_v9 = vld [vmem:[%s6175_s3 + $0x178] sm:$0xff] }
 0x24d   : > { %3575 = vmatprep.subr.bf16.mxu0 %v3574_v55  ;;  %v1645_v55 = vld [vmem:[%s6175_s3 + $0xd0] sm:$0xff]  ;;  %vm6220_vm9 = vmmov %vm6219_vm7 }
 0x24e   : > { %3423 = vmatmul.mubr.msk.f32.vlgmr.msra.gmra.mrb[12].mxu1 %vm1289_vm15, %v5086_v1  ;;  %v3600_v5 = vpack.c.bf16 %v1645_v55, %v1643_v6  ;;  %v1669_v6 = vld [vmem:[%s6175_s3 + $0x190] sm:$0xff]  ;;  %v1672_v55 = vld [vmem:[%s6175_s3 + $0x1a8] sm:$0xff]  ;;  %vm6221_vm0 = vmmov %vm6219_vm7 }
 0x24f   : > { %3327 = vmatmul.mubr.msk.f32.vlgmr.msra.gmra.mrb[4].mxu0 %vm1289_vm15, %v5064_v43  ;;  %2284 = vmatprep.mubr.f32.mxu1 %v4447_v21  ;;  %vm6222_vm5 = vmmov %vm6221_vm0 }
 0x250   : > { %1523 = vmatprep.mubr.f32.mxu0 %v4447_v21  ;;  %3577 = vmatpush1.bf16.msra.mxu0 %v3576_v16  ;;  %v3602_v16 = vpack.c.bf16 %v1650_v42, %v1648_v51  ;;  %v1674_v51 = vld [vmem:[%s6175_s3 + $0x1b8] sm:$0xff] }
 0x251   : > { %3579 = vmatprep.subr.bf16.mxu0 %v3578_v56  ;;  %v1647_v56 = vld [vmem:[%s6175_s3 + $0xe0] sm:$0xff] }
 0x252   : > { %v3604_v40 = vpack.c.bf16 %v1649_v0, %v1647_v56  ;;  %v1673_v56 = vld [vmem:[%s6175_s3 + $0x1b0] sm:$0xff] }
 0x253   : > { %3328 = vmatmul.mubr.msk.f32.gmra.mrb[6].mxu0 %vm1289_vm15, %v5086_v1 }
 0x254   : > { %3581 = vmatpush1.bf16.msra.mxu0 %v3580_v4  ;;  %v3606_v4 = vpack.c.bf16 %v1654_v3, %v1652_v61  ;;  %v1676_v61 = vld [vmem:[%s6175_s3 + $0x1c8] sm:$0xff]  ;;  %v1678_v3 = vld [vmem:[%s6175_s3 + $0x1d8] sm:$0xff] }
 0x255   : > { %3583 = vmatprep.subr.bf16.mxu0 %v3582_v7  ;;  %v1651_v7 = vld [vmem:[%s6175_s3 + $0x100] sm:$0xff] }
 0x256   : > { %v3608_v15 = vpack.c.bf16 %v1653_v20, %v1651_v7  ;;  %v1677_v7 = vld [vmem:[%s6175_s3 + $0x1d0] sm:$0xff] }
 0x258   : > { %3585 = vmatpush1.bf16.msra.mxu0 %v3584_v2  ;;  %v3610_v2 = vpack.c.bf16 %v1658_v52, %v1656_v12  ;;  %v1680_v12 = vld [vmem:[%s6175_s3 + $0x1e8] sm:$0xff]  ;;  %v1682_v52 = vld [vmem:[%s6175_s3 + $0x1f8] sm:$0xff] }
 0x259   : > { %3587 = vmatprep.subr.bf16.mxu0 %v3586_v24  ;;  %v1655_v24 = vld [vmem:[%s6175_s3 + $0x120] sm:$0xff] }
 0x25a   : > { %v3612_v36 = vpack.c.bf16 %v1657_v29, %v1655_v24  ;;  %v1681_v24 = vld [vmem:[%s6175_s3 + $0x1f0] sm:$0xff] }
 0x25c   : > { %3589 = vmatpush1.bf16.msra.mxu0 %v3588_v13  ;;  %v3614_v13 = vpack.c.bf16 %v1662_v18, %v1660_v50 }
 0x25d   : > { %3591 = vmatprep.subr.bf16.mxu0 %v3590_v57  ;;  %v1659_v57 = vld [vmem:[%s6175_s3 + $0x140] sm:$0xff] }
 0x25e   : > { %v3616_v47 = vpack.c.bf16 %v1661_v37, %v1659_v57 }
 0x260   : > { %3593 = vmatpush1.bf16.msra.mxu0 %v3592_v14  ;;  %v3618_v14 = vpack.c.bf16 %v1666_v9, %v1664_v17 }
 0x261   : > { %3595 = vmatprep.subr.bf16.mxu0 %v3594_v39  ;;  %v1663_v39 = vld [vmem:[%s6175_s3 + $0x160] sm:$0xff] }
 0x30c   : > { %v5143_v10 = vpop.f32.mrb[0].mxu0 }
 0x30d   : > { %v1605_v35 = vmax.f32 %v5143_v10, 0.0  ;;  %v5146_v34 = vpop.f32.mrb[1].mxu0  ;;  %v5148_v26 = vpop.f32.mrb[8].mxu1 }
 0x30e   : > { %v1606_v48 = vmax.f32 %v5146_v34, 0.0  ;;  %v1607_v38 = vmax.f32 %v5148_v26, 0.0  ;;  %v5152_v43 = vpop.f32.mrb[9].mxu1 }
 0x30f   : > { %v1608_v44 = vmax.f32 %v5152_v43, 0.0 }
 0x310   : > { %v4185_v11 = vpack.i.bf16 %v1607_v38, %v1606_v48  ;;  %v5159_v45 = vpop.f32.mrb[2].mxu0 }
 0x311   : > { %v4190_v22 = vpack.i.bf16 %v1605_v35, %v1608_v44  ;;  %v1612_v28 = vmax.f32 %v5159_v45, 0.0  ;;  %v5166_v32 = vpop.f32.mrb[3].mxu0  ;;  %v5168_v54 = vpop.f32.mrb[10].mxu1 }
 0x312   : > { %v1613_v49 = vmax.f32 %v5166_v32, 0.0  ;;  %v1614_v60 = vmax.f32 %v5168_v54, 0.0  ;;  %4186 = vrot.lane.b32.xlu1 %v4185_v11, %s4440_s28  ;;  %v5173_v30 = vpop.f32.mrb[11].mxu1  ;;  %v1639_v11 = vld [vmem:[%s6175_s3 + $0xa0] sm:$0xff]  ;;  %v1686_v32 = vld [vmem:[%s6175_s3 + $0x218] sm:$0xff] }
 0x313   : > { %v1615_v23 = vmax.f32 %v5173_v30, 0.0  ;;  %4191 = vrot.lane.b32.xlu0 %v4190_v22, %s4440_s28  ;;  %v1641_v22 = vld [vmem:[%s6175_s3 + $0xb0] sm:$0xff] }
 0x314   : > { %v4195_v1 = vpack.i.bf16 %v1614_v60, %v1613_v49  ;;  %v3596_v19 = vpack.c.bf16 %v1641_v22, %v1639_v11  ;;  %v1665_v11 = vld [vmem:[%s6175_s3 + $0x170] sm:$0xff]  ;;  %v1668_v22 = vld [vmem:[%s6175_s3 + $0x188] sm:$0xff] }
 0x315   : > { %v4200_v8 = vpack.i.bf16 %v1612_v28, %v1615_v23  ;;  %v1697_v30 = vld [vmem:[%s6175_s3 + $0x270] sm:$0xff] }
 0x316   : > { %4196 = vrot.lane.b32.xlu1 %v4195_v1, %s4440_s28  ;;  %v1644_v1 = vld [vmem:[%s6175_s3 + $0xc8] sm:$0xff]  ;;  %3597 = vmatpush1.bf16.msra.mxu0 %v3596_v19 }
 0x317   : > { %4201 = vrot.lane.b32.xlu0 %v4200_v8, %s4440_s28  ;;  %v1646_v8 = vld [vmem:[%s6175_s3 + $0xd8] sm:$0xff] }
 0x318   : > { %v3598_v25 = vpack.c.bf16 %v1646_v8, %v1644_v1  ;;  %v1670_v1 = vld [vmem:[%s6175_s3 + $0x198] sm:$0xff]  ;;  %v3620_v8 = vpack.c.bf16 %v1665_v11, %v1663_v39 }
 0x319   : > { %v3622_v19 = vpack.c.bf16 %v1670_v1, %v1668_v22 }
 0x31a   : > { %3599 = vmatprep.subr.bf16.mxu0 %v3598_v25  ;;  %v1667_v25 = vld [vmem:[%s6175_s3 + $0x180] sm:$0xff] }
 0x31b   : > { %3601 = vmatpush1.bf16.msra.mxu0 %v3600_v5  ;;  %v3624_v42 = vpack.c.bf16 %v1669_v6, %v1667_v25  ;;  %v3626_v5 = vpack.c.bf16 %v1674_v51, %v1672_v55  ;;  %v1684_v51 = vld [vmem:[%s6175_s3 + $0x208] sm:$0xff] }
 0x31c   : > { %3603 = vmatprep.subr.bf16.mxu0 %v3602_v16  ;;  %v1671_v16 = vld [vmem:[%s6175_s3 + $0x1a0] sm:$0xff]  ;;  %v3638_v54 = vpack.c.bf16 %v1686_v32, %v1684_v51 }
 0x31d   : > { %v3628_v0 = vpack.c.bf16 %v1673_v56, %v1671_v16 }
 0x31f   : > { %3605 = vmatpush1.bf16.msra.mxu0 %v3604_v40  ;;  %v3630_v40 = vpack.c.bf16 %v1678_v3, %v1676_v61  ;;  %v1685_v61 = vld [vmem:[%s6175_s3 + $0x210] sm:$0xff] }
 0x320   : > { %3607 = vmatprep.subr.bf16.mxu0 %v3606_v4  ;;  %v1675_v4 = vld [vmem:[%s6175_s3 + $0x1c0] sm:$0xff] }
 0x321   : > { %v5187_v62 = vpop.f32.mrb[12].mxu1  ;;  %v3632_v20 = vpack.c.bf16 %v1677_v7, %v1675_v4  ;;  %v1690_v4 = vld [vmem:[%s6175_s3 + $0x238] sm:$0xff] }
 0x322   : > { %v5198_v46 = vpop.f32.mrb[4].mxu0  ;;  %v5200_v53 = vpop.f32.mrb[13].mxu1 }
 0x323   : > { %v5211_v58 = vpop.f32.mrb[5].mxu0  ;;  %3609 = vmatpush1.bf16.msra.mxu0 %v3608_v15  ;;  %v3634_v15 = vpack.c.bf16 %v1682_v52, %v1680_v12  ;;  %v1609_v6 = vmax.f32 %v5198_v46, 0.0  ;;  %v1611_v55 = vmax.f32 %v5200_v53, 0.0  ;;  %v1695_v46 = vld [vmem:[%s6175_s3 + $0x260] sm:$0xff] }
 0x324   : > { %3611 = vmatprep.subr.bf16.mxu0 %v3610_v2  ;;  %v1679_v2 = vld [vmem:[%s6175_s3 + $0x1e0] sm:$0xff] }
 0x325   : > { %v3636_v29 = vpack.c.bf16 %v1681_v24, %v1679_v2 }
 0x326   : > { %v5225_v41 = vpop.f32.mrb[6].mxu0 }
 0x327   : > { %v5233_v27 = vpop.f32.mrb[7].mxu0  ;;  %3613 = vmatpush1.bf16.msra.mxu0 %v3612_v36 }
 0x328   : > { %3615 = vmatprep.subr.bf16.mxu0 %v3614_v13  ;;  %v5415_v10 = vmax.f32 %v5233_v27, 0.0 }
 0x32b   : > { %3617 = vmatpush1.bf16.msra.mxu0 %v3616_v47 }
 0x32c   : > { %3619 = vmatprep.subr.bf16.mxu0 %v3618_v14 }
 0x32f   : > { %3621 = vmatpush1.bf16.msra.mxu0 %v3620_v8  ;;  %v5406_v8 = vmax.f32 %v5211_v58, 0.0 }
 0x330   : > { %3623 = vmatprep.subr.bf16.mxu0 %v3622_v19 }
 0x333   : > { %3625 = vmatpush1.bf16.msra.mxu0 %v3624_v42 }
 0x334   : > { %3627 = vmatprep.subr.bf16.mxu0 %v3626_v5 }
 0x337   : > { %3629 = vmatpush1.bf16.msra.mxu0 %v3628_v0  ;;  %v1683_v0 = vld [vmem:[%s6175_s3 + $0x200] sm:$0xff] }
 0x338   : > { %3631 = vmatprep.subr.bf16.mxu0 %v3630_v40  ;;  %v1688_v40 = vld [vmem:[%s6175_s3 + $0x228] sm:$0xff]  ;;  %v3640_v24 = vpack.c.bf16 %v1685_v61, %v1683_v0  ;;  %v3652_v0 = vpack.c.bf16 %v1697_v30, %v1695_v46  ;;  %v1722_v30 = vld [vmem:[%s6175_s3 + $0x338] sm:$0xff] }
 0x339   : > { %v1720_v46 = vld [vmem:[%s6175_s3 + $0x328] sm:$0xff] }
 0x33b   : > { %3633 = vmatpush1.bf16.msra.mxu0 %v3632_v20 }
 0x33c   : > { %3635 = vmatprep.subr.bf16.mxu0 %v3634_v15 }
 0x33f   : > { %3637 = vmatpush1.bf16.msra.mxu0 %v3636_v29 }
 0x340   : > { %3639 = vmatprep.subr.bf16.mxu0 %v3638_v54 }
 0x384   : > { %v4187_v50 = vpop.permute.xlu1 %4186 }
 0x385   : > { %v4189_v18 = vunpack.i.h.bf16 %v4187_v50  ;;  %v4188_v36 = vunpack.i.l.bf16 %v4187_v50  ;;  %v4192_v13 = vpop.permute.xlu0 %4191  ;;  %v3642_v50 = vpack.c.bf16 %v1690_v4, %v1688_v40  ;;  %v1699_v4 = vld [vmem:[%s6175_s3 + $0x280] sm:$0xff] }
 0x386   : > { %v4194_v57 = vunpack.i.h.bf16 %v4192_v13  ;;  %v4193_v37 = vunpack.i.l.bf16 %v4192_v13 }
 0x387   : > { %v1844_v17 = vsel %vm6217_vm12, %v4188_v36, %v4189_v18  ;;  %vm6223_vm12 = vmmov %vm6221_vm0 }
 0x388   : > { %v1845_v9 = vsel %vm6218_vm13, %v4189_v18, %v4193_v37  ;;  %v1843_v47 = vsel %vm6219_vm7, %v4194_v57, %v4188_v36  ;;  %v1866_v14 = vmax.f32 %v1606_v48, %v1844_v17  ;;  %v4197_v39 = vpop.permute.xlu1 %4196  ;;  %v1687_v18 = vld [vmem:[%s6175_s3 + $0x220] sm:$0xff]  ;;  %v1689_v36 = vld [vmem:[%s6175_s3 + $0x230] sm:$0xff]  ;;  %v1694_v17 = vld [vmem:[%s6175_s3 + $0x258] sm:$0xff] }
 0x389   : > { %v5396_v11 = vpop.permute.xlu0 %4201  ;;  %v1865_v22 = vmax.f32 %v1605_v35, %v1843_v47  ;;  %v5402_v1 = vmax.f32 %v1607_v38, %v1845_v9  ;;  %v4199_v25 = vunpack.i.h.bf16 %v4197_v39  ;;  %v4198_v34 = vunpack.i.l.bf16 %v4197_v39  ;;  %vm6224_vm13 = vmmov %vm6221_vm0 }
 0x38a   : > { %v4203_v48 = vunpack.i.l.bf16 %v5396_v11  ;;  %v1616_v38 = vmax.f32 %v5225_v41, 0.0  ;;  %v4204_v42 = vunpack.i.h.bf16 %v5396_v11  ;;  %vm6225_vm7 = vmmov %vm6221_vm0  ;;  %v1691_v11 = vld [vmem:[%s6175_s3 + $0x240] sm:$0xff] }
 0x38b   : > { %1907 = vrot.lane.b32.xlu0 %v1865_v22, %s4441_s29  ;;  %v4205_v19 = vpack.i.bf16 %v5402_v1, %v1866_v14  ;;  %v1849_v35 = vsel %vm6220_vm9, %v4198_v34, %v4199_v25  ;;  %vm6226_vm9 = vmmov %vm6221_vm0 }
 0x38c   : > { %v1850_v26 = vsel %vm6221_vm0, %v4199_v25, %v4203_v48  ;;  %v5427_v58 = vmax.f32 %v1613_v49, %v1849_v35  ;;  %v1618_v49 = vmax.f32 %v5187_v62, 0.0  ;;  %v1848_v7 = vsel %vm6222_vm5, %v4204_v42, %v4198_v34  ;;  %v1698_v25 = vld [vmem:[%s6175_s3 + $0x278] sm:$0xff]  ;;  %vm6227_vm5 = vmmov %vm6221_vm0  ;;  %v1712_v62 = vld [vmem:[%s6175_s3 + $0x2e8] sm:$0xff] }
 0x38d   : > { %4206 = vrot.lane.b32.xlu1 %v4205_v19, %s4441_s29  ;;  %v5431_v27 = vmax.f32 %v1614_v60, %v1850_v26  ;;  %v5488_v57 = vmax.f32 %v1612_v28, %v1848_v7  ;;  %v1696_v19 = vld [vmem:[%s6175_s3 + $0x268] sm:$0xff]  ;;  %v1701_v7 = vld [vmem:[%s6175_s3 + $0x290] sm:$0xff] }
 0x38e   : > { %v3650_v54 = vpack.c.bf16 %v1698_v25, %v1696_v19 }
 0x38f   : > { %1829 = vrot.lane.b32.xlu0 %v5406_v8, %s4440_s28  ;;  %v4210_v41 = vpack.i.bf16 %v5431_v27, %v5427_v58 }
 0x391   : > { %1827 = vrot.lane.b32.xlu1 %v1609_v6, %s4440_s28 }
 0x393   : > { %1841 = vrot.lane.b32.xlu0 %v5415_v10, %s4440_s28 }
 0x395   : > { %1839 = vrot.lane.b32.xlu1 %v1616_v38, %s4440_s28 }
 0x399   : > { %4211 = vrot.lane.b32.xlu1 %v4210_v41, %s4441_s29 }
 0x39d   : > { %1879 = vrot.lane.b32.xlu1 %v1611_v55, %s4440_s28 }
 0x3a1   : > { %1881 = vrot.lane.b32.xlu1 %v1618_v49, %s4440_s28 }
 0x3fd   : > { %v1908_v60 = vpop.permute.xlu0 %1907 }
 0x3ff   : > { %v5452_v5 = vpop.permute.xlu1 %4206 }
 0x400   : > { %v4209_v16 = vunpack.i.h.bf16 %v5452_v5  ;;  %v4208_v56 = vunpack.i.l.bf16 %v5452_v5 }
 0x401   : > { %v5462_v3 = vpop.permute.xlu0 %1829 }
 0x402   : > { %v1935_v20 = vsel %vm519_vm4, %v1908_v60, %v4208_v56  ;;  %v1936_v12 = vsel %vm519_vm4, %v4208_v56, %v4209_v16 }
 0x403   : > { %v1959_v52 = vmax.f32 %v1865_v22, %v1935_v20  ;;  %v1828_v15 = vpop.permute.xlu1 %1827  ;;  %v1960_v2 = vmax.f32 %v1866_v14, %v1936_v12  ;;  %v1693_v22 = vld [vmem:[%s6175_s3 + $0x250] sm:$0xff]  ;;  %v1706_v12 = vld [vmem:[%s6175_s3 + $0x2b8] sm:$0xff] }
 0x404   : > { %v1846_v29 = vsel %vm6223_vm12, %v4193_v37, %v1828_v15  ;;  %v1692_v37 = vld [vmem:[%s6175_s3 + $0x248] sm:$0xff]  ;;  %v1847_v45 = vsel %vm6224_vm13, %v1828_v15, %v5462_v3  ;;  %v3648_v41 = vpack.c.bf16 %v1693_v22, %v1691_v11  ;;  %v1718_v22 = vld [vmem:[%s6175_s3 + $0x318] sm:$0xff]  ;;  %vm1971_vm12 = vcmask 859136  }
 0x405   : > { %v5484_v13 = vmax.f32 %v1608_v44, %v1846_v29  ;;  %2048 = vmatprep.mubr.f32.mxu0 %v1960_v2  ;;  %v5496_v9 = vpop.permute.xlu0 %1841  ;;  %v3644_v44 = vpack.c.bf16 %v1689_v36, %v1687_v18  ;;  %v3646_v39 = vpack.c.bf16 %v1694_v17, %v1692_v37  ;;  %v5520_v34 = vmax.f32 %v1609_v6, %v1847_v45  ;;  %v1702_v6 = vld [vmem:[%s6175_s3 + $0x298] sm:$0xff]  ;;  %v1705_v18 = vld [vmem:[%s6175_s3 + $0x2b0] sm:$0xff]  ;;  %v1716_v11 = vld [vmem:[%s6175_s3 + $0x308] sm:$0xff] }
 0x406   : > { %2049 = vmatmul.mubr.f32.vlgmr.msra.gmra.mrb[8].mxu0 %v1959_v52  ;;  %v3656_v2 = vpack.c.bf16 %v1701_v7, %v1699_v4  ;;  %v1710_v36 = vld [vmem:[%s6175_s3 + $0x2d8] sm:$0xff]  ;;  %v3670_v25 = vpack.c.bf16 %v1718_v22, %v1716_v11  ;;  %v1725_v4 = vld [vmem:[%s6175_s3 + $0x350] sm:$0xff]  ;;  %v1728_v7 = vld [vmem:[%s6175_s3 + $0x368] sm:$0xff]  ;;  %vm2216_vm13 = vcmask 130048  }
 0x407   : > { %v1840_v47 = vpop.permute.xlu1 %1839  ;;  %v4215_v43 = vpack.i.bf16 %v5484_v13, %v5488_v57  ;;  %3641 = vmatpush1.bf16.msra.mxu0 %v3640_v24  ;;  %v1746_v11 = vld [vmem:[%s6175_s3 + $0x3f8] sm:$0xff] }
 0x408   : > { %v1851_v28 = vsel %vm6225_vm7, %v4203_v48, %v1840_v47  ;;  %v1852_v14 = vsel %vm6226_vm9, %v1840_v47, %v5496_v9  ;;  %3643 = vmatprep.subr.bf16.mxu0 %v3642_v50  ;;  %v1703_v50 = vld [vmem:[%s6175_s3 + $0x2a0] sm:$0xff]  ;;  %vm6228_vm7 = vmmov %vm6221_vm0  ;;  %vm2315_vm9 = vcmask 924672  }
 0x409   : > { %4216 = vrot.lane.b32.xlu0 %v4215_v43, %s4441_s29  ;;  %v5524_v48 = vmax.f32 %v1615_v23, %v1851_v28  ;;  %v5526_v35 = vmax.f32 %v1616_v38, %v1852_v14  ;;  %v1700_v23 = vld [vmem:[%s6175_s3 + $0x288] sm:$0xff]  ;;  %v3660_v17 = vpack.c.bf16 %v1705_v18, %v1703_v50  ;;  %v1707_v43 = vld [vmem:[%s6175_s3 + $0x2c0] sm:$0xff] }
 0x40a   : > { %v3654_v40 = vpack.c.bf16 %v1702_v6, %v1700_v23  ;;  %v1711_v14 = vld [vmem:[%s6175_s3 + $0x2e0] sm:$0xff]  ;;  %v3674_v6 = vpack.c.bf16 %v1722_v30, %v1720_v46  ;;  %v1750_v46 = vld [vmem:[%s6175_s3 + $0x418] sm:$0xff] }
 0x40b   : > { %v5528_v26 = vpop.permute.xlu1 %4211  ;;  %3645 = vmatpush1.bf16.msra.mxu0 %v3644_v44  ;;  %v4220_v42 = vpack.i.bf16 %v5526_v35, %v5524_v48  ;;  %v1709_v44 = vld [vmem:[%s6175_s3 + $0x2d0] sm:$0xff]  ;;  %v1731_v18 = vld [vmem:[%s6175_s3 + $0x380] sm:$0xff] }
 0x40c   : > { %v4214_v51 = vunpack.i.h.bf16 %v5528_v26  ;;  %v4213_v32 = vunpack.i.l.bf16 %v5528_v26  ;;  %3647 = vmatprep.subr.bf16.mxu0 %v3646_v39  ;;  %v3664_v45 = vpack.c.bf16 %v1709_v44, %v1707_v43  ;;  %v1713_v39 = vld [vmem:[%s6175_s3 + $0x2f0] sm:$0xff]  ;;  %v1740_v44 = vld [vmem:[%s6175_s3 + $0x3c8] sm:$0xff] }
 0x40d   : > { %1915 = vrot.lane.b32.xlu0 %v5520_v34, %s4441_s29  ;;  %v3668_v19 = vpack.c.bf16 %v1713_v39, %v1711_v14  ;;  %v1737_v43 = vld [vmem:[%s6175_s3 + $0x3b0] sm:$0xff]  ;;  %v1744_v39 = vld [vmem:[%s6175_s3 + $0x3e8] sm:$0xff] }
 0x40e   : > { %v1942_v38 = vsel %vm519_vm4, %v4213_v32, %v4214_v51  ;;  %v1741_v14 = vld [vmem:[%s6175_s3 + $0x3d0] sm:$0xff] }
 0x40f   : > { %v1880_v60 = vpop.permute.xlu1 %1879  ;;  %v1966_v56 = vmax.f32 %v5427_v58, %v1942_v38  ;;  %3649 = vmatpush1.bf16.msra.mxu0 %v3648_v41  ;;  %v1704_v58 = vld [vmem:[%s6175_s3 + $0x2a8] sm:$0xff]  ;;  %v1715_v41 = vld [vmem:[%s6175_s3 + $0x300] sm:$0xff]  ;;  %v1757_v26 = vld [vmem:[%s6175_s3 + $0x450] sm:$0xff] }
 0x410   : > { %v1883_v61 = vsel %vm6221_vm0, %v5462_v3, %v1880_v60  ;;  %3651 = vmatprep.subr.bf16.mxu0 %v3650_v54  ;;  %v1890_v52 = vmax.f32 %v1611_v55, %v1880_v60  ;;  %v3658_v29 = vpack.c.bf16 %v1706_v12, %v1704_v58  ;;  %v1708_v55 = vld [vmem:[%s6175_s3 + $0x2c8] sm:$0xff]  ;;  %v1717_v54 = vld [vmem:[%s6175_s3 + $0x310] sm:$0xff]  ;;  %v1719_v38 = vld [vmem:[%s6175_s3 + $0x320] sm:$0xff]  ;;  %vm2323_vm0 = vcmask 916480  }
 0x411   : > { %v1889_v20 = vmax.f32 %v5406_v8, %v1883_v61  ;;  %4221 = vrot.lane.b32.xlu0 %v4220_v42, %s4441_s29  ;;  %2054 = vmatprep.mubr.f32.mxu0 %v1966_v56  ;;  %v3662_v47 = vpack.c.bf16 %v1710_v36, %v1708_v55  ;;  %v3672_v23 = vpack.c.bf16 %v1717_v54, %v1715_v41  ;;  %v1721_v60 = vld [vmem:[%s6175_s3 + $0x330] sm:$0xff]  ;;  %v1724_v42 = vld [vmem:[%s6175_s3 + $0x348] sm:$0xff]  ;;  %v1726_v56 = vld [vmem:[%s6175_s3 + $0x358] sm:$0xff] }
 0x412   : > { %v3678_v61 = vpack.c.bf16 %v1726_v56, %v1724_v42  ;;  %v1736_v55 = vld [vmem:[%s6175_s3 + $0x3a8] sm:$0xff]  ;;  %v1738_v36 = vld [vmem:[%s6175_s3 + $0x3b8] sm:$0xff]  ;;  %v1745_v41 = vld [vmem:[%s6175_s3 + $0x3f0] sm:$0xff] }
 0x413   : > { %1917 = vrot.lane.b32.xlu1 %v1889_v20, %s4441_s29  ;;  %v1882_v15 = vpop.permute.xlu1 %1881  ;;  %3653 = vmatpush1.bf16.msra.mxu0 %v3652_v0  ;;  %v3676_v0 = vpack.c.bf16 %v1721_v60, %v1719_v38  ;;  %v1730_v20 = vld [vmem:[%s6175_s3 + $0x378] sm:$0xff]  ;;  %v1748_v54 = vld [vmem:[%s6175_s3 + $0x408] sm:$0xff] }
 0x414   : > { %v1884_v24 = vsel %vm6227_vm5, %v5496_v9, %v1882_v15  ;;  %3655 = vmatprep.subr.bf16.mxu0 %v3654_v40  ;;  %v1892_v37 = vmax.f32 %v1618_v49, %v1882_v15  ;;  %v1714_v49 = vld [vmem:[%s6175_s3 + $0x2f8] sm:$0xff]  ;;  %v1723_v40 = vld [vmem:[%s6175_s3 + $0x340] sm:$0xff]  ;;  %v3682_v12 = vpack.c.bf16 %v1730_v20, %v1728_v7  ;;  %v1729_v15 = vld [vmem:[%s6175_s3 + $0x370] sm:$0xff]  ;;  %vm2331_vm5 = vcmask 908288  }
 0x415   : > { %v1891_v53 = vmax.f32 %v5415_v10, %v1884_v24  ;;  %1919 = vrot.lane.b32.xlu0 %v1890_v52, %s4441_s29  ;;  %v3666_v28 = vpack.c.bf16 %v1714_v49, %v1712_v62  ;;  %v3680_v58 = vpack.c.bf16 %v1725_v4, %v1723_v40  ;;  %v1727_v52 = vld [vmem:[%s6175_s3 + $0x360] sm:$0xff]  ;;  %v1734_v24 = vld [vmem:[%s6175_s3 + $0x398] sm:$0xff]  ;;  %v1749_v40 = vld [vmem:[%s6175_s3 + $0x410] sm:$0xff] }
 0x416   : > { %v1742_v62 = vld [vmem:[%s6175_s3 + $0x3d8] sm:$0xff] }
 0x417   : > { %1931 = vrot.lane.b32.xlu1 %v1891_v53, %s4441_s29  ;;  %3657 = vmatpush1.bf16.msra.mxu0 %v3656_v2  ;;  %v1732_v2 = vld [vmem:[%s6175_s3 + $0x388] sm:$0xff]  ;;  %v1733_v53 = vld [vmem:[%s6175_s3 + $0x390] sm:$0xff] }
 0x418   : > { %3659 = vmatprep.subr.bf16.mxu0 %v3658_v29  ;;  %v3684_v29 = vpack.c.bf16 %v1729_v15, %v1727_v52  ;;  %v3686_v50 = vpack.c.bf16 %v1734_v24, %v1732_v2  ;;  %v1751_v52 = vld [vmem:[%s6175_s3 + $0x420] sm:$0xff]  ;;  %v1753_v15 = vld [vmem:[%s6175_s3 + $0x430] sm:$0xff]  ;;  %v1758_v24 = vld [vmem:[%s6175_s3 + $0x458] sm:$0xff] }
 0x419   : > { %1933 = vrot.lane.b32.xlu0 %v1892_v37, %s4441_s29  ;;  %v3688_v37 = vpack.c.bf16 %v1733_v53, %v1731_v18  ;;  %v1870_v53 = vmax.f32 %v5406_v8, %v5462_v3  ;;  %v1760_v3 = vld [vmem:[%s6175_s3 + $0x468] sm:$0xff] }
 0x41b   : > { %3661 = vmatpush1.bf16.msra.mxu0 %v3660_v17  ;;  %v3690_v17 = vpack.c.bf16 %v1738_v36, %v1736_v55 }
 0x41c   : > { %3663 = vmatprep.subr.bf16.mxu0 %v3662_v47  ;;  %v1735_v47 = vld [vmem:[%s6175_s3 + $0x3a0] sm:$0xff] }
 0x41d   : > { %v3692_v49 = vpack.c.bf16 %v1737_v43, %v1735_v47  ;;  %v1755_v43 = vld [vmem:[%s6175_s3 + $0x440] sm:$0xff] }
 0x41f   : > { %3665 = vmatpush1.bf16.msra.mxu0 %v3664_v45  ;;  %v3694_v45 = vpack.c.bf16 %v1742_v62, %v1740_v44  ;;  %v1759_v62 = vld [vmem:[%s6175_s3 + $0x460] sm:$0xff] }
 0x420   : > { %3667 = vmatprep.subr.bf16.mxu0 %v3666_v28  ;;  %v1739_v28 = vld [vmem:[%s6175_s3 + $0x3c0] sm:$0xff] }
 0x421   : > { %v3696_v22 = vpack.c.bf16 %v1741_v14, %v1739_v28  ;;  %v1766_v28 = vld [vmem:[%s6175_s3 + $0x498] sm:$0xff] }
 0x423   : > { %3669 = vmatpush1.bf16.msra.mxu0 %v3668_v19  ;;  %v3698_v19 = vpack.c.bf16 %v1746_v11, %v1744_v39  ;;  %v1763_v11 = vld [vmem:[%s6175_s3 + $0x480] sm:$0xff] }
 0x424   : > { %3671 = vmatprep.subr.bf16.mxu0 %v3670_v25  ;;  %v1743_v25 = vld [vmem:[%s6175_s3 + $0x3e0] sm:$0xff] }
 0x425   : > { %v3700_v30 = vpack.c.bf16 %v1745_v41, %v1743_v25  ;;  %v1770_v25 = vld [vmem:[%s6175_s3 + $0x4b8] sm:$0xff] }
 0x427   : > { %3673 = vmatpush1.bf16.msra.mxu0 %v3672_v23  ;;  %v3702_v23 = vpack.c.bf16 %v1750_v46, %v1748_v54  ;;  %v1767_v46 = vld [vmem:[%s6175_s3 + $0x4a0] sm:$0xff] }
 0x428   : > { %3675 = vmatprep.subr.bf16.mxu0 %v3674_v6 }
 0x42b   : > { %3677 = vmatpush1.bf16.msra.mxu0 %v3676_v0 }
 0x42c   : > { %3679 = vmatprep.subr.bf16.mxu0 %v3678_v61  ;;  %v1747_v61 = vld [vmem:[%s6175_s3 + $0x400] sm:$0xff] }
 0x42f   : > { %3681 = vmatpush1.bf16.msra.mxu0 %v3680_v58  ;;  %v3704_v58 = vpack.c.bf16 %v1749_v40, %v1747_v61  ;;  %v1776_v61 = vld [vmem:[%s6175_s3 + $0x4e8] sm:$0xff]  ;;  %v1778_v40 = vld [vmem:[%s6175_s3 + $0x4f8] sm:$0xff] }
 0x430   : > { %3683 = vmatprep.subr.bf16.mxu0 %v3682_v12 }
 0x433   : > { %3685 = vmatpush1.bf16.msra.mxu0 %v3684_v29 }
 0x434   : > { %3687 = vmatprep.subr.bf16.mxu0 %v3686_v50  ;;  %v3708_v50 = vpack.c.bf16 %v1753_v15, %v1751_v52  ;;  %v1779_v52 = vld [vmem:[%s6175_s3 + $0x500] sm:$0xff]  ;;  %v1781_v15 = vld [vmem:[%s6175_s3 + $0x510] sm:$0xff] }
 0x437   : > { %3689 = vmatpush1.bf16.msra.mxu0 %v3688_v37 }
 0x438   : > { %3691 = vmatprep.subr.bf16.mxu0 %v3690_v17 }
 0x43b   : > { %3693 = vmatpush1.bf16.msra.mxu0 %v3692_v49  ;;  %v1761_v49 = vld [vmem:[%s6175_s3 + $0x470] sm:$0xff] }
 0x43c   : > { %3695 = vmatprep.subr.bf16.mxu0 %v3694_v45  ;;  %v1764_v45 = vld [vmem:[%s6175_s3 + $0x488] sm:$0xff]  ;;  %v3716_v14 = vpack.c.bf16 %v1761_v49, %v1759_v62  ;;  %v1798_v62 = vld [vmem:[%s6175_s3 + $0x598] sm:$0xff] }
 0x43d   : > { %v3718_v39 = vpack.c.bf16 %v1766_v28, %v1764_v45  ;;  %v1795_v28 = vld [vmem:[%s6175_s3 + $0x580] sm:$0xff] }
 0x43f   : > { %3697 = vmatpush1.bf16.msra.mxu0 %v3696_v22  ;;  %v1765_v22 = vld [vmem:[%s6175_s3 + $0x490] sm:$0xff] }
 0x440   : > { %3699 = vmatprep.subr.bf16.mxu0 %v3698_v19  ;;  %v1768_v19 = vld [vmem:[%s6175_s3 + $0x4a8] sm:$0xff]  ;;  %v3720_v41 = vpack.c.bf16 %v1765_v22, %v1763_v11  ;;  %v1802_v11 = vld [vmem:[%s6175_s3 + $0x5b8] sm:$0xff] }
 0x441   : > { %v3722_v54 = vpack.c.bf16 %v1770_v25, %v1768_v19  ;;  %v1799_v25 = vld [vmem:[%s6175_s3 + $0x5a0] sm:$0xff] }
 0x443   : > { %3701 = vmatpush1.bf16.msra.mxu0 %v3700_v30  ;;  %v1769_v30 = vld [vmem:[%s6175_s3 + $0x4b0] sm:$0xff] }
 0x444   : > { %3703 = vmatprep.subr.bf16.mxu0 %v3702_v23  ;;  %v1772_v23 = vld [vmem:[%s6175_s3 + $0x4c8] sm:$0xff] }
 0x47b   : > { %v4217_v6 = vpop.permute.xlu0 %4216 }
 0x47c   : > { %v4219_v38 = vunpack.i.h.bf16 %v4217_v6  ;;  %v4218_v60 = vunpack.i.l.bf16 %v4217_v6  ;;  %v1774_v6 = vld [vmem:[%s6175_s3 + $0x4d8] sm:$0xff] }
 0x47e   : > { %v1941_v42 = vsel %vm519_vm4, %v4218_v60, %v4213_v32  ;;  %v1937_v4 = vsel %vm519_vm4, %v4209_v16, %v4219_v38  ;;  %v1752_v32 = vld [vmem:[%s6175_s3 + $0x428] sm:$0xff]  ;;  %v3726_v60 = vpack.c.bf16 %v1774_v6, %v1772_v23  ;;  %v1803_v6 = vld [vmem:[%s6175_s3 + $0x5c0] sm:$0xff] }
 0x47f   : > { %v5716_v56 = vpop.permute.xlu0 %1915  ;;  %v1965_v0 = vmax.f32 %v5488_v57, %v1941_v42  ;;  %v1754_v57 = vld [vmem:[%s6175_s3 + $0x438] sm:$0xff]  ;;  %v1961_v12 = vmax.f32 %v5402_v1, %v1937_v4  ;;  %v1756_v1 = vld [vmem:[%s6175_s3 + $0x448] sm:$0xff]  ;;  %v1771_v42 = vld [vmem:[%s6175_s3 + $0x4c0] sm:$0xff] }
 0x480   : > { %v1938_v7 = vsel %vm519_vm4, %v4219_v38, %v5716_v56  ;;  %v3706_v16 = vpack.c.bf16 %v1754_v57, %v1752_v32  ;;  %v3710_v47 = vpack.c.bf16 %v1758_v24, %v1756_v1  ;;  %v3724_v38 = vpack.c.bf16 %v1769_v30, %v1767_v46  ;;  %v1775_v32 = vld [vmem:[%s6175_s3 + $0x4e0] sm:$0xff]  ;;  %v1777_v57 = vld [vmem:[%s6175_s3 + $0x4f0] sm:$0xff]  ;;  %v1786_v1 = vld [vmem:[%s6175_s3 + $0x538] sm:$0xff] }
 0x481   : > { %v1962_v20 = vmax.f32 %v5484_v13, %v1938_v7  ;;  %2055 = vmatmul.mubr.f32.gmra.mrb[10].mxu0 %v1965_v0  ;;  %v1773_v0 = vld [vmem:[%s6175_s3 + $0x4d0] sm:$0xff]  ;;  %v3730_v7 = vpack.c.bf16 %v1778_v40, %v1776_v61  ;;  %v3736_v24 = vpack.c.bf16 %v1781_v15, %v1779_v52  ;;  %v1806_v46 = vld [vmem:[%s6175_s3 + $0x5d8] sm:$0x1] }
 0x482   : > { %v3728_v4 = vpack.c.bf16 %v1773_v0, %v1771_v42 }
 0x483   : > { %v5738_v5 = vpop.permute.xlu0 %4221  ;;  %2125 = vmatprep.mubr.f32.mxu0 %v1962_v20  ;;  %v1780_v20 = vld [vmem:[%s6175_s3 + $0x508] sm:$0xff] }
 0x484   : > { %v4224_v2 = vunpack.i.h.bf16 %v5738_v5  ;;  %v4223_v13 = vunpack.i.l.bf16 %v5738_v5 }
 0x485   : > { %2126 = vmatmul.mubr.f32.vlgmr.msra.gmra.mrb[8].mxu0 %v1961_v12  ;;  %v5762_v55 = vpop.permute.xlu1 %1917  ;;  %v3732_v12 = vpack.c.bf16 %v1777_v57, %v1775_v32 }
 0x486   : > { %3705 = vmatpush1.bf16.msra.mxu0 %v3704_v58  ;;  %v1944_v29 = vsel %vm519_vm4, %v4223_v13, %v4224_v2  ;;  %v1943_v18 = vsel %vm519_vm4, %v4214_v51, %v4223_v13  ;;  %v3712_v51 = vpack.c.bf16 %v1757_v26, %v1755_v43  ;;  %v1782_v58 = vld [vmem:[%s6175_s3 + $0x518] sm:$0xff]  ;;  %v1784_v13 = vld [vmem:[%s6175_s3 + $0x528] sm:$0xff]  ;;  %v1789_v43 = vld [vmem:[%s6175_s3 + $0x550] sm:$0xff]  ;;  %v1939_v0 = vsel %vm519_vm4, %v5716_v56, %v5762_v55 }
 0x487   : > { %v1920_v36 = vpop.permute.xlu0 %1919  ;;  %3707 = vmatprep.subr.bf16.mxu0 %v3706_v16  ;;  %v1968_v37 = vmax.f32 %v5524_v48, %v1944_v29  ;;  %v1967_v17 = vmax.f32 %v5431_v27, %v1943_v18  ;;  %v1762_v27 = vld [vmem:[%s6175_s3 + $0x478] sm:$0xff]  ;;  %v3734_v16 = vpack.c.bf16 %v1782_v58, %v1780_v20  ;;  %v3738_v29 = vpack.c.bf16 %v1786_v1, %v1784_v13  ;;  %v1785_v18 = vld [vmem:[%s6175_s3 + $0x530] sm:$0xff]  ;;  %v1792_v26 = vld [vmem:[%s6175_s3 + $0x568] sm:$0xff] }
 0x488   : > { %v1940_v8 = vsel %vm519_vm4, %v5762_v55, %v1920_v36  ;;  %v3714_v44 = vpack.c.bf16 %v1762_v27, %v1760_v3  ;;  %v1790_v36 = vld [vmem:[%s6175_s3 + $0x558] sm:$0xff] }
 0x489   : > { %v1964_v48 = vmax.f32 %v1870_v53, %v1940_v8  ;;  %2131 = vmatprep.mubr.f32.mxu0 %v1968_v37  ;;  %v1788_v53 = vld [vmem:[%s6175_s3 + $0x548] sm:$0xff]  ;;  %v1794_v8 = vld [vmem:[%s6175_s3 + $0x578] sm:$0xff]  ;;  %v1932_v61 = vpop.permute.xlu1 %1931 }
 0x48a   : > { %3709 = vmatpush1.bf16.msra.mxu0 %v3708_v50  ;;  %v1783_v50 = vld [vmem:[%s6175_s3 + $0x520] sm:$0xff]  ;;  %v3746_v27 = vpack.c.bf16 %v1794_v8, %v1792_v26  ;;  %v1945_v32 = vsel %vm519_vm4, %v4224_v2, %v1932_v61 }
 0x48b   : > { %2132 = vmatmul.mubr.f32.gmra.mrb[10].mxu0 %v1967_v17  ;;  %3711 = vmatprep.subr.bf16.mxu0 %v3710_v47  ;;  %v3740_v37 = vpack.c.bf16 %v1785_v18, %v1783_v50  ;;  %v3742_v17 = vpack.c.bf16 %v1790_v36, %v1788_v53  ;;  %v1787_v47 = vld [vmem:[%s6175_s3 + $0x540] sm:$0xff]  ;;  %v1969_v56 = vmax.f32 %v5526_v35, %v1945_v32 }
 0x48c   : > { %3334 = vmatprep.mubr.msk.f32.mxu0 %vm1971_vm12, %v1964_v48  ;;  %v3744_v3 = vpack.c.bf16 %v1789_v43, %v1787_v47  ;;  %v1791_v48 = vld [vmem:[%s6175_s3 + $0x560] sm:$0xff] }
 0x48e   : > { %3713 = vmatpush1.bf16.msra.mxu0 %v3712_v51  ;;  %v1793_v51 = vld [vmem:[%s6175_s3 + $0x570] sm:$0xff] }
 0x48f   : > { %3715 = vmatprep.subr.bf16.mxu0 %v3714_v44  ;;  %v1796_v44 = vld [vmem:[%s6175_s3 + $0x588] sm:$0xff]  ;;  %v3748_v49 = vpack.c.bf16 %v1793_v51, %v1791_v48 }
 0x490   : > { %v3750_v45 = vpack.c.bf16 %v1798_v62, %v1796_v44 }
 0x492   : > { %3717 = vmatpush1.bf16.msra.mxu0 %v3716_v14  ;;  %v1797_v14 = vld [vmem:[%s6175_s3 + $0x590] sm:$0xff] }
 0x493   : > { %3719 = vmatprep.subr.bf16.mxu0 %v3718_v39  ;;  %v1800_v39 = vld [vmem:[%s6175_s3 + $0x5a8] sm:$0xff]  ;;  %v3752_v22 = vpack.c.bf16 %v1797_v14, %v1795_v28 }
 0x494   : > { %v3754_v19 = vpack.c.bf16 %v1802_v11, %v1800_v39 }
 0x496   : > { %3721 = vmatpush1.bf16.msra.mxu0 %v3720_v41  ;;  %v1801_v41 = vld [vmem:[%s6175_s3 + $0x5b0] sm:$0xff] }
 0x497   : > { %3723 = vmatprep.subr.bf16.mxu0 %v3722_v54  ;;  %v1804_v54 = vld [vmem:[%s6175_s3 + $0x5c8] sm:$0xff]  ;;  %v3756_v30 = vpack.c.bf16 %v1801_v41, %v1799_v25 }
 0x498   : > { %v3758_v23 = vpack.c.bf16 %v1806_v46, %v1804_v54 }
 0x49a   : > { %3725 = vmatpush1.bf16.msra.mxu0 %v3724_v38  ;;  %v1805_v38 = vld [vmem:[%s6175_s3 + $0x5d0] sm:$0x1] }
 0x49b   : > { %3727 = vmatprep.subr.bf16.mxu0 %v3726_v60  ;;  %v1934_v60 = vpop.permute.xlu0 %1933  ;;  %v3761_v42 = vpack.c.bf16 %v1805_v38, %v1803_v6 }
 0x49c   : > { %v1946_v40 = vsel %vm519_vm4, %v1932_v61, %v1934_v60 }
 0x49e   : > { %3729 = vmatpush1.bf16.msra.mxu0 %v3728_v4  ;;  %v1876_v4 = vmax.f32 %v5415_v10, %v5496_v9 }
 0x49f   : > { %3731 = vmatprep.subr.bf16.mxu0 %v3730_v7  ;;  %v1963_v7 = vmax.f32 %v5520_v34, %v1939_v0  ;;  %v2215_v34 = vld [vmem:[%s6176_s4] sm:$0xff] }
 0x4a0   : > { %v1970_v57 = vmax.f32 %v1876_v4, %v1946_v40  ;;  %v2293_v4 = vld [vmem:[%s6177_s5] sm:$0xff] }
 0x4a2   : > { %3733 = vmatpush1.bf16.msra.mxu0 %v3732_v12 }
 0x4a3   : > { %3735 = vmatprep.subr.bf16.mxu0 %v3734_v16 }
 0x4a6   : > { %3737 = vmatpush1.bf16.msra.mxu0 %v3736_v24 }
 0x4a7   : > { %3739 = vmatprep.subr.bf16.mxu0 %v3738_v29 }
 0x4aa   : > { %3741 = vmatpush1.bf16.msra.mxu0 %v3740_v37 }
 0x4ab   : > { %3743 = vmatprep.subr.bf16.mxu0 %v3742_v17 }
 0x4ae   : > { %3745 = vmatpush1.bf16.msra.mxu0 %v3744_v3 }
 0x4af   : > { %3747 = vmatprep.subr.bf16.mxu0 %v3746_v27 }
 0x4b2   : > { %3749 = vmatpush1.bf16.msra.mxu0 %v3748_v49 }
 0x4b3   : > { %3751 = vmatprep.subr.bf16.mxu0 %v3750_v45 }
 0x4b6   : > { %3753 = vmatpush1.bf16.msra.mxu0 %v3752_v22 }
 0x4b7   : > { %3755 = vmatprep.subr.bf16.mxu0 %v3754_v19 }
 0x4ba   : > { %3757 = vmatpush1.bf16.msra.mxu0 %v3756_v30 }
 0x4bb   : > { %3760 = vmatprep.subr.msk.bf16.mxu0 %vm5039_vm14, %v3758_v23 }
 0x4be   : > { %3763 = vmatpush1.bf16.msk.msra.mxu0 %vm5039_vm14, %v3761_v42 }
 0x4c1   : > { %2203 = vmatmul.mubr.f32.vlgmr.msra.gmra.mrb[8].mxu0 %v1963_v7  ;;  %v2294_v7 = vld [vmem:[%s6177_s5 + $0x8] sm:$0xff] }
 0x4c2   : > { %3335 = vmatprep.mubr.msk.f32.mxu0 %vm1971_vm12, %v1970_v57  ;;  %vm6229_vm12 = vcmask 785408  }
 0x4c5   : > { %2209 = vmatmul.mubr.f32.gmra.mrb[10].mxu0 %v1969_v56 }
 0x594   : > { %v2204_v55 = vpop.f32.mrb[8].mxu0 }
 0x595   : > { %v2206_v20 = vpop.f32.mrb[9].mxu0 }
 0x598   : > { %v2210_v58 = vpop.f32.mrb[10].mxu0 }
 0x599   : > { %v3766_v10 = vpack.c.bf16 %v2210_v58, %v2204_v55  ;;  %v2212_v9 = vpop.f32.mrb[11].mxu0 }
 0x59a   : > { %v3764_v12 = vpack.c.bf16 %v2212_v9, %v2206_v20 }
 0x59c   : > { %3765 = vmatprep.subr.bf16.mxu1 %v3764_v12 }
 0x59d   : > { %3767 = vmatpush1.bf16.msra.mxu1 %v3766_v10 }
 0x5a0   : > { %3336 = vmatmul.mubr.msk.f32.vlgmr.msra.gmra.mrb[14].mxu1 %vm2216_vm13, %v2215_v34 }
 0x5a1   : > { %2426 = vmatprep.mubr.f32.mxu1 %v4447_v21 }
 0x673   : > { %v2286_v5 = vpop.f32.mrb[14].mxu1 }
 0x674   : > { %v2291_v35 = vmax.f32 %v2286_v5, 0.0  ;;  %v2288_v2 = vpop.f32.mrb[15].mxu1 }
 0x675   : > { %v2292_v16 = vmax.f32 %v2288_v2, 0.0 }
 0x677   : > { %v4230_v52 = vpack.i.bf16 %v2292_v16, %v2291_v35 }
 0x679   : > { %4231 = vrot.lane.b32.xlu0 %v4230_v52, %s4439_s27  ;;  %4226 = vrot.lane.b32.xlu1 %v4230_v52, %s4440_s28 }
 0x67d   : > { %4241 = vrot.lane.b32.xlu0 %v4230_v52, %s4452_s16  ;;  %4236 = vrot.lane.b32.xlu1 %v4230_v52, %s4453_s17 }
 0x681   : > { %4251 = vrot.lane.b32.xlu0 %v4230_v52, %s4441_s29  ;;  %4246 = vrot.lane.b32.xlu1 %v4230_v52, %s4454_s18 }
 0x685   : > { %4261 = vrot.lane.b32.xlu0 %v4230_v52, %s4443_s13  ;;  %4256 = vrot.lane.b32.xlu1 %v4230_v52, %s4442_s30 }
 0x6eb   : > { %v4232_v15 = vpop.permute.xlu0 %4231  ;;  %v4227_v13 = vpop.permute.xlu1 %4226 }
 0x6ec   : > { %v4229_v1 = vunpack.i.h.bf16 %v4227_v13  ;;  %v4228_v24 = vunpack.i.l.bf16 %v4227_v13  ;;  %v4234_v29 = vunpack.i.h.bf16 %v4232_v15  ;;  %v4233_v50 = vunpack.i.l.bf16 %v4232_v15 }
 0x6ee   : > { %v3768_v18 = vpack.c.bf16 %v4229_v1, %v2292_v16  ;;  %v2301_v53 = vsel %vm6228_vm7, %v4228_v24, %v4229_v1  ;;  %v2308_v3 = vsel %vm491_vm1, %v4233_v50, %v4234_v29 }
 0x6ef   : > { %v3770_v36 = vpack.c.bf16 %v2301_v53, %v2291_v35  ;;  %v4242_v37 = vpop.permute.xlu0 %4241  ;;  %v4237_v17 = vpop.permute.xlu1 %4236  ;;  %v2444_v35 = vld [vmem:[%s6178_s6 + $0x8] sm:$0xff] }
 0x6f0   : > { %v4239_v47 = vunpack.i.h.bf16 %v4237_v17  ;;  %v4238_v43 = vunpack.i.l.bf16 %v4237_v17  ;;  %3769 = vmatprep.subr.bf16.mxu1 %v3768_v18  ;;  %v4244_v26 = vunpack.i.h.bf16 %v4242_v37  ;;  %v4243_v8 = vunpack.i.l.bf16 %v4242_v37 }
 0x6f1   : > { %3771 = vmatpush1.bf16.msra.mxu1 %v3770_v36 }
 0x6f2   : > { %v3772_v27 = vpack.c.bf16 %v4239_v47, %v4234_v29  ;;  %v2316_v48 = vsel %vm2315_vm9, %v4238_v43, %v4239_v47  ;;  %v2324_v28 = vsel %vm2323_vm0, %v4243_v8, %v4244_v26 }
 0x6f3   : > { %v3774_v51 = vpack.c.bf16 %v2316_v48, %v2308_v3  ;;  %v4252_v44 = vpop.permute.xlu0 %4251  ;;  %v4247_v62 = vpop.permute.xlu1 %4246 }
 0x6f4   : > { %v4249_v49 = vunpack.i.h.bf16 %v4247_v62  ;;  %v4248_v45 = vunpack.i.l.bf16 %v4247_v62  ;;  %3773 = vmatprep.subr.bf16.mxu1 %v3772_v27  ;;  %v4254_v14 = vunpack.i.h.bf16 %v4252_v44  ;;  %v4253_v39 = vunpack.i.l.bf16 %v4252_v44 }
 0x6f5   : > { %3775 = vmatpush1.bf16.msra.mxu1 %v3774_v51 }
 0x6f6   : > { %v3776_v11 = vpack.c.bf16 %v4249_v49, %v4244_v26  ;;  %v2332_v22 = vsel %vm2331_vm5, %v4248_v45, %v4249_v49  ;;  %v2339_v6 = vsel %vm519_vm4, %v4253_v39, %v4254_v14 }
 0x6f7   : > { %v3778_v19 = vpack.c.bf16 %v2332_v22, %v2324_v28  ;;  %v4262_v25 = vpop.permute.xlu0 %4261  ;;  %v4257_v41 = vpop.permute.xlu1 %4256 }
 0x6f8   : > { %v4264_v54 = vunpack.i.h.bf16 %v4262_v25  ;;  %v4263_v46 = vunpack.i.l.bf16 %v4262_v25  ;;  %v4259_v30 = vunpack.i.h.bf16 %v4257_v41  ;;  %v4258_v23 = vunpack.i.l.bf16 %v4257_v41  ;;  %3777 = vmatprep.subr.bf16.mxu1 %v3776_v11 }
 0x6f9   : > { %3779 = vmatpush1.bf16.msra.mxu1 %v3778_v19 }
 0x6fa   : > { %v3780_v38 = vpack.c.bf16 %v4259_v30, %v4254_v14  ;;  %v2346_v60 = vsel %vm547_vm6, %v4258_v23, %v4259_v30  ;;  %v3784_v0 = vpack.c.bf16 %v4451_v31, %v4264_v54  ;;  %v2353_v61 = vsel %vm6229_vm12, %v4263_v46, %v4264_v54 }
 0x6fb   : > { %v3782_v42 = vpack.c.bf16 %v2346_v60, %v2339_v6  ;;  %v3787_v40 = vpack.c.bf16 %v4451_v31, %v2353_v61 }
 0x6fc   : > { %3781 = vmatprep.subr.bf16.mxu1 %v3780_v38 }
 0x6fd   : > { %3783 = vmatpush1.bf16.msra.mxu1 %v3782_v42 }
 0x6fe   : > { %3786 = vmatprep.subr.msk.bf16.mxu1 %vm5039_vm14, %v3784_v0 }
 0x701   : > { %3789 = vmatpush1.bf16.msk.msra.mxu1 %vm5039_vm14, %v3787_v40  ;;  %vm2561_vm14 = vcmask 138240  }
 0x704   : > { %3339 = vmatmul.mubr.msk.f32.vlgmr.msra.gmra.mrb[16].mxu1 %vm1289_vm15, %v2293_v4 }
 0x705   : > { %2432 = vmatprep.mubr.f32.mxu1 %v4447_v21 }
 0x708   : > { %3340 = vmatmul.mubr.msk.f32.gmra.mrb[18].mxu1 %vm1289_vm15, %v2294_v7  ;;  %vm6230_vm15 = vmmov %vm6228_vm7 }
 0x709   : > { %3343 = vmatprep.mubr.msk.f32.mxu1 %vm2561_vm14, %v2444_v35 }
 0x7d7   : > { %v2428_v32 = vpop.f32.mrb[16].mxu1 }
 0x7d8   : > { %v2439_v57 = vmax.f32 %v2428_v32, 0.0  ;;  %v2430_v56 = vpop.f32.mrb[17].mxu1 }
 0x7d9   : > { %v2440_v55 = vmax.f32 %v2430_v56, 0.0 }
 0x7db   : > { %v2434_v33 = vpop.f32.mrb[18].mxu1  ;;  %v4265_v20 = vpack.i.bf16 %v2440_v55, %v2439_v57 }
 0x7dc   : > { %v2441_v58 = vmax.f32 %v2434_v33, 0.0  ;;  %v2436_v10 = vpop.f32.mrb[19].mxu1 }
 0x7dd   : > { %v2442_v9 = vmax.f32 %v2436_v10, 0.0  ;;  %4266 = vrot.lane.b32.xlu1 %v4265_v20, %s4440_s28 }
 0x7de   : > { %v3792_v12 = vpack.c.bf16 %v2441_v58, %v2439_v57 }
 0x7df   : > { %v4305_v34 = vpack.i.bf16 %v2442_v9, %v2441_v58  ;;  %v3790_v5 = vpack.c.bf16 %v2442_v9, %v2440_v55 }
 0x7e1   : > { %4271 = vrot.lane.b32.xlu1 %v4265_v20, %s4439_s27  ;;  %4306 = vrot.lane.b32.xlu0 %v4305_v34, %s4440_s28 }
 0x7e2   : > { %3791 = vmatprep.subr.bf16.mxu1 %v3790_v5 }
 0x7e3   : > { %3793 = vmatpush1.bf16.msra.mxu1 %v3792_v12 }
 0x7e5   : > { %4276 = vrot.lane.b32.xlu1 %v4265_v20, %s4453_s17  ;;  %4311 = vrot.lane.b32.xlu0 %v4305_v34, %s4439_s27 }
 0x7e9   : > { %4281 = vrot.lane.b32.xlu1 %v4265_v20, %s4452_s16  ;;  %4316 = vrot.lane.b32.xlu0 %v4305_v34, %s4453_s17 }
 0x7ed   : > { %4286 = vrot.lane.b32.xlu1 %v4265_v20, %s4454_s18  ;;  %4321 = vrot.lane.b32.xlu0 %v4305_v34, %s4452_s16  ;;  %s4460_s16 = smov 117  }
 0x7f1   : > { %4291 = vrot.lane.b32.xlu1 %v4265_v20, %s4441_s29  ;;  %4326 = vrot.lane.b32.xlu0 %v4305_v34, %s4454_s18 }
 0x7f5   : > { %4296 = vrot.lane.b32.xlu1 %v4265_v20, %s4442_s30  ;;  %4331 = vrot.lane.b32.xlu0 %v4305_v34, %s4441_s29 }
 0x7f9   : > { %4301 = vrot.lane.b32.xlu1 %v4265_v20, %s4443_s13  ;;  %4336 = vrot.lane.b32.xlu0 %v4305_v34, %s4442_s30  ;;  %s4456_s30 = smov 123  }
 0x7fd   : > { %4341 = vrot.lane.b32.xlu0 %v4305_v34, %s4443_s13  ;;  %s4457_s13 = smov 118  }
 0x84f   : > { %v4267_v2 = vpop.permute.xlu1 %4266 }
 0x850   : > { %v4269_v16 = vunpack.i.h.bf16 %v4267_v2  ;;  %v4268_v52 = vunpack.i.l.bf16 %v4267_v2 }
 0x852   : > { %v2457_v29 = vsel %vm6230_vm15, %v4268_v52, %v4269_v16 }
 0x853   : > { %v4272_v15 = vpop.permute.xlu1 %4271  ;;  %v4307_v13 = vpop.permute.xlu0 %4306 }
 0x854   : > { %v4309_v1 = vunpack.i.h.bf16 %v4307_v13  ;;  %v4308_v24 = vunpack.i.l.bf16 %v4307_v13  ;;  %v4274_v50 = vunpack.i.h.bf16 %v4272_v15  ;;  %v4273_v18 = vunpack.i.l.bf16 %v4272_v15 }
 0x856   : > { %v3794_v53 = vpack.c.bf16 %v4309_v1, %v4269_v16  ;;  %v2458_v36 = vsel %vm6228_vm7, %v4308_v24, %v4309_v1  ;;  %v2471_v27 = vsel %vm491_vm1, %v4273_v18, %v4274_v50 }
 0x857   : > { %v3796_v37 = vpack.c.bf16 %v2458_v36, %v2457_v29  ;;  %v4277_v17 = vpop.permute.xlu1 %4276  ;;  %v4312_v47 = vpop.permute.xlu0 %4311 }
 0x858   : > { %v4314_v43 = vunpack.i.h.bf16 %v4312_v47  ;;  %v4313_v26 = vunpack.i.l.bf16 %v4312_v47  ;;  %3795 = vmatprep.subr.bf16.mxu1 %v3794_v53  ;;  %v4279_v8 = vunpack.i.h.bf16 %v4277_v17  ;;  %v4278_v3 = vunpack.i.l.bf16 %v4277_v17 }
 0x859   : > { %3797 = vmatpush1.bf16.msra.mxu1 %v3796_v37 }
 0x85a   : > { %v3798_v48 = vpack.c.bf16 %v4314_v43, %v4274_v50  ;;  %v2472_v51 = vsel %vm491_vm1, %v4313_v26, %v4314_v43  ;;  %v2485_v14 = vsel %vm2315_vm9, %v4278_v3, %v4279_v8  ;;  %vm6231_vm1 = vmmov %vm6229_vm12 }
 0x85b   : > { %v3800_v44 = vpack.c.bf16 %v2472_v51, %v2471_v27  ;;  %v4282_v62 = vpop.permute.xlu1 %4281  ;;  %v4317_v49 = vpop.permute.xlu0 %4316  ;;  %v2638_v51 = vld [vmem:[%s6179_s7] sm:$0xff] }
 0x85c   : > { %v4319_v45 = vunpack.i.h.bf16 %v4317_v49  ;;  %v4318_v28 = vunpack.i.l.bf16 %v4317_v49  ;;  %3799 = vmatprep.subr.bf16.mxu1 %v3798_v48  ;;  %v4284_v39 = vunpack.i.h.bf16 %v4282_v62  ;;  %v4283_v11 = vunpack.i.l.bf16 %v4282_v62  ;;  %v2443_v48 = vld [vmem:[%s6178_s6] sm:$0xff]  ;;  %v2640_v62 = vld [vmem:[%s6179_s7 + $0x10] sm:$0xff] }
 0x85d   : > { %3801 = vmatpush1.bf16.msra.mxu1 %v3800_v44  ;;  %v2639_v44 = vld [vmem:[%s6179_s7 + $0x8] sm:$0xff] }
 0x85e   : > { %v3802_v22 = vpack.c.bf16 %v4319_v45, %v4279_v8  ;;  %v2486_v19 = vsel %vm2315_vm9, %v4318_v28, %v4319_v45  ;;  %v2499_v38 = vsel %vm2323_vm0, %v4283_v11, %v4284_v39  ;;  %v3827_v49 = vpack.c.bf16 %v2639_v44, %v2638_v51  ;;  %v2641_v45 = vld [vmem:[%s6179_s7 + $0x18] sm:$0xff] }
 0x85f   : > { %v3804_v25 = vpack.c.bf16 %v2486_v19, %v2485_v14  ;;  %v4287_v41 = vpop.permute.xlu1 %4286  ;;  %v4322_v54 = vpop.permute.xlu0 %4321  ;;  %v3830_v28 = vpack.c.bf16 %v2641_v45, %v2640_v62  ;;  %v2642_v14 = vld [vmem:[%s6179_s7 + $0x20] sm:$0xff] }
 0x860   : > { %v4324_v46 = vunpack.i.h.bf16 %v4322_v54  ;;  %v4323_v30 = vunpack.i.l.bf16 %v4322_v54  ;;  %3803 = vmatprep.subr.bf16.mxu1 %v3802_v22  ;;  %v4289_v23 = vunpack.i.h.bf16 %v4287_v41  ;;  %v4288_v6 = vunpack.i.l.bf16 %v4287_v41  ;;  %v2644_v54 = vld [vmem:[%s6179_s7 + $0x30] sm:$0xff] }
 0x861   : > { %3805 = vmatpush1.bf16.msra.mxu1 %v3804_v25 }
 0x862   : > { %v3806_v60 = vpack.c.bf16 %v4324_v46, %v4284_v39  ;;  %v2500_v42 = vsel %vm2323_vm0, %v4323_v30, %v4324_v46  ;;  %v2513_v32 = vsel %vm2331_vm5, %v4288_v6, %v4289_v23  ;;  %v2643_v39 = vld [vmem:[%s6179_s7 + $0x28] sm:$0xff]  ;;  %v2645_v46 = vld [vmem:[%s6179_s7 + $0x38] sm:$0xff]  ;;  %vm2677_vm0 = vcmask 7168  }
 0x863   : > { %v3808_v0 = vpack.c.bf16 %v2500_v42, %v2499_v38  ;;  %v4292_v61 = vpop.permute.xlu1 %4291  ;;  %v4327_v40 = vpop.permute.xlu0 %4326  ;;  %v3833_v25 = vpack.c.bf16 %v2643_v39, %v2642_v14  ;;  %v3836_v30 = vpack.c.bf16 %v2645_v46, %v2644_v54  ;;  %v2647_v6 = vld [vmem:[%s6179_s7 + $0x48] sm:$0xff]  ;;  %v2649_v42 = vld [vmem:[%s6179_s7 + $0x58] sm:$0xff] }
 0x864   : > { %v4329_v4 = vunpack.i.h.bf16 %v4327_v40  ;;  %v4328_v7 = vunpack.i.l.bf16 %v4327_v40  ;;  %3807 = vmatprep.subr.bf16.mxu1 %v3806_v60  ;;  %v4294_v57 = vunpack.i.h.bf16 %v4292_v61  ;;  %v4293_v56 = vunpack.i.l.bf16 %v4292_v61  ;;  %v2648_v60 = vld [vmem:[%s6179_s7 + $0x50] sm:$0xff]  ;;  %v2650_v61 = vld [vmem:[%s6179_s7 + $0x60] sm:$0xff]  ;;  %v2651_v40 = vld [vmem:[%s6179_s7 + $0x68] sm:$0xff] }
 0x865   : > { %3809 = vmatpush1.bf16.msra.mxu1 %v3808_v0  ;;  %v3842_v0 = vpack.c.bf16 %v2649_v42, %v2648_v60 }
 0x866   : > { %v3810_v55 = vpack.c.bf16 %v4329_v4, %v4289_v23  ;;  %v2514_v33 = vsel %vm2331_vm5, %v4328_v7, %v4329_v4  ;;  %v2527_v35 = vsel %vm519_vm4, %v4293_v56, %v4294_v57  ;;  %v2646_v23 = vld [vmem:[%s6179_s7 + $0x40] sm:$0xff]  ;;  %v3845_v4 = vpack.c.bf16 %v2651_v40, %v2650_v61  ;;  %v2652_v7 = vld [vmem:[%s6179_s7 + $0x70] sm:$0xff]  ;;  %v2843_v40 = vld [vmem:[%s6181_s9 + $0x18] sm:$0xff] }
 0x867   : > { %v3812_v20 = vpack.c.bf16 %v2514_v33, %v2513_v32  ;;  %v4297_v58 = vpop.permute.xlu1 %4296  ;;  %v4332_v10 = vpop.permute.xlu0 %4331  ;;  %v3839_v38 = vpack.c.bf16 %v2647_v6, %v2646_v23  ;;  %v2653_v32 = vld [vmem:[%s6179_s7 + $0x78] sm:$0xff]  ;;  %v2654_v56 = vld [vmem:[%s6179_s7 + $0x80] sm:$0x1]  ;;  %vm2756_vm5 = vcmask 64512  }
 0x868   : > { %v4334_v9 = vunpack.i.h.bf16 %v4332_v10  ;;  %v4333_v12 = vunpack.i.l.bf16 %v4332_v10  ;;  %3811 = vmatprep.subr.bf16.mxu1 %v3810_v55  ;;  %v4299_v34 = vunpack.i.h.bf16 %v4297_v58  ;;  %v4298_v5 = vunpack.i.l.bf16 %v4297_v58  ;;  %v2840_v61 = vld [vmem:[%s6181_s9] sm:$0xff] }
 0x869   : > { %3813 = vmatpush1.bf16.msra.mxu1 %v3812_v20 }
 0x86a   : > { %v3814_v2 = vpack.c.bf16 %v4334_v9, %v4294_v57  ;;  %v2528_v16 = vsel %vm519_vm4, %v4333_v12, %v4334_v9  ;;  %v2541_v29 = vsel %vm547_vm6, %v4298_v5, %v4299_v34  ;;  %vm6232_vm4 = vmmov %vm6231_vm1  ;;  %v3848_v57 = vpack.c.bf16 %v2653_v32, %v2652_v7 }
 0x86b   : > { %v3816_v52 = vpack.c.bf16 %v2528_v16, %v2527_v35  ;;  %v4302_v15 = vpop.permute.xlu1 %4301  ;;  %v4337_v13 = vpop.permute.xlu0 %4336 }
 0x86c   : > { %v4339_v1 = vunpack.i.h.bf16 %v4337_v13  ;;  %v4338_v24 = vunpack.i.l.bf16 %v4337_v13  ;;  %3815 = vmatprep.subr.bf16.mxu1 %v3814_v2  ;;  %v4304_v50 = vunpack.i.h.bf16 %v4302_v15  ;;  %v4303_v18 = vunpack.i.l.bf16 %v4302_v15  ;;  %v2754_v2 = vld [vmem:[%s6180_s8] sm:$0xff] }
 0x86d   : > { %3817 = vmatpush1.bf16.msra.mxu1 %v3816_v52  ;;  %v2755_v52 = vld [vmem:[%s6180_s8 + $0x8] sm:$0xff] }
 0x86e   : > { %v3818_v53 = vpack.c.bf16 %v4339_v1, %v4299_v34  ;;  %v2542_v36 = vsel %vm547_vm6, %v4338_v24, %v4339_v1  ;;  %v2555_v26 = vsel %vm6231_vm1, %v4303_v18, %v4304_v50  ;;  %vm6233_vm6 = vmmov %vm6228_vm7 }
 0x86f   : > { %v3820_v37 = vpack.c.bf16 %v2542_v36, %v2541_v29  ;;  %v4342_v17 = vpop.permute.xlu0 %4341 }
 0x870   : > { %v4344_v47 = vunpack.i.h.bf16 %v4342_v17  ;;  %v4343_v43 = vunpack.i.l.bf16 %v4342_v17  ;;  %3819 = vmatprep.subr.bf16.mxu1 %v3818_v53  ;;  %v2841_v53 = vld [vmem:[%s6181_s9 + $0x8] sm:$0xff] }
 0x871   : > { %3821 = vmatpush1.bf16.msra.mxu1 %v3820_v37 }
 0x872   : > { %v3822_v8 = vpack.c.bf16 %v4344_v47, %v4304_v50  ;;  %v2556_v3 = vsel %vm6232_vm4, %v4343_v43, %v4344_v47 }
 0x873   : > { %v3824_v27 = vpack.c.bf16 %v2556_v3, %v2555_v26 }
 0x874   : > { %3823 = vmatprep.subr.bf16.mxu1 %v3822_v8 }
 0x875   : > { %3825 = vmatpush1.bf16.msra.mxu1 %v3824_v27 }
 0x876   : > { %3341 = vmatprep.subr.msk.mxu1 %vm686_vm2, %v4451_v31 }
 0x879   : > { %3342 = vmatpush1.msk.msra.mxu1 %vm686_vm2, %v4451_v31 }
 0x87a   : > { %2630 = vmatmul.mubr.f32.vlgmr.msra.gmra.mrb[20].mxu1 %v2443_v48  ;;  %3826 = vmatprep.subr.bf16.mxu1 %v4449_v63 }
 0x87b   : > { %3828 = vmatpush1.bf16.msra.mxu1 %v3827_v49 }
 0x87c   : > { %3829 = vmatprep.subr.bf16.mxu1 %v4449_v63 }
 0x87f   : > { %3831 = vmatpush1.bf16.msra.mxu1 %v3830_v28 }
 0x880   : > { %3832 = vmatprep.subr.bf16.mxu1 %v4449_v63 }
 0x883   : > { %3834 = vmatpush1.bf16.msra.mxu1 %v3833_v25 }
 0x884   : > { %3835 = vmatprep.subr.bf16.mxu1 %v4449_v63 }
 0x887   : > { %3837 = vmatpush1.bf16.msra.mxu1 %v3836_v30 }
 0x888   : > { %3838 = vmatprep.subr.bf16.mxu1 %v4449_v63 }
 0x88b   : > { %3840 = vmatpush1.bf16.msra.mxu1 %v3839_v38 }
 0x88c   : > { %3841 = vmatprep.subr.bf16.mxu1 %v4449_v63 }
 0x88f   : > { %3843 = vmatpush1.bf16.msra.mxu1 %v3842_v0 }
 0x890   : > { %3844 = vmatprep.subr.bf16.mxu1 %v4449_v63 }
 0x893   : > { %3846 = vmatpush1.bf16.msra.mxu1 %v3845_v4 }
 0x894   : > { %3847 = vmatprep.subr.bf16.mxu1 %v4449_v63 }
 0x897   : > { %3849 = vmatpush1.bf16.msra.mxu1 %v3848_v57 }
 0x898   : > { %2716 = vmatprep.subr.mxu1 %v4447_v21 }
 0x89b   : > { %3344 = vmatpush1.msk.msra.mxu1 %vm686_vm2, %v2654_v56 }
 0x94d   : > { %v2631_v11 = vpop.f32.mrb[20].mxu1 }
 0x94e   : > { %v2636_v22 = vmax.f32 %v2631_v11, 0.0  ;;  %v2633_v19 = vpop.f32.mrb[21].mxu1 }
 0x94f   : > { %v2637_v41 = vmax.f32 %v2633_v19, 0.0 }
 0x950   : > { %2657 = vrot.lane.b32.xlu1 %v2636_v22, %s4440_s28 }
 0x951   : > { %2659 = vrot.lane.b32.xlu0 %v2637_v41, %s4440_s28 }
 0x9c2   : > { %v2658_v55 = vpop.permute.xlu1 %2657 }
 0x9c3   : > { %v2660_v33 = vpop.permute.xlu0 %2659 }
 0x9c4   : > { %v2661_v20 = vsel %vm6233_vm6, %v2658_v55, %v2660_v33  ;;  %v2665_v58 = vmax.f32 %v2637_v41, %v2660_v33  ;;  %v2978_v33 = vld [vmem:[%s6182_s10 + $0x8] sm:$0x3] }
 0x9c5   : > { %v2664_v10 = vmax.f32 %v2636_v22, %v2661_v20 }
 0x9c6   : > { %2670 = vrot.lane.b32.xlu0 %v2665_v58, %s4453_s17 }
 0x9c7   : > { %2668 = vrot.lane.b32.xlu1 %v2664_v10, %s4453_s17  ;;  %s4455_s17 = smov 122  }
 0xa38   : > { %v2671_v9 = vpop.permute.xlu0 %2670 }
 0xa39   : > { %v2676_v12 = vmax.f32 %v2665_v58, %v2671_v9  ;;  %v2669_v34 = vpop.permute.xlu1 %2668 }
 0xa3a   : > { %v2672_v5 = vsel %vm2315_vm9, %v2669_v34, %v2671_v9 }
 0xa3b   : > { %v2675_v35 = vmax.f32 %v2664_v10, %v2672_v5  ;;  %3345 = vmatprep.mubr.msk.f32.mxu1 %vm2677_vm0, %v2676_v12 }
 0xa3d   : > { %2749 = vmatmul.mubr.f32.vlgmr.msra.gmra.mrb[22].mxu1 %v2675_v35 }
 0xa3e   : > { %3427 = vmatprep.mubr.msk.f32.mxu1 %vm2756_vm5, %v2754_v2 }
 0xb10   : > { %v2750_v16 = vpop.f32.mrb[22].mxu1 }
 0xb11   : > { %v2752_v15 = vpop.f32.mrb[23].mxu1  ;;  %3425 = vmatprep.subr.mxu1 %v2750_v16 }
 0xb12   : > { %3426 = vmatpush3.msra.mxu1 %v2750_v16 }
 0xb13   : > { %3428 = vmatmul.mubr.msk.f32.vlgmr.msra.gmra.mrb[24].mxu1 %vm2756_vm5, %v2755_v52  ;;  %3850 = vmatprep.subr.bf16.mxu1 %v4449_v63 }
 0xb14   : > { %3349 = vmatprep.mubr.msk.f32.mxu1 %vm2561_vm14, %v2841_v53 }
 0xbe6   : > { %v3429_v13 = vpop.f32.mrb[24].mxu1 }
 0xbe7   : > { %v2839_v1 = vmax.f32 %v3429_v13, 0.0  ;;  %v2829_v24 = vpop.f32.mrb[25].mxu1 }
 0xbe8   : > { %v2838_v29 = vmax.f32 %v2829_v24, 0.0 }
 0xbea   : > { %v4350_v50 = vpack.i.bf16 %v2839_v1, %v2838_v29  ;;  %v3851_v18 = vpack.c.bf16 %v2839_v1, %v2838_v29 }
 0xbec   : > { %4351 = vrot.lane.b32.xlu0 %v4350_v50, %s4439_s27  ;;  %4346 = vrot.lane.b32.xlu1 %v4350_v50, %s4440_s28 }
 0xbed   : > { %3852 = vmatpush1.bf16.msra.mxu1 %v3851_v18  ;;  %v3062_v18 = vld [vmem:[%s6183_s11] sm:$0xff] }
 0xbee   : > { %3853 = vmatprep.subr.bf16.mxu1 %v4449_v63 }
 0xbf0   : > { %4361 = vrot.lane.b32.xlu0 %v4350_v50, %s4455_s17  ;;  %4356 = vrot.lane.b32.xlu1 %v4350_v50, %s4456_s30 }
 0xbf4   : > { %4371 = vrot.lane.b32.xlu0 %v4350_v50, %s4457_s13  ;;  %4366 = vrot.lane.b32.xlu1 %v4350_v50, %s4458_s14 }
 0xbf8   : > { %4381 = vrot.lane.b32.xlu0 %v4350_v50, %s4459_s15  ;;  %4376 = vrot.lane.b32.xlu1 %v4350_v50, %s4460_s16 }
 0xc5e   : > { %v4352_v36 = vpop.permute.xlu0 %4351  ;;  %v4347_v37 = vpop.permute.xlu1 %4346 }
 0xc5f   : > { %v4349_v17 = vunpack.i.h.bf16 %v4347_v37  ;;  %v4348_v47 = vunpack.i.l.bf16 %v4347_v37  ;;  %v4354_v43 = vunpack.i.h.bf16 %v4352_v36  ;;  %v4353_v26 = vunpack.i.l.bf16 %v4352_v36 }
 0xc61   : > { %v3854_v8 = vpack.c.bf16 %v4349_v17, %v4348_v47  ;;  %v3857_v27 = vpack.c.bf16 %v4354_v43, %v4353_v26 }
 0xc62   : > { %v4357_v3 = vpop.permute.xlu1 %4356  ;;  %v4362_v44 = vpop.permute.xlu0 %4361 }
 0xc63   : > { %3855 = vmatpush1.bf16.msra.mxu1 %v3854_v8  ;;  %v4359_v48 = vunpack.i.h.bf16 %v4357_v3  ;;  %v4358_v51 = vunpack.i.l.bf16 %v4357_v3  ;;  %v4364_v62 = vunpack.i.h.bf16 %v4362_v44  ;;  %v4363_v49 = vunpack.i.l.bf16 %v4362_v44 }
 0xc64   : > { %3856 = vmatprep.subr.bf16.mxu1 %v4449_v63 }
 0xc65   : > { %v3860_v45 = vpack.c.bf16 %v4359_v48, %v4358_v51  ;;  %v3863_v14 = vpack.c.bf16 %v4364_v62, %v4363_v49 }
 0xc66   : > { %v4367_v28 = vpop.permute.xlu1 %4366  ;;  %v4372_v22 = vpop.permute.xlu0 %4371 }
 0xc67   : > { %3858 = vmatpush1.bf16.msra.mxu1 %v3857_v27  ;;  %v4369_v39 = vunpack.i.h.bf16 %v4367_v28  ;;  %v4368_v11 = vunpack.i.l.bf16 %v4367_v28  ;;  %v4374_v19 = vunpack.i.h.bf16 %v4372_v22  ;;  %v4373_v25 = vunpack.i.l.bf16 %v4372_v22 }
 0xc68   : > { %3859 = vmatprep.subr.bf16.mxu1 %v4449_v63 }
 0xc69   : > { %v3866_v41 = vpack.c.bf16 %v4369_v39, %v4368_v11  ;;  %v3869_v46 = vpack.c.bf16 %v4374_v19, %v4373_v25 }
 0xc6a   : > { %v4377_v54 = vpop.permute.xlu1 %4376  ;;  %v4382_v6 = vpop.permute.xlu0 %4381 }
 0xc6b   : > { %3861 = vmatpush1.bf16.msra.mxu1 %v3860_v45  ;;  %v4379_v30 = vunpack.i.h.bf16 %v4377_v54  ;;  %v4378_v23 = vunpack.i.l.bf16 %v4377_v54  ;;  %v4384_v38 = vunpack.i.h.bf16 %v4382_v6  ;;  %v4383_v60 = vunpack.i.l.bf16 %v4382_v6 }
 0xc6c   : > { %3862 = vmatprep.subr.bf16.mxu1 %v4449_v63 }
 0xc6d   : > { %v3872_v42 = vpack.c.bf16 %v4379_v30, %v4378_v23  ;;  %v3875_v0 = vpack.c.bf16 %v4384_v38, %v4383_v60 }
 0xc6f   : > { %3864 = vmatpush1.bf16.msra.mxu1 %v3863_v14 }
 0xc70   : > { %3865 = vmatprep.subr.bf16.mxu1 %v4449_v63 }
 0xc73   : > { %3867 = vmatpush1.bf16.msra.mxu1 %v3866_v41 }
 0xc74   : > { %3868 = vmatprep.subr.bf16.mxu1 %v4449_v63 }
 0xc77   : > { %3870 = vmatpush1.bf16.msra.mxu1 %v3869_v46 }
 0xc78   : > { %3871 = vmatprep.subr.bf16.mxu1 %v4449_v63 }
 0xc7b   : > { %3873 = vmatpush1.bf16.msra.mxu1 %v3872_v42 }
 0xc7c   : > { %3874 = vmatprep.subr.bf16.mxu1 %v4449_v63  ;;  %v2842_v63 = vld [vmem:[%s6181_s9 + $0x10] sm:$0xff] }
 0xc7f   : > { %3876 = vmatpush1.bf16.msra.mxu1 %v3875_v0 }
 0xc80   : > { %2936 = vmatprep.subr.mxu1 %v4447_v21  ;;  %v2977_v21 = vld [vmem:[%s6182_s10] sm:$0xff] }
 0xc83   : > { %3348 = vmatpush1.msk.msra.mxu1 %vm686_vm2, %v4451_v31  ;;  %vm3128_vm2 = vcmask 736256  }
 0xc84   : > { %2965 = vmatmul.mubr.f32.vlgmr.msra.gmra.mrb[26].mxu1 %v2840_v61 }
 0xc85   : > { %3350 = vmatprep.mubr.msk.f32.mxu1 %vm2561_vm14, %v2843_v40 }
 0xc88   : > { %2970 = vmatmul.mubr.f32.gmra.mrb[28].mxu1 %v2842_v63 }
 0xc89   : > { %3434 = vmatprep.mubr.msk.f32.mxu1 %vm2216_vm13, %v2977_v21  ;;  %v3063_v21 = vld [vmem:[%s6183_s11 + $0x8] sm:$0x3] }
 0xd57   : > { %v2966_v4 = vpop.f32.mrb[26].mxu1 }
 0xd58   : > { %v2968_v7 = vpop.f32.mrb[27].mxu1  ;;  %v2975_v57 = vmax.f32 %v2966_v4, 0.0 }
 0xd5b   : > { %v2971_v32 = vpop.f32.mrb[28].mxu1 }
 0xd5c   : > { %v2976_v56 = vmax.f32 %v2971_v32, 0.0  ;;  %v2973_v31 = vpop.f32.mrb[29].mxu1 }
 0xd5e   : > { %v3877_v55 = vpack.c.bf16 %v2976_v56, %v2975_v57 }
 0xd60   : > { %3878 = vmatprep.subr.bf16.mxu1 %v3877_v55 }
 0xd61   : > { %3880 = vmatpush3.bf16.msra.mxu1 %v3877_v55 }
 0xd64   : > { %3435 = vmatmul.mubr.msk.f32.vlgmr.msra.gmra.mrb[30].mxu1 %vm2216_vm13, %v2978_v33 }
 0xd65   : > { %3461 = vmatprep.mubr.msk.f32.mxu1 %vm3128_vm2, %v3062_v18 }
 0xe37   : > { %v3436_v20 = vpop.f32.mrb[30].mxu1 }
 0xe38   : > { %v3061_v58 = vmax.f32 %v3436_v20, 0.0  ;;  %v3051_v10 = vpop.f32.mrb[31].mxu1 }
 0xe39   : > { %v3060_v9 = vmax.f32 %v3051_v10, 0.0 }
 0xe3a   : > { %v3076_v12 = vrot.slane %v3061_v58, 4  ;;  %v3067_v34 = vrot.slane %v3061_v58, 6  ;;  %v3085_v16 = vrot.slane %v3061_v58, 2 }
 0xe3b   : > { %v3075_v5 = vrot.slane %v3060_v9, 4  ;;  %v3066_v35 = vrot.slane %v3060_v9, 6  ;;  %v3084_v2 = vrot.slane %v3060_v9, 2  ;;  %v4400_v29 = vpack.i.bf16 %v3061_v58, %v3060_v9 }
 0xe3d   : > { %v3077_v52 = vsel %vm710_vm8, %v3075_v5, %v3076_v12  ;;  %v3068_v15 = vsel %vm694_vm3, %v3066_v35, %v3067_v34  ;;  %v3086_v24 = vsel %vm726_vm11, %v3084_v2, %v3085_v16 }
 0xe3e   : > { %v4390_v13 = vpack.i.bf16 %v3077_v52, %v3075_v5  ;;  %v4385_v1 = vpack.i.bf16 %v3068_v15, %v3066_v35  ;;  %v4395_v50 = vpack.i.bf16 %v3086_v24, %v3084_v2 }
 0xe40   : > { %4391 = vrot.lane.b32.xlu0 %v4390_v13, %s4439_s27  ;;  %4386 = vrot.lane.b32.xlu1 %v4385_v1, %s4440_s28 }
 0xe44   : > { %4401 = vrot.lane.b32.xlu0 %v4400_v29, %s4455_s17  ;;  %4396 = vrot.lane.b32.xlu1 %v4395_v50, %s4456_s30  ;;  %s3358_s17 = sshll.u32 %s6235_s22, 4 }
 0xe48   : > { %4411 = vrot.lane.b32.xlu0 %v4390_v13, %s4457_s13  ;;  %4406 = vrot.lane.b32.xlu1 %v4385_v1, %s4458_s14  ;;  %s410_s14 = scalar_lea.vmem %s6184_s12, %s3358_s17 }
 0xe4c   : > { %4421 = vrot.lane.b32.xlu0 %v4400_v29, %s4459_s15  ;;  %4416 = vrot.lane.b32.xlu1 %v4395_v50, %s4460_s16 }
 0xeb2   : > { %v4392_v53 = vpop.permute.xlu0 %4391  ;;  %v4387_v36 = vpop.permute.xlu1 %4386 }
 0xeb3   : > { %v4388_v37 = vunpack.i.l.bf16 %v4387_v36  ;;  %v4393_v17 = vunpack.i.l.bf16 %v4392_v53  ;;  %v4389_v47 = vunpack.i.h.bf16 %v4387_v36  ;;  %v4394_v27 = vunpack.i.h.bf16 %v4392_v53 }
 0xeb5   : > { %v3122_v43 = vsel %vm694_vm3, %v3061_v58, %v4388_v37  ;;  %v3123_v62 = vsel %vm710_vm8, %v4389_v47, %v4393_v17 }
 0xeb6   : > { %v4402_v26 = vpop.permute.xlu0 %4401  ;;  %v4397_v8 = vpop.permute.xlu1 %4396  ;;  %v3881_v3 = vpack.c.bf16 %v3122_v43, %v3060_v9 }
 0xeb7   : > { %v4398_v48 = vunpack.i.l.bf16 %v4397_v8  ;;  %v4403_v51 = vunpack.i.l.bf16 %v4402_v26  ;;  %v4399_v44 = vunpack.i.h.bf16 %v4397_v8  ;;  %v4404_v39 = vunpack.i.h.bf16 %v4402_v26 }
 0xeb8   : > { %3882 = vmatprep.subr.bf16.mxu1 %v3881_v3 }
 0xeb9   : > { %3884 = vmatpush3.bf16.msra.mxu1 %v3881_v3  ;;  %v3124_v49 = vsel %vm726_vm11, %v4394_v27, %v4398_v48  ;;  %v3889_v25 = vpack.c.bf16 %v4403_v51, %v4399_v44 }
 0xeba   : > { %v4412_v45 = vpop.permute.xlu0 %4411  ;;  %v4407_v28 = vpop.permute.xlu1 %4406  ;;  %v3885_v14 = vpack.c.bf16 %v3124_v49, %v3123_v62 }
 0xebb   : > { %v4413_v11 = vunpack.i.l.bf16 %v4412_v45  ;;  %v4409_v22 = vunpack.i.h.bf16 %v4407_v28  ;;  %v4408_v19 = vunpack.i.l.bf16 %v4407_v28  ;;  %v4414_v30 = vunpack.i.h.bf16 %v4412_v45 }
 0xebc   : > { %3886 = vmatprep.subr.bf16.mxu1 %v3885_v14 }
 0xebd   : > { %3888 = vmatpush3.bf16.msra.mxu1 %v3885_v14  ;;  %v3125_v41 = vsel %vm694_vm3, %v4404_v39, %v4408_v19  ;;  %v3126_v54 = vsel %vm710_vm8, %v4409_v22, %v4413_v11  ;;  %vm3213_vm3 = vcmask 1024  }
 0xebe   : > { %v4417_v46 = vpop.permute.xlu1 %4416  ;;  %3890 = vmatprep.subr.bf16.mxu1 %v3889_v25  ;;  %v3893_v38 = vpack.c.bf16 %v3126_v54, %v3125_v41  ;;  %v4422_v60 = vpop.permute.xlu0 %4421 }
 0xebf   : > { %v4418_v23 = vunpack.i.l.bf16 %v4417_v46  ;;  %v4419_v6 = vunpack.i.h.bf16 %v4417_v46  ;;  %v4424_v0 = vunpack.i.h.bf16 %v4422_v60  ;;  %v4423_v61 = vunpack.i.l.bf16 %v4422_v60 }
 0xec1   : > { %v3127_v42 = vsel %vm726_vm11, %v4414_v30, %v4418_v23  ;;  %3892 = vmatpush3.bf16.msra.mxu1 %v3889_v25  ;;  %v3901_v63 = vpack.c.bf16 %v4424_v0, %v4423_v61 }
 0xec2   : > { %3894 = vmatprep.subr.bf16.mxu1 %v3893_v38  ;;  %v3897_v40 = vpack.c.bf16 %v4419_v6, %v3127_v42 }
 0xec5   : > { %3896 = vmatpush3.bf16.msra.mxu1 %v3893_v38 }
 0xec6   : > { %3898 = vmatprep.subr.bf16.mxu1 %v3897_v40 }
 0xec9   : > { %3900 = vmatpush3.bf16.msra.mxu1 %v3897_v40 }
 0xeca   : > { %3903 = vmatprep.subr.msk.bf16.mxu1 %vm4717_vm10, %v3901_v63 }
 0xecd   : > { %3906 = vmatpush3.bf16.msk.msra.mxu1 %vm4717_vm10, %v3901_v63 }
 0xed0   : > { %3462 = vmatmul.mubr.msk.f32.vlgmr.msra.gmra.mrb[32].mxu1 %vm3128_vm2, %v3063_v21 }
 0xfa3   : > { %v3463_v4 = vpop.f32.mrb[32].mxu1 }
 0xfa4   : > { %v3214_v7 = vsel %vm3213_vm3, %v3463_v4, -inf  ;;  %v3203_v32 = vpop.f32.mrb[33].mxu1 }
 0xfa5   : > { %v3212_v57 = vsel %vm2677_vm0, %v3203_v32, -inf }
 0xfa6   : > { %v3215_v56 = vmax.f32 %v3212_v57, %v3214_v7 }
 0xfa8   : > { %v3216_v31 = vrot.slane %v3215_v56, 4 }
 0xfaa   : > { %v3217_v55 = vmax.f32 %v3215_v56, %v3216_v31 }
 0xfac   : > { %v3218_v33 = vrot.slane %v3217_v55, 2 }
 0xfae   : > { %v3219_v20 = vmax.f32 %v3217_v55, %v3218_v33 }
 0xfb0   : > { %v3220_v59 = vrot.slane %v3219_v20, 1 }
 0xfb2   : > { %v3221_v58 = vmax.f32 %v3219_v20, %v3220_v59 }
 0xfb4   : > { %v3222_v10 = vsub.f32 %v3203_v32, %v3221_v58  ;;  %v3223_v9 = vsub.f32 %v3463_v4, %v3221_v58 }
 0xfb6   : > { %v3224_v12 = vmul.f32 1.442695, %v3222_v10  ;;  %v3226_v34 = vmul.f32 1.442695, %v3223_v9 }
 0xfb8   : > { %4425 = vpow2.f32 %v3224_v12 }
 0xfb9   : > { %4427 = vpow2.f32 %v3226_v34 }
 0xfc2   : > { %v4426_v5 = vpop.eup %4425 }
 0xfc3   : > { %v4428_v35 = vpop.eup %4427  ;;  %v3228_v2 = vsel %vm2677_vm0, %v4426_v5, 0.0 }
 0xfc4   : > { %v3229_v16 = vsel %vm3213_vm3, %v4428_v35, 0.0 }
 0xfc5   : > { %v3230_v52 = vadd.f32 %v3229_v16, %v3228_v2 }
 0xfc7   : > { %v3231_v15 = vrot.slane %v3230_v52, 4 }
 0xfc9   : > { %v3232_v13 = vadd.f32 %v3231_v15, %v3230_v52 }
 0xfcb   : > { %v3233_v1 = vrot.slane %v3232_v13, 2 }
 0xfcd   : > { %v3234_v24 = vadd.f32 %v3233_v1, %v3232_v13 }
 0xfcf   : > { %v3235_v29 = vrot.slane %v3234_v24, 1 }
 0xfd1   : > { %v3236_v50 = vadd.f32 %v3235_v29, %v3234_v24 }
 0xfd3   : > { %4429 = vlog2.f32 %v3236_v50 }
 0xfdd   : > { %v4430_v18 = vpop.eup %4429 }
 0xfde   : > { %v3238_v53 = vmul.f32 0.6931472, %v4430_v18 }
 0xfe0   : > { %v3239_v36 = vsub.f32 %v3222_v10, %v3238_v53  ;;  %v3240_v37 = vsub.f32 %v3223_v9, %v3238_v53 }
 0xfe2   : > { %3241 = vst.msk [vmem:[%s410_s14] sm:$0xff] %vm2677_vm0, %v3239_v36 }
 0xfe3   : > { %3242 = vst.msk [vmem:[%s410_s14 + $0x8] sm:$0x3] %vm3213_vm3, %v3240_v37 }
 0xfe4 PF: > { %s22_s21 = sadd.s32 1, %s4437_s21  }
 0xfe5   : > { %p19_p4 = scmp.ge.s32.totalorder %s22_s21, 4  }
 0xfe7   :  { %21 = sbr.rel (!%p19_p4) target bundleno = 1 (0x1), region = 98 }

</bundles_post_ra>
